<compile_context>
chip_gen: v7x
topology: tpu7x:2x2x1
jax: 0.10.0
libtpu: 0.0.40
codegen_flags: <defaults>
</compile_context>

<pallas_src>
import functools

import jax
import jax.numpy as jnp
from jax.experimental import pallas as pl
from jax.experimental.pallas import tpu as pltpu


def csfi_kernel(x_pad_ref, edge_ref,
                gw1_ref, gb1_ref, ggam_ref, gbet_ref, galp_ref,
                gw2_ref, gb2_ref,
                cw_ref, cb_ref, cgam_ref, cbet_ref, calp_ref,
                m_ref, p_ref,
                out_ref, *, H, W, C, Cp):
    f32 = jnp.float32
    bf16 = jnp.bfloat16
    HW = H * W
    inv_hw = 1.0 / float(HW)

    xp = x_pad_ref[0]                                   # (H+2, W+2, C) bf16, zero-padded
    se_row = jax.nn.sigmoid(edge_ref[0].astype(f32))    # (1, HW) lane-dense edge row
    ones_row = jnp.ones((1, HW), f32)

    # ---- shared im2col: one (HW, 9*C) bf16 buffer feeds BOTH 3x3 convs --------
    # 3 column-shifted slabs (the only sublane-shift copies), then 9 free
    # leading-dim (dy) slices.  Tap order t = dy*3 + dx matches gw1_bd / conv_w.
    # TODO(synk): at deployment-scale H,W replace this monolithic (HW, 9C) buffer
    # with a row-tiled grid axis (1-row halo) + two-pass GroupNorm so the live set
    # fits v7x's 64 MiB VMEM and gives its 2 TensorCores a parallel axis at N=1.
    cols = [xp[:, dx:dx + W, :] for dx in range(3)]     # (H+2, W, C) x 3
    patches = jnp.concatenate(
        [cols[dx][dy:dy + H].reshape(HW, C) for dy in range(3) for dx in range(3)],
        axis=-1)                                        # (HW, 9*C) bf16

    # ---- fused gate branch: block-diagonal conv3x3 over all 8 gates -----------
    y = jnp.dot(patches, gw1_ref[...],                  # (HW,9C)@(9C,C) bf16 -> f32 acc
                preferred_element_type=f32) + gb1_ref[...]

    # Gate GroupNorm(8, Cg) has group-size 1 => per-channel norm over HW.
    # Stats on the MXU: one (1,HW)@(HW,2C) matmul (2C == 128 lanes, dense) instead
    # of XLU cross-sublane reductions (the XLU already carries the im2col relayout).
    yst = jnp.dot(ones_row, jnp.concatenate([y, y * y], axis=-1),
                  preferred_element_type=f32) * inv_hw                 # (1, 2C)
    gmean = yst[:, :C]
    gvar = jnp.maximum(yst[:, C:] - gmean * gmean, 0.0)
    # TODO(synk): E[x^2]-E[x]^2 can cancel for large activations; the clamp keeps it
    # finite, but a centered two-pass variance would be safer in that regime.
    y = (y - gmean) * jax.lax.rsqrt(gvar + 1e-5)
    y = y * ggam_ref[...] + gbet_ref[...]
    y = jnp.where(y >= 0, y, galp_ref[...] * y)                        # PReLU

    # 8 gate logits (block-diag 1x1 conv) + sigmoid + edge gating + global average
    # pool: the HW reduction is a single (1,HW)@(HW,8) matmul on the MXU.
    logits = jnp.dot(y, gw2_ref[...], preferred_element_type=f32) + gb2_ref[...]
    gv = jnp.dot(se_row, jax.nn.sigmoid(logits),
                 preferred_element_type=f32) * inv_hw                  # (1, 8)

    # Softmax over the 8 pooled scalars.
    ex = jnp.exp(gv - jnp.max(gv, axis=-1, keepdims=True))
    ws = ex / jnp.sum(ex, axis=-1, keepdims=True)                      # (1, 8)

    # Per-input-channel scale in sublane orientation: (C, 1) = sum_g M[c,g]*ws[g].
    scale_col = jnp.sum(m_ref[...] * ws, axis=-1, keepdims=True)

    # ---- final conv: fold the scale into the weights (conv(x*s,w)==conv(x,s*w)).
    # Output channels are zero-padded C -> Cp (=128) so the (HW, Cp) result and its
    # writeback are lane-dense (unmasked vst); the wrapper slices [:, :C] back off.
    w2 = (cw_ref[...] * scale_col.reshape(1, C, 1)).reshape(9 * C, Cp).astype(bf16)
    z = jnp.dot(patches, w2, preferred_element_type=f32) + cb_ref[...]

    # Final GroupNorm(8, C): per-channel sums via MXU, then one matmul with the
    # precomputed group-aggregation operator P = (M @ M^T) / (HW * group_size).
    # Padded channels are exact zeros end-to-end (zero weights/bias/gamma/beta/P).
    zst = jnp.dot(ones_row, jnp.concatenate([z, z * z], axis=-1),
                  preferred_element_type=f32)                          # (1, 2*Cp)
    mean_c = jnp.dot(zst[:, :Cp], p_ref[...], preferred_element_type=f32)
    msq_c = jnp.dot(zst[:, Cp:], p_ref[...], preferred_element_type=f32)
    var_c = jnp.maximum(msq_c - mean_c * mean_c, 0.0)
    z = (z - mean_c) * jax.lax.rsqrt(var_c + 1e-5)
    z = z * cgam_ref[...] + cbet_ref[...]
    z = jnp.where(z >= 0, z, calp_ref[0, 0] * z)                       # PReLU
    # TODO(synk): on v6e/v7x the two GN/PReLU epilogues could run in bf16 (native
    # bf16 VALU); kept f32 here for v5e portability and reference accuracy.

    out_ref[0] = z.astype(out_ref.dtype)


def init_params(key, channel=64, groups=8, ratio=8):
    Cg = channel // ratio
    ks = jax.random.split(key, 10)

    def nrm(k, shape, s=0.1):
        return jax.random.normal(k, shape, jnp.float32) * s

    return dict(
        gate_w1=nrm(ks[0], (8, 9, Cg, Cg)),
        gate_b1=nrm(ks[1], (8, Cg)),
        gate_gamma=1.0 + nrm(ks[2], (8, Cg), 0.05),
        gate_beta=nrm(ks[3], (8, Cg), 0.05),
        gate_alpha=jnp.full((8, 1), 0.25, jnp.float32),   # PReLU init (PyTorch default)
        gate_w2=nrm(ks[4], (8, Cg)),
        gate_b2=nrm(ks[5], (8, 1)),
        conv_w=nrm(ks[6], (9, channel, channel), 0.05),
        conv_b=nrm(ks[7], (1, channel), 0.05),
        conv_gamma=1.0 + nrm(ks[8], (1, channel), 0.05),
        conv_beta=nrm(ks[9], (1, channel), 0.05),
        conv_alpha=jnp.full((1, 1), 0.25, jnp.float32),
    )


def _prep_params(params, C, HW):
    """Fold the 8 gate branches into block-diagonal operators and pad the final
    conv to lane-dense (Cp) output channels.  Done once, in plain JAX."""
    f32 = jnp.float32
    Cg = C // 8
    Cp = ((C + 127) // 128) * 128          # lane-dense output channel count

    # Block-diagonal 3x3 gate conv: (9, C, C) -> (9*C, C), bf16 MXU operand.
    gw1_bd = jnp.zeros((9, C, C), f32)
    for g in range(8):
        gw1_bd = gw1_bd.at[:, g * Cg:(g + 1) * Cg, g * Cg:(g + 1) * Cg].set(
            params['gate_w1'][g])
    gw1_bd = gw1_bd.reshape(9 * C, C).astype(jnp.bfloat16)

    gb1 = params['gate_b1'].reshape(1, C)
    ggam = params['gate_gamma'].reshape(1, C)
    gbet = params['gate_beta'].reshape(1, C)
    galp = jnp.repeat(params['gate_alpha'][:, 0], Cg).reshape(1, C)

    # Channel -> gate / GroupNorm-group membership (identical mapping: c // Cg).
    M = (jnp.arange(C)[:, None] // Cg == jnp.arange(8)[None, :]).astype(f32)  # (C, 8)

    gw2_bd = M * params['gate_w2'].reshape(C, 1)        # (C, 8) block-diag 1x1 conv
    gb2 = params['gate_b2'].reshape(1, 8)

    # Final conv / GN params, zero-padded to Cp output channels (lane-dense store).
    cw = jnp.zeros((9, C, Cp), f32).at[:, :, :C].set(params['conv_w'])
    cb = jnp.zeros((1, Cp), f32).at[:, :C].set(params['conv_b'])
    cgam = jnp.zeros((1, Cp), f32).at[:, :C].set(params['conv_gamma'])
    cbet = jnp.zeros((1, Cp), f32).at[:, :C].set(params['conv_beta'])
    calp = params['conv_alpha'].reshape(1, 1)

    # Group-aggregation operator for the final GroupNorm: padded channels are zero
    # rows/cols, so they neither contribute to nor receive group statistics.
    Mp = jnp.zeros((Cp, 8), f32).at[:C, :].set(M)
    P = (Mp @ Mp.T) * (1.0 / float(HW * (C // 8)))      # (Cp, Cp)

    plist = [gw1_bd, gb1, ggam, gbet, galp, gw2_bd, gb2,
             cw, cb, cgam, cbet, calp, M, P]
    return plist, Cp


def _vmem_limit_bytes():
    """Generation-aware scoped-VMEM limit (v5e/v6e: 128 MiB phys, v7x: 64 MiB)."""
    try:
        cap = int(pltpu.get_tpu_info().vmem_capacity_bytes)
    except Exception:
        cap = 64 * 1024 * 1024              # conservative fallback
    return min(cap * 3 // 4, 96 * 1024 * 1024)


@jax.jit
def csfi_forward(x_nchw, edge_nchw, params):
    N, C, H, W = x_nchw.shape
    HW = H * W

    # NCHW -> NHWC, zero-pad for the 3x3 convs; bf16 for the MXU operand path.
    x_nhwc = jnp.transpose(x_nchw, (0, 2, 3, 1))
    x_pad = jnp.pad(x_nhwc, ((0, 0), (1, 1), (1, 1), (0, 0))).astype(jnp.bfloat16)
    # Edge as a lane-dense (N, 1, HW) row (avoids a lane-width-1 block + relayout).
    edge_row = edge_nchw.reshape(N, 1, HW)

    plist, Cp = _prep_params(params, C, HW)

    def param_spec(a):
        # Constant index_map -> the pipeliner fetches these once.
        # TODO(synk): pipeline_mode=pl.Buffered(1) would drop the second buffer for
        # these constants; omitted to keep the lowering path conservative.
        return pl.BlockSpec(a.shape, lambda n, _nd=a.ndim: (0,) * _nd)

    in_specs = [
        pl.BlockSpec((1, H + 2, W + 2, C), lambda n: (n, 0, 0, 0)),
        pl.BlockSpec((1, 1, HW), lambda n: (n, 0, 0)),
    ] + [param_spec(a) for a in plist]

    kernel = functools.partial(csfi_kernel, H=H, W=W, C=C, Cp=Cp)
    out = pl.pallas_call(
        kernel,
        out_shape=jax.ShapeDtypeStruct((N, HW, Cp), jnp.float32),
        grid=(N,),
        in_specs=in_specs,
        out_specs=pl.BlockSpec((1, HW, Cp), lambda n: (n, 0, 0)),
        # "parallel" lets v7x shard the batch over its 2 TensorCores.
        # TODO(synk): for deployment-scale H,W add a row-tile "parallel" grid axis
        # (1-row halo, two-pass GroupNorm) sized to the per-generation VMEM budget.
        compiler_params=pltpu.CompilerParams(
            dimension_semantics=("parallel",),
            vmem_limit_bytes=_vmem_limit_bytes()),
    )(x_pad, edge_row, *plist)

    # Padded output lanes [C:Cp] are zeros by construction; slice them off BEFORE
    # the NCHW transpose (forgetting this slice would corrupt the output).
    out = out[:, :, :C].reshape(N, H, W, C)
    return jnp.transpose(out, (0, 3, 1, 2))


def csfi_reference(x_nchw, edge_nchw, params):
    """Pure-JAX f32 reference mirroring the module forward (for validation)."""
    N, C, H, W = x_nchw.shape
    Cg = C // 8
    x = jnp.transpose(x_nchw, (0, 2, 3, 1))
    xp = jnp.pad(x, ((0, 0), (1, 1), (1, 1), (0, 0)))
    edge = jnp.transpose(edge_nchw, (0, 2, 3, 1))
    se = jax.nn.sigmoid(edge)

    def conv3x3(xpad, w, b):
        out = 0.0
        for t in range(9):
            dy, dx = t // 3, t % 3
            out = out + jnp.einsum('nhwi,io->nhwo', xpad[:, dy:dy + H, dx:dx + W, :], w[t])
        return out + b.reshape(1, 1, 1, -1)

    def group_norm(y, gamma, beta, G=8, eps=1e-5):
        n, h, w, c = y.shape
        gs = c // G
        yr = y.reshape(n, h * w, G, gs)
        mean = yr.mean(axis=(1, 3), keepdims=True)
        var = ((yr - mean) ** 2).mean(axis=(1, 3), keepdims=True)
        yn = ((yr - mean) / jnp.sqrt(var + eps)).reshape(n, h, w, c)
        return yn * gamma.reshape(1, 1, 1, c) + beta.reshape(1, 1, 1, c)

    gvs = []
    for g in range(8):
        xg = xp[..., g * Cg:(g + 1) * Cg]
        y = conv3x3(xg, params['gate_w1'][g], params['gate_b1'][g])
        y = group_norm(y, params['gate_gamma'][g], params['gate_beta'][g])
        a = params['gate_alpha'][g, 0]
        y = jnp.where(y >= 0, y, a * y)
        cm = jax.nn.sigmoid(
            jnp.sum(y * params['gate_w2'][g].reshape(1, 1, 1, Cg), axis=-1, keepdims=True)
            + params['gate_b2'][g, 0])
        e = cm * se
        gvs.append(jnp.mean(e, axis=(1, 2, 3)))
    gv = jnp.stack(gvs, axis=1)                       # (N, 8)
    wts = jax.nn.softmax(gv, axis=1)
    scale = jnp.repeat(wts, Cg, axis=1)               # (N, C)
    nxp = xp * scale.reshape(N, 1, 1, C)
    y = conv3x3(nxp, params['conv_w'], params['conv_b'][0])
    y = group_norm(y, params['conv_gamma'][0], params['conv_beta'][0])
    a = params['conv_alpha'][0, 0]
    y = jnp.where(y >= 0, y, a * y)
    return jnp.transpose(y, (0, 3, 1, 2))


if __name__ == "__main__":
    key = jax.random.PRNGKey(0)
    kx, ke, kp = jax.random.split(key, 3)
    N, C, H, W = 2, 64, 16, 16        # channel=64 so GroupNorm(8, channel//8) is valid
    x = jax.random.normal(kx, (N, C, H, W), jnp.float32)
    edge = jax.random.normal(ke, (N, 1, H, W), jnp.float32)
    params = init_params(kp, channel=C)

    out = csfi_forward(x, edge, params)
    out = jax.block_until_ready(out)
    assert out.shape == (N, C, H, W)

    ref = csfi_reference(x, edge, params)
    err = float(jnp.max(jnp.abs(out - ref)))
    # bf16 MXU operands vs. the pure-f32 reference => slightly wider tolerance.
    assert err < 2e-2, f"kernel/reference mismatch: max abs err {err}"

    print("KERNEL_OK")
</pallas_src>

<mosaic_0001>
module attributes {stable_mosaic.version = 11 : i64} {
  func.func @csfi_kernel(%arg0: i32, %arg1: memref<1x18x18x64xbf16, #tpu.memory_space<vmem>>, %arg2: memref<1x1x256xf32, #tpu.memory_space<vmem>>, %arg3: memref<576x64xbf16, #tpu.memory_space<vmem>>, %arg4: memref<1x64xf32, #tpu.memory_space<vmem>>, %arg5: memref<1x64xf32, #tpu.memory_space<vmem>>, %arg6: memref<1x64xf32, #tpu.memory_space<vmem>>, %arg7: memref<1x64xf32, #tpu.memory_space<vmem>>, %arg8: memref<64x8xf32, #tpu.memory_space<vmem>>, %arg9: memref<1x8xf32, #tpu.memory_space<vmem>>, %arg10: memref<9x64x128xf32, #tpu.memory_space<vmem>>, %arg11: memref<1x128xf32, #tpu.memory_space<vmem>>, %arg12: memref<1x128xf32, #tpu.memory_space<vmem>>, %arg13: memref<1x128xf32, #tpu.memory_space<vmem>>, %arg14: memref<1x1xf32, #tpu.memory_space<vmem>>, %arg15: memref<64x8xf32, #tpu.memory_space<vmem>>, %arg16: memref<128x128xf32, #tpu.memory_space<vmem>>, %arg17: memref<1x256x128xf32, #tpu.memory_space<vmem>>) attributes {dimension_semantics = [#tpu.dimension_semantics<parallel>], iteration_bounds = array<i64: 2>, scalar_prefetch = 0 : i64, scratch_operands = 0 : i64, tpu.core_type = #tpu.core_type<tc>, window_params = [{transform_indices = @transform_0, window_bounds = array<i64: 1, 18, 18, 64>}, {transform_indices = @transform_1, window_bounds = array<i64: 1, 1, 256>}, {pipeline_mode = #tpu.pipeline_mode<synchronous>, transform_indices = @transform_2, window_bounds = array<i64: 576, 64>}, {pipeline_mode = #tpu.pipeline_mode<synchronous>, transform_indices = @transform_3, window_bounds = array<i64: 1, 64>}, {pipeline_mode = #tpu.pipeline_mode<synchronous>, transform_indices = @transform_4, window_bounds = array<i64: 1, 64>}, {pipeline_mode = #tpu.pipeline_mode<synchronous>, transform_indices = @transform_5, window_bounds = array<i64: 1, 64>}, {pipeline_mode = #tpu.pipeline_mode<synchronous>, transform_indices = @transform_6, window_bounds = array<i64: 1, 64>}, {pipeline_mode = #tpu.pipeline_mode<synchronous>, transform_indices = @transform_7, window_bounds = array<i64: 64, 8>}, {pipeline_mode = #tpu.pipeline_mode<synchronous>, transform_indices = @transform_8, window_bounds = array<i64: 1, 8>}, {pipeline_mode = #tpu.pipeline_mode<synchronous>, transform_indices = @transform_9, window_bounds = array<i64: 9, 64, 128>}, {pipeline_mode = #tpu.pipeline_mode<synchronous>, transform_indices = @transform_10, window_bounds = array<i64: 1, 128>}, {pipeline_mode = #tpu.pipeline_mode<synchronous>, transform_indices = @transform_11, window_bounds = array<i64: 1, 128>}, {pipeline_mode = #tpu.pipeline_mode<synchronous>, transform_indices = @transform_12, window_bounds = array<i64: 1, 128>}, {pipeline_mode = #tpu.pipeline_mode<synchronous>, transform_indices = @transform_13, window_bounds = array<i64: 1, 1>}, {pipeline_mode = #tpu.pipeline_mode<synchronous>, transform_indices = @transform_14, window_bounds = array<i64: 64, 8>}, {pipeline_mode = #tpu.pipeline_mode<synchronous>, transform_indices = @transform_15, window_bounds = array<i64: 128, 128>}, {transform_indices = @transform_16, window_bounds = array<i64: 1, 256, 128>}]} {
    %c0 = arith.constant 0 : index
    %c0_0 = arith.constant 0 : index
    %c0_1 = arith.constant 0 : index
    %c0_2 = arith.constant 0 : index
    %0 = vector.load %arg1[%c0, %c0_0, %c0_1, %c0_2] : memref<1x18x18x64xbf16, #tpu.memory_space<vmem>>, vector<1x18x18x64xbf16>
    %1 = vector.shape_cast %0 : vector<1x18x18x64xbf16> to vector<18x18x64xbf16>
    %c0_3 = arith.constant 0 : index
    %c0_4 = arith.constant 0 : index
    %c0_5 = arith.constant 0 : index
    %2 = vector.load %arg2[%c0_3, %c0_4, %c0_5] : memref<1x1x256xf32, #tpu.memory_space<vmem>>, vector<1x1x256xf32>
    %3 = vector.shape_cast %2 : vector<1x1x256xf32> to vector<1x256xf32>
    %4 = arith.negf %3 : vector<1x256xf32>
    %5 = math.exp %4 : vector<1x256xf32>
    %cst = arith.constant 1.000000e+00 : f32
    %6 = vector.broadcast %cst : f32 to vector<1x256xf32>
    %7 = arith.addf %6, %5 : vector<1x256xf32>
    %8 = arith.divf %6, %7 : vector<1x256xf32>
    %cst_6 = arith.constant 1.000000e+00 : f32
    %9 = vector.broadcast %cst_6 : f32 to vector<1x256xf32>
    %10 = vector.extract_strided_slice %1 {offsets = [0, 0, 0], sizes = [18, 16, 64], strides = [1, 1, 1]} : vector<18x18x64xbf16> to vector<18x16x64xbf16>
    %11 = vector.extract_strided_slice %1 {offsets = [0, 1, 0], sizes = [18, 16, 64], strides = [1, 1, 1]} : vector<18x18x64xbf16> to vector<18x16x64xbf16>
    %12 = vector.extract_strided_slice %1 {offsets = [0, 2, 0], sizes = [18, 16, 64], strides = [1, 1, 1]} : vector<18x18x64xbf16> to vector<18x16x64xbf16>
    %13 = vector.extract_strided_slice %10 {offsets = [0, 0, 0], sizes = [16, 16, 64], strides = [1, 1, 1]} : vector<18x16x64xbf16> to vector<16x16x64xbf16>
    %14 = vector.shape_cast %13 : vector<16x16x64xbf16> to vector<256x64xbf16>
    %15 = vector.extract_strided_slice %11 {offsets = [0, 0, 0], sizes = [16, 16, 64], strides = [1, 1, 1]} : vector<18x16x64xbf16> to vector<16x16x64xbf16>
    %16 = vector.shape_cast %15 : vector<16x16x64xbf16> to vector<256x64xbf16>
    %17 = vector.extract_strided_slice %12 {offsets = [0, 0, 0], sizes = [16, 16, 64], strides = [1, 1, 1]} : vector<18x16x64xbf16> to vector<16x16x64xbf16>
    %18 = vector.shape_cast %17 : vector<16x16x64xbf16> to vector<256x64xbf16>
    %19 = vector.extract_strided_slice %10 {offsets = [1, 0, 0], sizes = [16, 16, 64], strides = [1, 1, 1]} : vector<18x16x64xbf16> to vector<16x16x64xbf16>
    %20 = vector.shape_cast %19 : vector<16x16x64xbf16> to vector<256x64xbf16>
    %21 = vector.extract_strided_slice %11 {offsets = [1, 0, 0], sizes = [16, 16, 64], strides = [1, 1, 1]} : vector<18x16x64xbf16> to vector<16x16x64xbf16>
    %22 = vector.shape_cast %21 : vector<16x16x64xbf16> to vector<256x64xbf16>
    %23 = vector.extract_strided_slice %12 {offsets = [1, 0, 0], sizes = [16, 16, 64], strides = [1, 1, 1]} : vector<18x16x64xbf16> to vector<16x16x64xbf16>
    %24 = vector.shape_cast %23 : vector<16x16x64xbf16> to vector<256x64xbf16>
    %25 = vector.extract_strided_slice %10 {offsets = [2, 0, 0], sizes = [16, 16, 64], strides = [1, 1, 1]} : vector<18x16x64xbf16> to vector<16x16x64xbf16>
    %26 = vector.shape_cast %25 : vector<16x16x64xbf16> to vector<256x64xbf16>
    %27 = vector.extract_strided_slice %11 {offsets = [2, 0, 0], sizes = [16, 16, 64], strides = [1, 1, 1]} : vector<18x16x64xbf16> to vector<16x16x64xbf16>
    %28 = vector.shape_cast %27 : vector<16x16x64xbf16> to vector<256x64xbf16>
    %29 = vector.extract_strided_slice %12 {offsets = [2, 0, 0], sizes = [16, 16, 64], strides = [1, 1, 1]} : vector<18x16x64xbf16> to vector<16x16x64xbf16>
    %30 = vector.shape_cast %29 : vector<16x16x64xbf16> to vector<256x64xbf16>
    %31 = tpu.concatenate %14, %16, %18, %20, %22, %24, %26, %28, %30 in 1 : vector<256x64xbf16>, vector<256x64xbf16>, vector<256x64xbf16>, vector<256x64xbf16>, vector<256x64xbf16>, vector<256x64xbf16>, vector<256x64xbf16>, vector<256x64xbf16>, vector<256x64xbf16> -> vector<256x576xbf16>
    %c0_7 = arith.constant 0 : index
    %c0_8 = arith.constant 0 : index
    %32 = vector.load %arg3[%c0_7, %c0_8] : memref<576x64xbf16, #tpu.memory_space<vmem>>, vector<576x64xbf16>
    %cst_9 = arith.constant dense<0.000000e+00> : vector<256x64xf32>
    %33 = tpu.matmul %31, %32, %cst_9 {dimension_numbers = #tpu.dot_dimension_numbers<[1], [0], [0], [1], [0, 0, 1, 1], [], []>} : vector<256x576xbf16>, vector<576x64xbf16>, vector<256x64xf32> -> vector<256x64xf32>
    %c0_10 = arith.constant 0 : index
    %c0_11 = arith.constant 0 : index
    %34 = vector.load %arg4[%c0_10, %c0_11] : memref<1x64xf32, #tpu.memory_space<vmem>>, vector<1x64xf32>
    %35 = vector.broadcast %34 : vector<1x64xf32> to vector<256x64xf32>
    %36 = arith.addf %33, %35 : vector<256x64xf32>
    %37 = arith.mulf %36, %36 : vector<256x64xf32>
    %38 = tpu.concatenate %36, %37 in 1 : vector<256x64xf32>, vector<256x64xf32> -> vector<256x128xf32>
    %cst_12 = arith.constant dense<0.000000e+00> : vector<1x128xf32>
    %39 = tpu.matmul %9, %38, %cst_12 {dimension_numbers = #tpu.dot_dimension_numbers<[1], [0], [0], [1], [0, 0, 1, 1], [], []>} : vector<1x256xf32>, vector<256x128xf32>, vector<1x128xf32> -> vector<1x128xf32>
    %cst_13 = arith.constant 3.906250e-03 : f32
    %40 = vector.broadcast %cst_13 : f32 to vector<1x128xf32>
    %41 = arith.mulf %39, %40 : vector<1x128xf32>
    %42 = vector.extract_strided_slice %41 {offsets = [0, 0], sizes = [1, 64], strides = [1, 1]} : vector<1x128xf32> to vector<1x64xf32>
    %43 = vector.extract_strided_slice %41 {offsets = [0, 64], sizes = [1, 64], strides = [1, 1]} : vector<1x128xf32> to vector<1x64xf32>
    %44 = arith.mulf %42, %42 : vector<1x64xf32>
    %45 = arith.subf %43, %44 : vector<1x64xf32>
    %cst_14 = arith.constant 0.000000e+00 : f32
    %46 = vector.broadcast %cst_14 : f32 to vector<1x64xf32>
    %47 = arith.maximumf %45, %46 : vector<1x64xf32>
    %48 = vector.broadcast %42 : vector<1x64xf32> to vector<256x64xf32>
    %49 = arith.subf %36, %48 : vector<256x64xf32>
    %cst_15 = arith.constant 9.99999974E-6 : f32
    %50 = vector.broadcast %cst_15 : f32 to vector<1x64xf32>
    %51 = arith.addf %47, %50 : vector<1x64xf32>
    %52 = math.rsqrt %51 : vector<1x64xf32>
    %53 = vector.broadcast %52 : vector<1x64xf32> to vector<256x64xf32>
    %54 = arith.mulf %49, %53 : vector<256x64xf32>
    %c0_16 = arith.constant 0 : index
    %c0_17 = arith.constant 0 : index
    %55 = vector.load %arg5[%c0_16, %c0_17] : memref<1x64xf32, #tpu.memory_space<vmem>>, vector<1x64xf32>
    %56 = vector.broadcast %55 : vector<1x64xf32> to vector<256x64xf32>
    %57 = arith.mulf %54, %56 : vector<256x64xf32>
    %c0_18 = arith.constant 0 : index
    %c0_19 = arith.constant 0 : index
    %58 = vector.load %arg6[%c0_18, %c0_19] : memref<1x64xf32, #tpu.memory_space<vmem>>, vector<1x64xf32>
    %59 = vector.broadcast %58 : vector<1x64xf32> to vector<256x64xf32>
    %60 = arith.addf %57, %59 : vector<256x64xf32>
    %cst_20 = arith.constant 0.000000e+00 : f32
    %61 = vector.broadcast %cst_20 : f32 to vector<256x64xf32>
    %62 = arith.cmpf oge, %60, %61 : vector<256x64xf32>
    %c0_21 = arith.constant 0 : index
    %c0_22 = arith.constant 0 : index
    %63 = vector.load %arg7[%c0_21, %c0_22] : memref<1x64xf32, #tpu.memory_space<vmem>>, vector<1x64xf32>
    %64 = vector.broadcast %63 : vector<1x64xf32> to vector<256x64xf32>
    %65 = arith.mulf %64, %60 : vector<256x64xf32>
    %66 = arith.select %62, %60, %65 : vector<256x64xi1>, vector<256x64xf32>
    %c0_23 = arith.constant 0 : index
    %c0_24 = arith.constant 0 : index
    %67 = vector.load %arg8[%c0_23, %c0_24] : memref<64x8xf32, #tpu.memory_space<vmem>>, vector<64x8xf32>
    %cst_25 = arith.constant dense<0.000000e+00> : vector<256x8xf32>
    %68 = tpu.matmul %66, %67, %cst_25 {dimension_numbers = #tpu.dot_dimension_numbers<[1], [0], [0], [1], [0, 0, 1, 1], [], []>} : vector<256x64xf32>, vector<64x8xf32>, vector<256x8xf32> -> vector<256x8xf32>
    %c0_26 = arith.constant 0 : index
    %c0_27 = arith.constant 0 : index
    %69 = vector.load %arg9[%c0_26, %c0_27] : memref<1x8xf32, #tpu.memory_space<vmem>>, vector<1x8xf32>
    %70 = vector.broadcast %69 : vector<1x8xf32> to vector<256x8xf32>
    %71 = arith.addf %68, %70 : vector<256x8xf32>
    %72 = arith.negf %71 : vector<256x8xf32>
    %73 = math.exp %72 : vector<256x8xf32>
    %cst_28 = arith.constant 1.000000e+00 : f32
    %74 = vector.broadcast %cst_28 : f32 to vector<256x8xf32>
    %75 = arith.addf %74, %73 : vector<256x8xf32>
    %76 = arith.divf %74, %75 : vector<256x8xf32>
    %cst_29 = arith.constant dense<0.000000e+00> : vector<1x8xf32>
    %77 = tpu.matmul %8, %76, %cst_29 {dimension_numbers = #tpu.dot_dimension_numbers<[1], [0], [0], [1], [0, 0, 1, 1], [], []>} : vector<1x256xf32>, vector<256x8xf32>, vector<1x8xf32> -> vector<1x8xf32>
    %cst_30 = arith.constant 3.906250e-03 : f32
    %78 = vector.broadcast %cst_30 : f32 to vector<1x8xf32>
    %79 = arith.mulf %77, %78 : vector<1x8xf32>
    %cst_31 = arith.constant dense<0xFF800000> : vector<1xf32>
    %80 = vector.multi_reduction <maximumf>, %79, %cst_31 [1] : vector<1x8xf32> to vector<1xf32>
    %81 = vector.shape_cast %80 : vector<1xf32> to vector<1x1xf32>
    %82 = vector.broadcast %81 : vector<1x1xf32> to vector<1x8xf32>
    %83 = arith.subf %79, %82 : vector<1x8xf32>
    %84 = math.exp %83 : vector<1x8xf32>
    %cst_32 = arith.constant dense<0.000000e+00> : vector<1xf32>
    %85 = vector.multi_reduction <add>, %84, %cst_32 [1] : vector<1x8xf32> to vector<1xf32>
    %86 = vector.shape_cast %85 : vector<1xf32> to vector<1x1xf32>
    %87 = vector.broadcast %86 : vector<1x1xf32> to vector<1x8xf32>
    %88 = arith.divf %84, %87 : vector<1x8xf32>
    %c0_33 = arith.constant 0 : index
    %c0_34 = arith.constant 0 : index
    %89 = vector.load %arg15[%c0_33, %c0_34] : memref<64x8xf32, #tpu.memory_space<vmem>>, vector<64x8xf32>
    %90 = vector.broadcast %88 : vector<1x8xf32> to vector<64x8xf32>
    %91 = arith.mulf %89, %90 : vector<64x8xf32>
    %cst_35 = arith.constant dense<0.000000e+00> : vector<64xf32>
    %92 = vector.multi_reduction <add>, %91, %cst_35 [1] : vector<64x8xf32> to vector<64xf32>
    %93 = vector.shape_cast %92 : vector<64xf32> to vector<64x1xf32>
    %c0_36 = arith.constant 0 : index
    %c0_37 = arith.constant 0 : index
    %c0_38 = arith.constant 0 : index
    %94 = vector.load %arg10[%c0_36, %c0_37, %c0_38] : memref<9x64x128xf32, #tpu.memory_space<vmem>>, vector<9x64x128xf32>
    %95 = vector.shape_cast %93 : vector<64x1xf32> to vector<1x64x1xf32>
    %96 = vector.broadcast %95 : vector<1x64x1xf32> to vector<9x64x128xf32>
    %97 = arith.mulf %94, %96 : vector<9x64x128xf32>
    %98 = vector.shape_cast %97 : vector<9x64x128xf32> to vector<576x128xf32>
    %99 = arith.truncf %98 : vector<576x128xf32> to vector<576x128xbf16>
    %cst_39 = arith.constant dense<0.000000e+00> : vector<256x128xf32>
    %100 = tpu.matmul %31, %99, %cst_39 {dimension_numbers = #tpu.dot_dimension_numbers<[1], [0], [0], [1], [0, 0, 1, 1], [], []>} : vector<256x576xbf16>, vector<576x128xbf16>, vector<256x128xf32> -> vector<256x128xf32>
    %c0_40 = arith.constant 0 : index
    %c0_41 = arith.constant 0 : index
    %101 = vector.load %arg11[%c0_40, %c0_41] : memref<1x128xf32, #tpu.memory_space<vmem>>, vector<1x128xf32>
    %102 = vector.broadcast %101 : vector<1x128xf32> to vector<256x128xf32>
    %103 = arith.addf %100, %102 : vector<256x128xf32>
    %104 = arith.mulf %103, %103 : vector<256x128xf32>
    %105 = tpu.concatenate %103, %104 in 1 : vector<256x128xf32>, vector<256x128xf32> -> vector<256x256xf32>
    %cst_42 = arith.constant dense<0.000000e+00> : vector<1x256xf32>
    %106 = tpu.matmul %9, %105, %cst_42 {dimension_numbers = #tpu.dot_dimension_numbers<[1], [0], [0], [1], [0, 0, 1, 1], [], []>} : vector<1x256xf32>, vector<256x256xf32>, vector<1x256xf32> -> vector<1x256xf32>
    %107 = vector.extract_strided_slice %106 {offsets = [0, 0], sizes = [1, 128], strides = [1, 1]} : vector<1x256xf32> to vector<1x128xf32>
    %c0_43 = arith.constant 0 : index
    %c0_44 = arith.constant 0 : index
    %108 = vector.load %arg16[%c0_43, %c0_44] : memref<128x128xf32, #tpu.memory_space<vmem>>, vector<128x128xf32>
    %cst_45 = arith.constant dense<0.000000e+00> : vector<1x128xf32>
    %109 = tpu.matmul %107, %108, %cst_45 {dimension_numbers = #tpu.dot_dimension_numbers<[1], [0], [0], [1], [0, 0, 1, 1], [], []>} : vector<1x128xf32>, vector<128x128xf32>, vector<1x128xf32> -> vector<1x128xf32>
    %110 = vector.extract_strided_slice %106 {offsets = [0, 128], sizes = [1, 128], strides = [1, 1]} : vector<1x256xf32> to vector<1x128xf32>
    %c0_46 = arith.constant 0 : index
    %c0_47 = arith.constant 0 : index
    %111 = vector.load %arg16[%c0_46, %c0_47] : memref<128x128xf32, #tpu.memory_space<vmem>>, vector<128x128xf32>
    %cst_48 = arith.constant dense<0.000000e+00> : vector<1x128xf32>
    %112 = tpu.matmul %110, %111, %cst_48 {dimension_numbers = #tpu.dot_dimension_numbers<[1], [0], [0], [1], [0, 0, 1, 1], [], []>} : vector<1x128xf32>, vector<128x128xf32>, vector<1x128xf32> -> vector<1x128xf32>
    %113 = arith.mulf %109, %109 : vector<1x128xf32>
    %114 = arith.subf %112, %113 : vector<1x128xf32>
    %cst_49 = arith.constant 0.000000e+00 : f32
    %115 = vector.broadcast %cst_49 : f32 to vector<1x128xf32>
    %116 = arith.maximumf %114, %115 : vector<1x128xf32>
    %117 = vector.broadcast %109 : vector<1x128xf32> to vector<256x128xf32>
    %118 = arith.subf %103, %117 : vector<256x128xf32>
    %cst_50 = arith.constant 9.99999974E-6 : f32
    %119 = vector.broadcast %cst_50 : f32 to vector<1x128xf32>
    %120 = arith.addf %116, %119 : vector<1x128xf32>
    %121 = math.rsqrt %120 : vector<1x128xf32>
    %122 = vector.broadcast %121 : vector<1x128xf32> to vector<256x128xf32>
    %123 = arith.mulf %118, %122 : vector<256x128xf32>
    %c0_51 = arith.constant 0 : index
    %c0_52 = arith.constant 0 : index
    %124 = vector.load %arg12[%c0_51, %c0_52] : memref<1x128xf32, #tpu.memory_space<vmem>>, vector<1x128xf32>
    %125 = vector.broadcast %124 : vector<1x128xf32> to vector<256x128xf32>
    %126 = arith.mulf %123, %125 : vector<256x128xf32>
    %c0_53 = arith.constant 0 : index
    %c0_54 = arith.constant 0 : index
    %127 = vector.load %arg13[%c0_53, %c0_54] : memref<1x128xf32, #tpu.memory_space<vmem>>, vector<1x128xf32>
    %128 = vector.broadcast %127 : vector<1x128xf32> to vector<256x128xf32>
    %129 = arith.addf %126, %128 : vector<256x128xf32>
    %cst_55 = arith.constant 0.000000e+00 : f32
    %130 = vector.broadcast %cst_55 : f32 to vector<256x128xf32>
    %131 = arith.cmpf oge, %129, %130 : vector<256x128xf32>
    %c0_56 = arith.constant 0 : index
    %c0_57 = arith.constant 0 : index
    %132 = vector.load %arg14[%c0_56, %c0_57] : memref<1x1xf32, #tpu.memory_space<vmem>>, vector<1x1xf32>
    %133 = vector.extract %132[0, 0] : f32 from vector<1x1xf32>
    %134 = vector.broadcast %133 : f32 to vector<256x128xf32>
    %135 = arith.mulf %134, %129 : vector<256x128xf32>
    %136 = arith.select %131, %129, %135 : vector<256x128xi1>, vector<256x128xf32>
    %c0_58 = arith.constant 0 : index
    %c0_59 = arith.constant 0 : index
    %c0_60 = arith.constant 0 : index
    %137 = vector.load %arg17[%c0_58, %c0_59, %c0_60] : memref<1x256x128xf32, #tpu.memory_space<vmem>>, vector<1x256x128xf32>
    %138 = vector.shape_cast %137 : vector<1x256x128xf32> to vector<256x128xf32>
    %139 = vector.shape_cast %136 : vector<256x128xf32> to vector<1x256x128xf32>
    tpu.vector_store %arg17[%c0_58, %c0_59, %c0_60], %139 {strides = array<i32>} : memref<1x256x128xf32, #tpu.memory_space<vmem>>, vector<1x256x128xf32>,
    return
  }
  func.func @transform_0(%arg0: i32) -> (i32, i32, i32, i32) {
    %c0_i32 = arith.constant 0 : i32
    %c0_i32_0 = arith.constant 0 : i32
    %c0_i32_1 = arith.constant 0 : i32
    %c0_i32_2 = arith.constant 0 : i32
    return %arg0, %c0_i32, %c0_i32_0, %c0_i32_1 : i32, i32, i32, i32
  }
  func.func @transform_1(%arg0: i32) -> (i32, i32, i32) {
    %c0_i32 = arith.constant 0 : i32
    %c0_i32_0 = arith.constant 0 : i32
    %c0_i32_1 = arith.constant 0 : i32
    return %arg0, %c0_i32, %c0_i32_0 : i32, i32, i32
  }
  func.func @transform_2(%arg0: i32) -> (i32, i32) {
    %c0_i32 = arith.constant 0 : i32
    %c0_i32_0 = arith.constant 0 : i32
    %c0_i32_1 = arith.constant 0 : i32
    return %c0_i32, %c0_i32_0 : i32, i32
  }
  func.func @transform_3(%arg0: i32) -> (i32, i32) {
    %c0_i32 = arith.constant 0 : i32
    %c0_i32_0 = arith.constant 0 : i32
    %c0_i32_1 = arith.constant 0 : i32
    return %c0_i32, %c0_i32_0 : i32, i32
  }
  func.func @transform_4(%arg0: i32) -> (i32, i32) {
    %c0_i32 = arith.constant 0 : i32
    %c0_i32_0 = arith.constant 0 : i32
    %c0_i32_1 = arith.constant 0 : i32
    return %c0_i32, %c0_i32_0 : i32, i32
  }
  func.func @transform_5(%arg0: i32) -> (i32, i32) {
    %c0_i32 = arith.constant 0 : i32
    %c0_i32_0 = arith.constant 0 : i32
    %c0_i32_1 = arith.constant 0 : i32
    return %c0_i32, %c0_i32_0 : i32, i32
  }
  func.func @transform_6(%arg0: i32) -> (i32, i32) {
    %c0_i32 = arith.constant 0 : i32
    %c0_i32_0 = arith.constant 0 : i32
    %c0_i32_1 = arith.constant 0 : i32
    return %c0_i32, %c0_i32_0 : i32, i32
  }
  func.func @transform_7(%arg0: i32) -> (i32, i32) {
    %c0_i32 = arith.constant 0 : i32
    %c0_i32_0 = arith.constant 0 : i32
    %c0_i32_1 = arith.constant 0 : i32
    return %c0_i32, %c0_i32_0 : i32, i32
  }
  func.func @transform_8(%arg0: i32) -> (i32, i32) {
    %c0_i32 = arith.constant 0 : i32
    %c0_i32_0 = arith.constant 0 : i32
    %c0_i32_1 = arith.constant 0 : i32
    return %c0_i32, %c0_i32_0 : i32, i32
  }
  func.func @transform_9(%arg0: i32) -> (i32, i32, i32) {
    %c0_i32 = arith.constant 0 : i32
    %c0_i32_0 = arith.constant 0 : i32
    %c0_i32_1 = arith.constant 0 : i32
    %c0_i32_2 = arith.constant 0 : i32
    return %c0_i32, %c0_i32_0, %c0_i32_1 : i32, i32, i32
  }
  func.func @transform_10(%arg0: i32) -> (i32, i32) {
    %c0_i32 = arith.constant 0 : i32
    %c0_i32_0 = arith.constant 0 : i32
    %c0_i32_1 = arith.constant 0 : i32
    return %c0_i32, %c0_i32_0 : i32, i32
  }
  func.func @transform_11(%arg0: i32) -> (i32, i32) {
    %c0_i32 = arith.constant 0 : i32
    %c0_i32_0 = arith.constant 0 : i32
    %c0_i32_1 = arith.constant 0 : i32
    return %c0_i32, %c0_i32_0 : i32, i32
  }
  func.func @transform_12(%arg0: i32) -> (i32, i32) {
    %c0_i32 = arith.constant 0 : i32
    %c0_i32_0 = arith.constant 0 : i32
    %c0_i32_1 = arith.constant 0 : i32
    return %c0_i32, %c0_i32_0 : i32, i32
  }
  func.func @transform_13(%arg0: i32) -> (i32, i32) {
    %c0_i32 = arith.constant 0 : i32
    %c0_i32_0 = arith.constant 0 : i32
    %c0_i32_1 = arith.constant 0 : i32
    return %c0_i32, %c0_i32_0 : i32, i32
  }
  func.func @transform_14(%arg0: i32) -> (i32, i32) {
    %c0_i32 = arith.constant 0 : i32
    %c0_i32_0 = arith.constant 0 : i32
    %c0_i32_1 = arith.constant 0 : i32
    return %c0_i32, %c0_i32_0 : i32, i32
  }
  func.func @transform_15(%arg0: i32) -> (i32, i32) {
    %c0_i32 = arith.constant 0 : i32
    %c0_i32_0 = arith.constant 0 : i32
    %c0_i32_1 = arith.constant 0 : i32
    return %c0_i32, %c0_i32_0 : i32, i32
  }
  func.func @transform_16(%arg0: i32) -> (i32, i32, i32) {
    %c0_i32 = arith.constant 0 : i32
    %c0_i32_0 = arith.constant 0 : i32
    %c0_i32_1 = arith.constant 0 : i32
    return %arg0, %c0_i32, %c0_i32_0 : i32, i32, i32
  }
}

</mosaic_0001>

<bundles_post_ra>
// kernel: mul.8
= control target key start
LH: loop header
LB: loop body
LE: loop exit
PB: predicated region body
PF: predicated region fallthrough
CT: control target
= control target key end

     0   :  { %s67_s10 = smov 56   ;;  %s68_s11 = smov 40   ;;  %vm3_vm0 = vcmask 64512   ;;  %vm9_vm1 = vcmask 523712   ;;  %vm15_vm2 = vcmask 458112   ;;  %vm21_vm3 = vcmask 392512   ;;  %s111_s0 = inlined_call_operand.vmem [shape: f32[8,8], index: 0, kind: input, shape index: {}]   ;;  %s112_s1 = inlined_call_operand.vmem [shape: f32[64], index: 1, kind: output, shape index: {}]  }
   0x1   :  { %v53_v0 = vld [vmem:[%s111_s0 + $0x7] sm:$0x1]   ;;  %v55_v1 = vld [vmem:[%s111_s0 + $0x5] sm:$0x1]   ;;  %v54_v2 = vld [vmem:[%s111_s0 + $0x6] sm:$0x1]  }
   0x2   :  { %7 = vrot.lane.b32.xlu0 %v53_v0, %s67_s10  ;;  %19 = vrot.lane.b32.xlu1 %v55_v1, %s68_s11  ;;  %v56_v3 = vld [vmem:[%s111_s0 + $0x4] sm:$0x1]   ;;  %v2_v4 = vld [vmem:[%s111_s0] sm:$0x1]   ;;  %s69_s18 = smov 48   ;;  %s70_s19 = smov 32  }
   0x3   :  { %4 = vst.msk [vmem:[#allocation0] sm:$0x1] %vm3_vm0, %v2_v4   ;;  %v57_v5 = vld [vmem:[%s111_s0 + $0x3] sm:$0x1]   ;;  %v58_v6 = vld [vmem:[%s111_s0 + $0x2] sm:$0x1]  }
   0x4   :  { %s71_s24 = smov 24   ;;  %s72_s25 = smov 16   ;;  %v59_v7 = vld [vmem:[%s111_s0 + $0x1] sm:$0x1]   ;;  %vm27_vm4 = vcmask 326912   ;;  %vm33_vm5 = vcmask 261312  }
   0x5   :  { %s73_s0 = smov 8   ;;  %vm39_vm6 = vcmask 195712   ;;  %vm45_vm7 = vcmask 130112  }
   0x6   :  { %13 = vrot.lane.b32.xlu0 %v54_v2, %s69_s18  ;;  %25 = vrot.lane.b32.xlu1 %v56_v3, %s70_s19 }
   0xa   :  { %31 = vrot.lane.b32.xlu0 %v57_v5, %s71_s24  ;;  %37 = vrot.lane.b32.xlu1 %v58_v6, %s72_s25 }
   0xe   :  { %43 = vrot.lane.b32.xlu0 %v59_v7, %s73_s0 }
  0x74   :  { %v8_v8 = vpop.permute.xlu0 %7   ;;  %v20_v9 = vpop.permute.xlu1 %19  }
  0x75   :  { %10 = vst.msk [vmem:[#allocation0] sm:$0x1] %vm9_vm1, %v8_v8  }
  0x78   :  { %v14_v10 = vpop.permute.xlu0 %13   ;;  %v26_v11 = vpop.permute.xlu1 %25  }
  0x79   :  { %16 = vst.msk [vmem:[#allocation0] sm:$0x1] %vm15_vm2, %v14_v10  }
  0x7a   :  { %22 = vst.msk [vmem:[#allocation0] sm:$0x1] %vm21_vm3, %v20_v9  }
  0x7b   :  { %28 = vst.msk [vmem:[#allocation0] sm:$0x1] %vm27_vm4, %v26_v11  }
  0x7c   :  { %v32_v12 = vpop.permute.xlu0 %31   ;;  %v38_v13 = vpop.permute.xlu1 %37  }
  0x7d   :  { %34 = vst.msk [vmem:[#allocation0] sm:$0x1] %vm33_vm5, %v32_v12  }
  0x7e   :  { %40 = vst.msk [vmem:[#allocation0] sm:$0x1] %vm39_vm6, %v38_v13  }
  0x80   :  { %v44_v14 = vpop.permute.xlu0 %43  }
  0x81   :  { %46 = vst.msk [vmem:[#allocation0] sm:$0x1] %vm45_vm7, %v44_v14  }
  0x88   :  { %v50_v15 = vld [vmem:[#allocation0] sm:$0x1] }
  0x89   :  { %52 = vst [vmem:[%s112_s1] sm:$0x1] %v50_v15 }

// kernel: csfi_forward.1
= control target key start
LH: loop header
LB: loop body
LE: loop exit
PB: predicated region body
PF: predicated region fallthrough
CT: control target
= control target key end

     0   :  { %s10068_s0 = inlined_call_operand.vmem [shape: bf16[2,18,18,64], index: 0, kind: input, shape index: {}]   ;;  %s10069_s1 = inlined_call_operand.vmem [shape: f32[2,1,256], index: 1, kind: input, shape index: {}]   ;;  %s10070_s2 = inlined_call_operand.vmem [shape: bf16[576,64], index: 2, kind: input, shape index: {}]   ;;  %s10071_s3 = inlined_call_operand.vmem [shape: f32[1,64], index: 3, kind: input, shape index: {}]   ;;  %s10072_s4 = inlined_call_operand.vmem [shape: f32[1,64], index: 4, kind: input, shape index: {}]   ;;  %s10073_s5 = inlined_call_operand.vmem [shape: f32[1,64], index: 5, kind: input, shape index: {}]   ;;  %s10074_s6 = inlined_call_operand.vmem [shape: f32[1,64], index: 6, kind: input, shape index: {}]   ;;  %s10075_s7 = inlined_call_operand.vmem [shape: f32[64,8], index: 7, kind: input, shape index: {}]   ;;  %s10076_s8 = inlined_call_operand.vmem [shape: f32[1,8], index: 8, kind: input, shape index: {}]   ;;  %s10077_s9 = inlined_call_operand.vmem [shape: f32[9,64,128], index: 9, kind: input, shape index: {}]   ;;  %s10078_s10 = inlined_call_operand.vmem [shape: f32[1,128], index: 10, kind: input, shape index: {}]   ;;  %s10079_s11 = inlined_call_operand.vmem [shape: f32[1,128], index: 11, kind: input, shape index: {}]   ;;  %s10080_s12 = inlined_call_operand.vmem [shape: f32[1,128], index: 12, kind: input, shape index: {}]   ;;  %s10081_s13 = inlined_call_operand.<no memory space> [shape: f32[1,1], index: 13, kind: input, shape index: {}]   ;;  %s10082_s14 = inlined_call_operand.vmem [shape: f32[64,8], index: 14, kind: input, shape index: {}]   ;;  %s10083_s15 = inlined_call_operand.vmem [shape: f32[128,128], index: 15, kind: input, shape index: {}]   ;;  %s10084_s16 = inlined_call_operand.hbm [shape: f32[2,256,128], index: 16, kind: output, shape index: {}]  }
   0x1   :  { %10187 = sst [smem:[#allocation65_spill]] %s10068_s0  ;;  %v21_v0 = vstv %s10081_s13 }
   0x2   :  { %22 = vst [vmem:[#allocation2] sm:$0x1] %v21_v0 }
   0x3   :  { %23 = vsyncpa [#allocation4], 0 }
   0x4   :  { %25 = vsyncpa [#allocation4 + $0x1], 0  ;;  %s6743_s23 = smov 0   ;;  %s6745_s24 = smov 0  }
   0x5   :  { %s6747_s25 = smov 0   ;;  %s6749_s26 = smov 0  }
   0x6 LB: > { %10188 = sst [smem:[#allocation6_spill]] %s6633_s23  ;;  %s6764_s13 = sadd.s32 4294967295, %s6645_s26   ;;  %s6645_s26 = sphi %s6749_s26, %s10426_s26   ;;  %s6641_s25 = sphi %s6747_s25, %s10428_s25   ;;  %s6637_s24 = sphi %s6745_s24, %s10430_s24   ;;  %s6633_s23 = sphi %s6743_s23, %s10429_s23  }
   0x7   : > { %10189 = sst [smem:[#allocation7_spill]] %s6641_s25  ;;  %s4993_s27 = sadd.s32 4294967294, %s6645_s26  }
   0x8   : > { %s6768_s28 = sadd.s32 1, %s6645_s26   ;;  %s384_s29 = sadd.s32 1, %s6641_s25 }
   0x9   : > { %10190 = sst [smem:[#allocation8_spill]] %s6768_s28  ;;  %s381_s30 = ssub.s32 %s6645_s26, %s6768_s28 }
   0xa   : > { %p394_p0 = scmp.ne.s32.totalorder %s6641_s25, %s6637_s24  ;;  %p382_p1 = scmp.eq.s32.totalorder %s381_s30, 0 }
   0xb   : > { %p395_p2 = scmp.eq.s32.totalorder %s6764_s13, 1  ;;  %p400_p3 = scmp.ne.s32.totalorder %s6637_s24, %s6633_s23 }
   0xc   : > { %p401_p4 = scmp.eq.s32.totalorder %s4993_s27, 1  ;;  %p4996_p7 = scmp.ge.s32.totalorder %s6645_s26, 1 }
   0xd   : > { %s6779_s0 = scalar_select %p382_p1, %s6641_s25, %s384_s29  }
   0xe   : > { %p6781_p5 = por %p395_p2, %p394_p0  ;;  %p6785_p6 = por %p401_p4, %p400_p3 }
   0xf   : > { %10191 = sst [smem:[#allocation9_spill]] %s6779_s0  ;;  %p476_p8 = scmp.lt.s32.totalorder %s6645_s26, 3 }
  0x10   : > { %s10193_s18 = scalar_select %p6785_p6, 1, 0 }
  0x11   : > { %p477_p9 = pnand %p4996_p7, %p476_p8 }
  0x12   : > { %10194 = sst [smem:[#allocation10_spill]] %s10193_s18 }
  0x13   : > { %480 = sbr.rel (%p477_p9) target bundleno = 3130 (0xc3a), region = 84 }
  0x1a   : > { %p530_p10 = scmp.lt.s32.totalorder %s6764_s13, 1  ;;  %v6401_v1 = vld [vmem:[%s10070_s2 + $0x40] sm:$0xff]   ;;  %v6404_v3 = vld [vmem:[%s10070_s2 + $0x48] sm:$0xff]   ;;  %s10195_s20 = sld [smem:[#allocation65_spill]]  ;;  %v6406_v5 = vld [vmem:[%s10070_s2 + $0x50] sm:$0xff]   ;;  %vm1036_vm3 = vcmask 1042432  }
  0x1b   : > { %v6403_v2 = vld [vmem:[%s10070_s2] sm:$0xff]   ;;  %5219 = vmatprep.subr.bf16.mxu0 %v6401_v1  ;;  %v6405_v4 = vld [vmem:[%s10070_s2 + $0x8] sm:$0xff]   ;;  %vm601_vm0 = vsmask.f32 3328  ;;  %vm602_vm1 = vsmask.f32 7440 }
  0x1c   : > { %s6793_s19 = scalar_select %p530_p10, %s6764_s13, 1  ;;  %5220 = vmatpush3.bf16.msra.mxu0 %v6403_v2  ;;  %v6407_v15 = vld [vmem:[%s10070_s2 + $0x10] sm:$0xff]   ;;  %v6408_v21 = vld [vmem:[%s10070_s2 + $0x58] sm:$0xff]   ;;  %vm6874_vm2 = vmor %vm601_vm0, %vm602_vm1  ;;  %vm1037_vm4 = vcmask 1046532   ;;  %vm1481_vm6 = vcmask 523264  }
  0x1d   : > { %5221 = vmatprep.subr.bf16.mxu0 %v6404_v3  ;;  %s6647_s28 = smov 64   ;;  %v6409_v40 = vld [vmem:[%s10070_s2 + $0x18] sm:$0xff]   ;;  %v6410_v56 = vld [vmem:[%s10070_s2 + $0x60] sm:$0xff]   ;;  %vm7146_vm5 = vmor %vm1036_vm3, %vm1037_vm4  ;;  %s6652_s27 = smov [#allocation3]  }
  0x1e   : > { %s6257_s29 = smul.u32 216, %s6793_s19  ;;  %v6411_v62 = vld [vmem:[%s10070_s2 + $0x20] sm:$0xff]   ;;  %s4999_s25 = sshll.u32 %s6793_s19, 1 }
  0x1f   : > { %s538_s18 = scalar_lea.vmem %s10069_s1, %s4999_s25  ;;  %s6587_s23 = sshll.u32 %s6652_s27, 4  ;;  %s6588_s23 = int_to_ptr.vmem [resolvable:$false] %s6587_s23 }
  0x20   : > { %s6811_s21 = scalar_lea.vmem %s10195_s20, %s6257_s29  ;;  %5222 = vmatpush3.bf16.msra.mxu0 %v6405_v4  ;;  %s5218_s29 = sshll.u32 %s6764_s13, 12 }
  0x21   : > { %v6817_v6 = vld [vmem:[%s6811_s21 + $0xc] sm:$0xf]  ;;  %v6820_v7 = vld [vmem:[%s6811_s21 + $0x10] sm:$0xf]  ;;  %v6823_v8 = vld [vmem:[%s6811_s21 + $0x18] sm:$0xf]  ;;  %5223 = vmatprep.subr.bf16.mxu0 %v6406_v5  ;;  %s9985_s30 = scalar_lea.hbm %s10084_s16, %s5218_s29 }
  0x22   : > { %v642_v9 = vshrl.u32 %v6820_v7, 16  ;;  %v6828_v10 = vcombine.low %v6817_v6, %v6820_v7  ;;  %v629_v11 = vshrl.u32 %v6817_v6, 16  ;;  %v6832_v12 = vld [vmem:[%s6811_s21 + $0x1c] sm:$0xf]  ;;  %v632_v13 = vshll.u32 %v6817_v6, 16  ;;  %s6589_s25 = scalar_lea.vmem %s6588_s23, 8192 }
  0x23   : > { %v540_v14 = vld [vmem:[%s6811_s21] sm:$0xf]  ;;  %v638_v16 = vshll.u32 %v6820_v7, 16  ;;  %v6844_v18 = vcombine.low %v6823_v8, %v6832_v12  ;;  %v653_v19 = vshrl.u32 %v6823_v8, 16  ;;  %v541_v20 = vld [vmem:[%s6811_s21 + $0x4] sm:$0xf] }
  0x24   : > { %1398 = vrot.lane.b32.xlu0 %v6828_v10, %s6647_s28  ;;  %v631_v17 = vrot.slane %v629_v11, 4  ;;  %v634_v22 = vrot.slane %v632_v13, 5  ;;  %v662_v23 = vshll.u32 %v6832_v12, 16  ;;  %v666_v24 = vshrl.u32 %v6832_v12, 16  ;;  %v542_v26 = vld [vmem:[%s6811_s21 + $0x8] sm:$0x1]  ;;  %5224 = vmatpush3.bf16.msra.mxu0 %v6407_v15 }
  0x25   : > { %v656_v25 = vshll.u32 %v6823_v8, 16  ;;  %v644_v27 = vrot.slane %v642_v9, 4  ;;  %v10090_v28 = vrot.slane %v6832_v12, 5  ;;  %1400 = vrot.lane.b32.xlu1 %v6844_v18, %s6647_s28  ;;  %v605_v29 = vshrl.u32 %v540_v14, 16  ;;  %v6859_v31 = vld [vmem:[%s6811_s21 + $0x14] sm:$0x1]  ;;  %5225 = vmatprep.subr.bf16.mxu0 %v6408_v21 }
  0x26   : > { %v608_v30 = vshll.u32 %v540_v14, 16  ;;  %v655_v32 = vrot.slane %v653_v19, 4  ;;  %v614_v33 = vshll.u32 %v541_v20, 16  ;;  %v618_v34 = vshrl.u32 %v541_v20, 16  ;;  %v6866_v49 = vld [vmem:[%s6811_s21 + $0x24] sm:$0xf] }
  0x27   : > { %v624_v35 = vshll.u32 %v542_v26, 16  ;;  %v607_v36 = vrot.slane %v605_v29, 4  ;;  %v635_v38 = vor.u32 %v634_v22, %v631_v17  ;;  %v640_v39 = vrot.slane %v638_v16, 5  ;;  %v6879_v55 = vld [vmem:[%s6811_s21 + $0x20] sm:$0x1]  ;;  %v6412_v29 = vld [vmem:[%s10070_s2 + $0x68] sm:$0xff]  }
  0x28   : > { %v610_v37 = vrot.slane %v608_v30, 5  ;;  %v658_v41 = vrot.slane %v656_v25, 5  ;;  %v616_v42 = vrot.slane %v614_v33, 5  ;;  %v620_v43 = vrot.slane %v618_v34, 4  ;;  %5226 = vmatpush3.bf16.msra.mxu0 %v6409_v40  ;;  %v6888_v61 = vld [vmem:[%s6811_s21 + $0x28] sm:$0xf] }
  0x29   : > { %v648_v44 = vshll.u32 %v6859_v31, 16  ;;  %v668_v45 = vrot.slane %v666_v24, 4  ;;  %v636_v47 = vrot.slane %v635_v38, 4  ;;  %v645_v48 = vor.u32 %v644_v27, %v640_v39  ;;  %5227 = vmatprep.subr.bf16.mxu0 %v6410_v56  ;;  %v6901_v11 = vld [vmem:[%s6811_s21 + $0x30] sm:$0xf] }
  0x2a   : > { %v611_v46 = vor.u32 %v610_v37, %v607_v36  ;;  %v6870_v50 = vrot.slane %v10090_v28, 4  ;;  %v621_v52 = vor.u32 %v620_v43, %v616_v42  ;;  %v626_v53 = vrot.slane %v624_v35, 5  ;;  %v6910_v22 = vld [vmem:[%s6811_s21 + $0x2c] sm:$0x1]  ;;  %v6921_v26 = vld [vmem:[%s6811_s21 + $0x34] sm:$0xf] }
  0x2b   : > { %v650_v54 = vrot.slane %v648_v44, 5  ;;  %v641_v59 = vsel %vm6874_vm2, %v636_v47, %v640_v39  ;;  %v646_v60 = vrot.slane %v645_v48, 4  ;;  %v677_v0 = vshrl.u32 %v6866_v49, 16  ;;  %v6413_v35 = vld [vmem:[%s10070_s2 + $0x28] sm:$0xff]   ;;  %v6937_v40 = vld [vmem:[%s6811_s21 + $0x3c] sm:$0xf] }
  0x2c   : > { %v612_v58 = vrot.slane %v611_v46, 4  ;;  %v622_v63 = vrot.slane %v621_v52, 4  ;;  %v680_v1 = vshll.u32 %v6866_v49, 16  ;;  %v659_v2 = vor.u32 %v658_v41, %v655_v32  ;;  %5228 = vmatpush3.bf16.msra.mxu0 %v6411_v62  ;;  %v6415_v62 = vld [vmem:[%s10070_s2 + $0x30] sm:$0xff]   ;;  %v7094_v44 = vld [vmem:[%s6811_s21 + $0x6c] sm:$0xf] }
  0x2d   : > { %v651_v4 = vsel %vm6874_vm2, %v646_v60, %v650_v54  ;;  %v664_v5 = vrot.slane %v662_v23, 5  ;;  %v672_v9 = vshll.u32 %v6879_v55, 16  ;;  %v690_v15 = vshrl.u32 %v6888_v61, 16  ;;  %5229 = vmatprep.subr.bf16.mxu0 %v6412_v29  ;;  %v6957_v54 = vld [vmem:[%s6811_s21 + $0x38] sm:$0x1] }
  0x2e   : > { %v617_v3 = vsel %vm6874_vm2, %v612_v58, %v616_v42  ;;  %v627_v13 = vsel %vm6874_vm2, %v622_v63, %v626_v53  ;;  %v6905_v14 = vcombine.low %v641_v59, %v651_v4  ;;  %v660_v16 = vrot.slane %v659_v2, 4  ;;  %v6954_v53 = vld [vmem:[%s6811_s21 + $0x40] sm:$0xf]  ;;  %v7097_v58 = vld [vmem:[%s6811_s21 + $0x70] sm:$0xf] }
  0x2f   : > { %v5035_v17 = vcombine.low %v617_v3, %v627_v13  ;;  %v669_v20 = vor.u32 %v668_v45, %v664_v5  ;;  %v674_v21 = vrot.slane %v672_v9, 5  ;;  %v6917_v24 = vcombine.low %v6866_v49, %v6888_v61  ;;  %v6414_v45 = vld [vmem:[%s10070_s2 + $0x70] sm:$0xff]   ;;  %v6416_v3 = vld [vmem:[%s10070_s2 + $0x78] sm:$0xff]   ;;  %v7110_v25 = vld [vmem:[%s6811_s21 + $0x68] sm:$0x1] }
  0x30   : > { %1317 = vrot.lane.b32.xlu1 %v6905_v14, %s6647_s28  ;;  %v701_v27 = vshrl.u32 %v6901_v11, 16  ;;  %v665_v30 = vsel %vm6874_vm2, %v660_v16, %v664_v5  ;;  %v704_v33 = vshll.u32 %v6901_v11, 16  ;;  %v679_v34 = vrot.slane %v677_v0, 4  ;;  %5230 = vmatpush3.bf16.msra.mxu0 %v6413_v35 }
  0x31   : > { %1315 = vrot.lane.b32.xlu0 %v5035_v17, %s6647_s28  ;;  %v670_v32 = vrot.slane %v669_v20, 4  ;;  %v682_v36 = vrot.slane %v680_v1, 5  ;;  %v686_v37 = vshll.u32 %v6888_v61, 16  ;;  %v692_v38 = vrot.slane %v690_v15, 4  ;;  %5231 = vmatprep.subr.bf16.mxu0 %v6414_v45  ;;  %v6976_v15 = vld [vmem:[%s6811_s21 + $0x48] sm:$0xf] }
  0x32   : > { %v696_v39 = vshll.u32 %v6910_v22, 16  ;;  %v714_v42 = vshrl.u32 %v6921_v26, 16  ;;  %v6951_v47 = vcombine.low %v6901_v11, %v6921_v26  ;;  %v725_v59 = vshrl.u32 %v6937_v40, 16  ;;  %v7068_v20 = vld [vmem:[%s6811_s21 + $0x64] sm:$0xf] }
  0x33   : > { %v675_v41 = vsel %vm6874_vm2, %v670_v32, %v674_v21  ;;  %v683_v48 = vor.u32 %v682_v36, %v679_v34  ;;  %v688_v52 = vrot.slane %v686_v37, 5  ;;  %v728_v60 = vshll.u32 %v6937_v40, 16 }
  0x34   : > { %v6947_v46 = vcombine.low %v665_v30, %v675_v41  ;;  %v698_v56 = vrot.slane %v696_v39, 5  ;;  %v703_v1 = vrot.slane %v701_v27, 4  ;;  %v706_v2 = vrot.slane %v704_v33, 5  ;;  %5232 = vmatpush3.bf16.msra.mxu0 %v6415_v62  ;;  %v6990_v33 = vld [vmem:[%s6811_s21 + $0x4c] sm:$0xf]  ;;  %v6417_v39 = vld [vmem:[%s10070_s2 + $0x38] sm:$0xff]  }
  0x35   : > { %1402 = vrot.lane.b32.xlu0 %v6917_v24, %s6647_s28  ;;  %v684_v63 = vrot.slane %v683_v48, 4  ;;  %v693_v0 = vor.u32 %v692_v38, %v688_v52  ;;  %v738_v4 = vshrl.u32 %v6954_v53, 16  ;;  %v710_v5 = vshll.u32 %v6921_v26, 16  ;;  %5233 = vmatprep.subr.bf16.mxu0 %v6416_v3  ;;  %v6996_v38 = vld [vmem:[%s6811_s21 + $0x44] sm:$0x1] }
  0x36   : > { %1319 = vrot.lane.b32.xlu1 %v6947_v46, %s6647_s28  ;;  %v716_v9 = vrot.slane %v714_v42, 4  ;;  %v720_v13 = vshll.u32 %v6957_v54, 16  ;;  %v707_v21 = vor.u32 %v706_v2, %v703_v1  ;;  %v6986_v29 = vcombine.low %v6937_v40, %v6954_v53  ;;  %v6420_v2 = vld [vmem:[%s10070_s2 + $0x80] sm:$0xff]  }
  0x37   : > { %v689_v16 = vsel %vm6874_vm2, %v684_v63, %v688_v52  ;;  %v694_v17 = vrot.slane %v693_v0, 4  ;;  %v712_v30 = vrot.slane %v710_v5, 5  ;;  %v749_v37 = vshrl.u32 %v6976_v15, 16  ;;  %v7005_v52 = vld [vmem:[%s6811_s21 + $0x54] sm:$0xf] }
  0x38   : > { %v708_v35 = vrot.slane %v707_v21, 4  ;;  %v722_v36 = vrot.slane %v720_v13, 5  ;;  %v752_v45 = vshll.u32 %v6976_v15, 16  ;;  %v727_v48 = vrot.slane %v725_v59, 4  ;;  %5234 = vmatpush3.bf16.msra.mxu0 %v6417_v39  ;;  %v7027_v5 = vld [vmem:[%s6811_s21 + $0x58] sm:$0xf] }
  0x39   : > { %1404 = vrot.lane.b32.xlu0 %v6951_v47, %s6647_s28  ;;  %v699_v34 = vsel %vm6874_vm2, %v694_v17, %v698_v56  ;;  %v717_v42 = vor.u32 %v716_v9, %v712_v30  ;;  %v6419_v56 = vld [vmem:[%s10070_s2 + $0xc0] sm:$0xff]   ;;  %v762_v62 = vshrl.u32 %v6990_v33, 16  ;;  %v730_v63 = vrot.slane %v728_v60, 5  ;;  %v6421_v21 = vld [vmem:[%s10070_s2 + $0xc8] sm:$0xff]  }
  0x3a   : > { %v7001_v41 = vcombine.low %v689_v16, %v699_v34  ;;  %v734_v0 = vshll.u32 %v6954_v53, 16  ;;  %v740_v1 = vrot.slane %v738_v4, 4  ;;  %v713_v59 = vsel %vm6874_vm2, %v708_v35, %v712_v30  ;;  %5331 = vmatprep.subr.bf16.mxu1 %v6419_v56 }
  0x3b   : > { %v718_v3 = vrot.slane %v717_v42, 4  ;;  %v7023_v60 = vcombine.low %v6976_v15, %v6990_v33  ;;  %v744_v4 = vshll.u32 %v6996_v38, 16  ;;  %v731_v16 = vor.u32 %v730_v63, %v727_v48  ;;  %v7039_v42 = vld [vmem:[%s6811_s21 + $0x50] sm:$0x1]  ;;  %5332 = vmatpush3.bf16.msra.mxu1 %v6420_v2  ;;  %v6422_v48 = vld [vmem:[%s10070_s2 + $0x88] sm:$0xff]  }
  0x3c   : > { %10198 = vst [vmem:[#allocation11_spill] sm:$0xff] %v7001_v41  ;;  %1321 = vrot.lane.b32.xlu1 %v7001_v41, %s6647_s28  ;;  %v736_v17 = vrot.slane %v734_v0, 5  ;;  %v773_v39 = vshrl.u32 %v7005_v52, 16  ;;  %5333 = vmatprep.subr.bf16.mxu1 %v6421_v21  ;;  %v751_v2 = vrot.slane %v749_v37, 4  ;;  %v776_v9 = vshll.u32 %v7005_v52, 16 }
  0x3d   : > { %1406 = vrot.lane.b32.xlu0 %v6986_v29, %s6647_s28  ;;  %v723_v30 = vsel %vm6874_vm2, %v718_v3, %v722_v36  ;;  %v746_v34 = vrot.slane %v744_v4, 5  ;;  %v732_v63 = vrot.slane %v731_v16, 4  ;;  %v7048_v36 = vcombine.low %v7005_v52, %v7027_v5  ;;  %v6423_v3 = vld [vmem:[%s10070_s2 + $0xd0] sm:$0xff]   ;;  %v7057_v16 = vld [vmem:[%s6811_s21 + $0x60] sm:$0xf] }
  0x3e   : > { %v7044_v56 = vcombine.low %v713_v59, %v723_v30  ;;  %v741_v0 = vor.u32 %v740_v1, %v736_v17  ;;  %v754_v4 = vrot.slane %v752_v45, 5  ;;  %v758_v59 = vshll.u32 %v6990_v33, 16 }
  0x3f   : > { %10200 = vst [vmem:[#allocation13_spill] sm:$0xff] %v7048_v36  ;;  %v764_v30 = vrot.slane %v762_v62, 4  ;;  %v737_v1 = vsel %vm6874_vm2, %v732_v63, %v736_v17  ;;  %v768_v13 = vshll.u32 %v7039_v42, 16  ;;  %v786_v37 = vshrl.u32 %v7027_v5, 16  ;;  %5334 = vmatpush3.bf16.msra.mxu1 %v6422_v48  ;;  %v6424_v17 = vld [vmem:[%s10070_s2 + $0x90] sm:$0xff]   ;;  %v6425_v48 = vld [vmem:[%s10070_s2 + $0xd8] sm:$0xff]  }
  0x40   : > { %10199 = vst [vmem:[#allocation12_spill] sm:$0xff] %v7044_v56  ;;  %1323 = vrot.lane.b32.xlu1 %v7044_v56, %s6647_s28  ;;  %v742_v21 = vrot.slane %v741_v0, 4  ;;  %v755_v62 = vor.u32 %v754_v4, %v751_v2  ;;  %v760_v35 = vrot.slane %v758_v59, 5  ;;  %v797_v27 = vshrl.u32 %v7057_v16, 16  ;;  %v7079_v2 = vld [vmem:[%s6811_s21 + $0x5c] sm:$0x1]  ;;  %5335 = vmatprep.subr.bf16.mxu1 %v6423_v3 }
  0x41   : > { %1408 = vrot.lane.b32.xlu0 %v7023_v60, %s6647_s28  ;;  %v800_v45 = vshll.u32 %v7057_v16, 16  ;;  %v7090_v0 = vcombine.low %v7057_v16, %v7068_v20  ;;  %v775_v32 = vrot.slane %v773_v39, 4  ;;  %v778_v43 = vrot.slane %v776_v9, 5  ;;  %v6426_v9 = vld [vmem:[%s10070_s2 + $0x98] sm:$0xff]  }
  0x42   : > { %v747_v63 = vsel %vm6874_vm2, %v742_v21, %v746_v34  ;;  %v756_v34 = vrot.slane %v755_v62, 4  ;;  %v765_v59 = vor.u32 %v764_v30, %v760_v35  ;;  %v770_v21 = vrot.slane %v768_v13, 5 }
  0x43   : > { %v7084_v4 = vcombine.low %v737_v1, %v747_v63  ;;  %10202 = vst [vmem:[#allocation15_spill] sm:$0xff] %v7090_v0  ;;  %v782_v3 = vshll.u32 %v7027_v5, 16  ;;  %v788_v1 = vrot.slane %v786_v37, 4  ;;  %v792_v62 = vshll.u32 %v7079_v2, 16  ;;  %5336 = vmatpush3.bf16.msra.mxu1 %v6424_v17  ;;  %v6428_v17 = vld [vmem:[%s10070_s2 + $0xa0] sm:$0xff]  }
  0x44   : > { %v761_v30 = vsel %vm6874_vm2, %v756_v34, %v760_v35  ;;  %v766_v13 = vrot.slane %v765_v59, 4  ;;  %v810_v63 = vshrl.u32 %v7068_v20, 16  ;;  %v779_v19 = vor.u32 %v778_v43, %v775_v32  ;;  %5337 = vmatprep.subr.bf16.mxu1 %v6425_v48  ;;  %v6427_v35 = vld [vmem:[%s10070_s2 + $0xe0] sm:$0xff]  }
  0x45   : > { %10201 = vst [vmem:[#allocation14_spill] sm:$0xff] %v7084_v4  ;;  %1410 = vrot.lane.b32.xlu0 %v7048_v36, %s6647_s28  ;;  %1325 = vrot.lane.b32.xlu1 %v7084_v4, %s6647_s28  ;;  %v784_v23 = vrot.slane %v782_v3, 5  ;;  %v794_v3 = vrot.slane %v792_v62, 5  ;;  %v821_v39 = vshrl.u32 %v7094_v44, 16  ;;  %v7127_v57 = vcombine.low %v7094_v44, %v7097_v58 }
  0x46   : > { %v771_v37 = vsel %vm6874_vm2, %v766_v13, %v770_v21  ;;  %v780_v59 = vrot.slane %v779_v19, 4  ;;  %v799_v21 = vrot.slane %v797_v27, 4  ;;  %v802_v13 = vrot.slane %v800_v45, 5  ;;  %v6429_v27 = vld [vmem:[%s10070_s2 + $0xe8] sm:$0xff]  }
  0x47   : > { %v7122_v32 = vcombine.low %v761_v30, %v771_v37  ;;  %v789_v48 = vor.u32 %v788_v1, %v784_v23  ;;  %10204 = vst [vmem:[#allocation17_spill] sm:$0xff] %v7127_v57  ;;  %5338 = vmatpush3.bf16.msra.mxu1 %v6426_v9  ;;  %v806_v1 = vshll.u32 %v7068_v20, 16  ;;  %v812_v62 = vrot.slane %v810_v63, 4 }
  0x48   : > { %v785_v19 = vsel %vm6874_vm2, %v780_v59, %v784_v23  ;;  %5339 = vmatprep.subr.bf16.mxu1 %v6427_v35  ;;  %v824_v45 = vshll.u32 %v7094_v44, 16  ;;  %v803_v9 = vor.u32 %v802_v13, %v799_v21  ;;  %v816_v37 = vshll.u32 %v7110_v25, 16  ;;  %v7156_v21 = vld [vmem:[%s6811_s21 + $0x78] sm:$0xf] }
  0x49   : > { %1412 = vrot.lane.b32.xlu0 %v7090_v0, %s6647_s28  ;;  %10203 = vst [vmem:[#allocation16_spill] sm:$0xff] %v7122_v32  ;;  %1327 = vrot.lane.b32.xlu1 %v7122_v32, %s6647_s28  ;;  %v790_v30 = vrot.slane %v789_v48, 4  ;;  %v5002_v63 = vrot.slane %v6817_v6, 9  ;;  %v808_v59 = vrot.slane %v806_v1, 5  ;;  %v1048_v48 = vrot.slane %v6820_v7, 5  ;;  %v6430_v6 = vld [vmem:[%s10070_s2 + $0xa8] sm:$0xff]  }
  0x4a   : > { %v1051_v34 = vrot.slane %v6859_v31, 5  ;;  %v834_v43 = vshrl.u32 %v7097_v58, 16  ;;  %v804_v28 = vrot.slane %v803_v9, 4  ;;  %v6433_v9 = vld [vmem:[%s10070_s2 + $0xf8] sm:$0xff]   ;;  %v823_v32 = vrot.slane %v821_v39, 4 }
  0x4b   : > { %v795_v35 = vsel %vm6874_vm2, %v790_v30, %v794_v3  ;;  %5340 = vmatpush3.bf16.msra.mxu1 %v6428_v17  ;;  %v6431_v3 = vld [vmem:[%s10070_s2 + $0xf0] sm:$0xff]   ;;  %v813_v7 = vor.u32 %v812_v62, %v808_v59  ;;  %v818_v30 = vrot.slane %v816_v37, 5  ;;  %v1049_v31 = vsel %vm7146_vm5, %v5002_v63, %v1048_v48 }
  0x4c   : > { %v7158_v13 = vcombine.low %v785_v19, %v795_v35  ;;  %v1050_v1 = vrot.slane %v1048_v48, 4  ;;  %v7170_v19 = vld [vmem:[%s6811_s21 + $0x74] sm:$0x1]  ;;  %5341 = vmatprep.subr.bf16.mxu1 %v6429_v27  ;;  %v7177_v35 = vld [vmem:[%s6811_s21 + $0x7c] sm:$0xf]  ;;  %v845_v62 = vshrl.u32 %v7156_v21, 16  ;;  %v809_v63 = vsel %vm6874_vm2, %v804_v28, %v808_v59 }
  0x4d   : > { %1414 = vrot.lane.b32.xlu0 %v7127_v57, %s6647_s28  ;;  %v6432_v37 = vld [vmem:[%s10070_s2 + $0xb0] sm:$0xff]   ;;  %v814_v27 = vrot.slane %v813_v7, 4  ;;  %v848_v17 = vshll.u32 %v7156_v21, 16  ;;  %v826_v57 = vrot.slane %v824_v45, 5  ;;  %v830_v28 = vshll.u32 %v7097_v58, 16 }
  0x4e   : > { %10207 = vst [vmem:[#allocation18_spill] sm:$0xff] %v7158_v13  ;;  %1329 = vrot.lane.b32.xlu1 %v7158_v13, %s6647_s28  ;;  %v1052_v48 = vsel %vm7146_vm5, %v1050_v1, %v1051_v34  ;;  %v836_v59 = vrot.slane %v834_v43, 4  ;;  %v7197_v7 = vld [vmem:[%s6811_s21 + $0x80] sm:$0x1]  ;;  %v840_v45 = vshll.u32 %v7170_v19, 16  ;;  %v7209_v43 = vcombine.low %v7156_v21, %v7177_v35 }
  0x4f   : > { %v7191_v13 = vcombine.low %v1049_v31, %v1052_v48  ;;  %5342 = vmatpush3.bf16.msra.mxu1 %v6430_v6  ;;  %v819_v4 = vsel %vm6874_vm2, %v814_v27, %v818_v30  ;;  %v858_v31 = vshrl.u32 %v7177_v35, 16  ;;  %v827_v39 = vor.u32 %v826_v57, %v823_v32 }
  0x50   : > { %5343 = vmatprep.subr.bf16.mxu1 %v6431_v3  ;;  %v7199_v34 = vcombine.low %v809_v63, %v819_v4  ;;  %10209 = vst [vmem:[#allocation20_spill] sm:$0xff] %v7209_v43  ;;  %v832_v4 = vrot.slane %v830_v28, 5  ;;  %v10210_v3 = vrot.slane %v6832_v12, 5  ;;  %v10211_v1 = vrot.slane %v6823_v8, 9  ;;  %v6434_v28 = vld [vmem:[%s10070_s2 + $0xb8] sm:$0xff]  }
  0x51   : > { %1436 = vrot.lane.b32.xlu0 %v7191_v13, %s6647_s28  ;;  %v10212_v32 = vrot.slane %v6879_v55, 5  ;;  %v828_v27 = vrot.slane %v827_v39, 4  ;;  %v842_v48 = vrot.slane %v840_v45, 5  ;;  %v7228_v12 = vld [vmem:[%s6811_s21 + $0x84] sm:$0xf]  ;;  %v847_v8 = vrot.slane %v845_v62, 4 }
  0x52   : > { %10208 = vst [vmem:[#allocation19_spill] sm:$0xff] %v7199_v34  ;;  %1331 = vrot.lane.b32.xlu1 %v7199_v34, %s6647_s28  ;;  %v1056_v57 = vsel %vm7146_vm5, %v10211_v1, %v10210_v3  ;;  %v837_v30 = vor.u32 %v836_v59, %v832_v4  ;;  %v850_v6 = vrot.slane %v848_v17, 5  ;;  %v7232_v3 = vld [vmem:[%s6811_s21 + $0x88] sm:$0xf]  ;;  %v860_v39 = vrot.slane %v858_v31, 4 }
  0x53   : > { %v1059_v63 = vsel %vm7146_vm5, %v6870_v50, %v10212_v32  ;;  %5344 = vmatpush3.bf16.msra.mxu1 %v6432_v37  ;;  %v854_v50 = vshll.u32 %v7177_v35, 16  ;;  %v864_v37 = vshll.u32 %v7197_v7, 16  ;;  %v833_v59 = vsel %vm6874_vm2, %v828_v27, %v832_v4  ;;  %v7247_v34 = vld [vmem:[%s6811_s21 + $0x90] sm:$0xf] }
  0x54   : > { %5345 = vmatprep.subr.bf16.mxu1 %v6433_v9  ;;  %v7236_v45 = vcombine.low %v1056_v57, %v1059_v63  ;;  %v838_v1 = vrot.slane %v837_v30, 4  ;;  %v851_v62 = vor.u32 %v850_v6, %v847_v8  ;;  %v869_v9 = vshrl.u32 %v7228_v12, 16  ;;  %v7250_v57 = vld [vmem:[%s6811_s21 + $0x8c] sm:$0x1] }
  0x55   : > { %v856_v32 = vrot.slane %v854_v50, 5  ;;  %v10214_v55 = vrot.slane %v6888_v61, 5  ;;  %v872_v30 = vshll.u32 %v7228_v12, 16  ;;  %v882_v4 = vshrl.u32 %v7232_v3, 16 }
  0x56   : > { %10213 = vst [vmem:[#allocation21_spill] sm:$0xff] %v7236_v45  ;;  %1416 = vrot.lane.b32.xlu1 %v7209_v43, %s6647_s28  ;;  %v843_v6 = vsel %vm6874_vm2, %v838_v1, %v842_v48  ;;  %v852_v63 = vrot.slane %v851_v62, 4  ;;  %v866_v17 = vrot.slane %v864_v37, 5  ;;  %v10218_v43 = vrot.slane %v6866_v49, 9  ;;  %v7274_v62 = vld [vmem:[%s6811_s21 + $0x94] sm:$0xf] }
  0x57   : > { %v1064_v31 = vrot.slane %v10214_v55, 4  ;;  %5346 = vmatpush3.bf16.msra.mxu1 %v6434_v28  ;;  %v7256_v27 = vcombine.low %v833_v59, %v843_v6  ;;  %v861_v50 = vor.u32 %v860_v39, %v856_v32  ;;  %v7261_v55 = vcombine.low %v7228_v12, %v7232_v3 }
  0x58   : > { %v10217_v28 = vrot.slane %v6888_v61, 5  ;;  %v10219_v1 = vrot.slane %v6910_v22, 5  ;;  %v893_v39 = vshrl.u32 %v7247_v34, 16  ;;  %v857_v49 = vsel %vm6874_vm2, %v852_v63, %v856_v32 }
  0x59   : > { %10215 = vst [vmem:[#allocation22_spill] sm:$0xff] %v7256_v27  ;;  %10216 = vst [vmem:[#allocation23_spill] sm:$0xff] %v7261_v55  ;;  %1333 = vrot.lane.b32.xlu0 %v7256_v27, %s6647_s28  ;;  %v862_v61 = vrot.slane %v861_v50, 4  ;;  %v871_v37 = vrot.slane %v869_v9, 4  ;;  %v874_v6 = vrot.slane %v872_v30, 5  ;;  %v896_v27 = vshll.u32 %v7247_v34, 16 }
  0x5a   : > { %v1063_v48 = vsel %vm7146_vm5, %v10218_v43, %v10217_v28  ;;  %v1066_v59 = vsel %vm7146_vm5, %v1064_v31, %v10219_v1  ;;  %1438 = vrot.lane.b32.xlu1 %v7236_v45, %s6647_s28  ;;  %v10220_v43 = vrot.slane %v6921_v26, 5  ;;  %v878_v31 = vshll.u32 %v7232_v3, 16 }
  0x5b   : > { %v884_v28 = vrot.slane %v882_v4, 4  ;;  %v888_v1 = vshll.u32 %v7250_v57, 16  ;;  %v867_v8 = vsel %vm6874_vm2, %v862_v61, %v866_v17  ;;  %v906_v32 = vshrl.u32 %v7274_v62, 16  ;;  %v7322_v4 = vld [vmem:[%s6811_s21 + $0xa0] sm:$0xf] }
  0x5c   : > { %v1071_v22 = vrot.slane %v10220_v43, 4  ;;  %v7292_v50 = vcombine.low %v857_v49, %v867_v8  ;;  %v875_v9 = vor.u32 %v874_v6, %v871_v37  ;;  %v880_v30 = vrot.slane %v878_v31, 5  ;;  %v7310_v49 = vld [vmem:[%s6811_s21 + $0x9c] sm:$0xf]  ;;  %v7313_v37 = vld [vmem:[%s6811_s21 + $0x98] sm:$0x1] }
  0x5d   : > { %1418 = vrot.lane.b32.xlu0 %v7261_v55, %s6647_s28  ;;  %v7297_v43 = vcombine.low %v1063_v48, %v1066_v59  ;;  %v7301_v17 = vcombine.low %v7247_v34, %v7274_v62  ;;  %v10224_v61 = vrot.slane %v6921_v26, 5  ;;  %v10225_v63 = vrot.slane %v6901_v11, 9 }
  0x5e   : > { %10221 = vst [vmem:[#allocation24_spill] sm:$0xff] %v7292_v50  ;;  %1335 = vrot.lane.b32.xlu1 %v7292_v50, %s6647_s28  ;;  %v10226_v48 = vrot.slane %v6957_v54, 5  ;;  %v876_v6 = vrot.slane %v875_v9, 4  ;;  %v885_v31 = vor.u32 %v884_v28, %v880_v30  ;;  %v890_v26 = vrot.slane %v888_v1, 5 }
  0x5f   : > { %10222 = vst [vmem:[#allocation25_spill] sm:$0xff] %v7297_v43  ;;  %10223 = vst [vmem:[#allocation26_spill] sm:$0xff] %v7301_v17  ;;  %v1070_v8 = vsel %vm7146_vm5, %v10225_v63, %v10224_v61  ;;  %v895_v11 = vrot.slane %v893_v39, 4  ;;  %v898_v55 = vrot.slane %v896_v27, 5  ;;  %v902_v63 = vshll.u32 %v7274_v62, 16 }
  0x60   : > { %v1073_v59 = vsel %vm7146_vm5, %v1071_v22, %v10226_v48  ;;  %v908_v61 = vrot.slane %v906_v32, 4  ;;  %v881_v0 = vsel %vm6874_vm2, %v876_v6, %v880_v30  ;;  %v886_v56 = vrot.slane %v885_v31, 4 }
  0x61   : > { %v917_v54 = vshrl.u32 %v7310_v49, 16  ;;  %v912_v50 = vshll.u32 %v7313_v37, 16  ;;  %1440 = vrot.lane.b32.xlu0 %v7297_v43, %s6647_s28  ;;  %v899_v22 = vor.u32 %v898_v55, %v895_v11  ;;  %v904_v28 = vrot.slane %v902_v63, 5  ;;  %v7344_v11 = vld [vmem:[%s6811_s21 + $0xa8] sm:$0xf] }
  0x62   : > { %v10227_v39 = vrot.slane %v6954_v53, 5  ;;  %1420 = vrot.lane.b32.xlu1 %v7301_v17, %s6647_s28  ;;  %v7335_v1 = vcombine.low %v1070_v8, %v1073_v59  ;;  %v891_v32 = vsel %vm6874_vm2, %v886_v56, %v890_v26  ;;  %v920_v9 = vshll.u32 %v7310_v49, 16 }
  0x63   : > { %v930_v30 = vshrl.u32 %v7322_v4, 16  ;;  %v7341_v48 = vcombine.low %v881_v0, %v891_v32  ;;  %v900_v55 = vrot.slane %v899_v22, 4  ;;  %v909_v6 = vor.u32 %v908_v61, %v904_v28  ;;  %v7359_v22 = vld [vmem:[%s6811_s21 + $0xa4] sm:$0x1] }
  0x64   : > { %v1078_v27 = vrot.slane %v10227_v39, 4  ;;  %10228 = vst [vmem:[#allocation27_spill] sm:$0xff] %v7335_v1  ;;  %v914_v31 = vrot.slane %v912_v50, 5  ;;  %v7350_v59 = vcombine.low %v7310_v49, %v7322_v4  ;;  %v10231_v56 = vmov %v10227_v39 }
  0x65   : > { %10229 = vst [vmem:[#allocation28_spill] sm:$0xff] %v7341_v48  ;;  %v10232_v26 = vrot.slane %v6937_v40, 9  ;;  %1337 = vrot.lane.b32.xlu0 %v7341_v48, %s6647_s28  ;;  %v905_v50 = vsel %vm6874_vm2, %v900_v55, %v904_v28  ;;  %v910_v61 = vrot.slane %v909_v6, 4  ;;  %v10233_v39 = vrot.slane %v6996_v38, 5  ;;  %v7373_v40 = vld [vmem:[%s6811_s21 + $0xac] sm:$0xf] }
  0x66   : > { %10230 = vst [vmem:[#allocation29_spill] sm:$0xff] %v7350_v59  ;;  %v941_v53 = vshrl.u32 %v7344_v11, 16  ;;  %1442 = vrot.lane.b32.xlu1 %v7335_v1, %s6647_s28  ;;  %v919_v63 = vrot.slane %v917_v54, 4  ;;  %v922_v8 = vrot.slane %v920_v9, 5  ;;  %v926_v28 = vshll.u32 %v7322_v4, 16 }
  0x67   : > { %v1077_v0 = vsel %vm7146_vm5, %v10232_v26, %v10231_v56  ;;  %v1080_v32 = vsel %vm7146_vm5, %v1078_v27, %v10233_v39  ;;  %v10234_v56 = vrot.slane %v6990_v33, 5  ;;  %v915_v38 = vsel %vm6874_vm2, %v910_v61, %v914_v31  ;;  %v7410_v54 = vld [vmem:[%s6811_s21 + $0xb0] sm:$0x1] }
  0x68   : > { %v944_v55 = vshll.u32 %v7344_v11, 16  ;;  %v932_v27 = vrot.slane %v930_v30, 4  ;;  %v936_v6 = vshll.u32 %v7359_v22, 16  ;;  %v7382_v39 = vcombine.low %v905_v50, %v915_v38  ;;  %v7407_v38 = vld [vmem:[%s6811_s21 + $0xb4] sm:$0xf] }
  0x69   : > { %v1085_v26 = vrot.slane %v10234_v56, 4  ;;  %v954_v48 = vshrl.u32 %v7373_v40, 16  ;;  %v923_v17 = vor.u32 %v922_v8, %v919_v63  ;;  %v928_v56 = vrot.slane %v926_v28, 5  ;;  %1422 = vrot.lane.b32.xlu0 %v7350_v59, %s6647_s28  ;;  %v7417_v59 = vld [vmem:[%s6811_s21 + $0xb8] sm:$0xf] }
  0x6a   : > { %10235 = vst [vmem:[#allocation30_spill] sm:$0xff] %v7382_v39  ;;  %v7388_v9 = vcombine.low %v1077_v0, %v1080_v32  ;;  %v7392_v30 = vcombine.low %v7344_v11, %v7373_v40  ;;  %v10238_v31 = vrot.slane %v6990_v33, 5  ;;  %v10239_v50 = vrot.slane %v6976_v15, 9  ;;  %1339 = vrot.lane.b32.xlu1 %v7382_v39, %s6647_s28 }
  0x6b   : > { %v10240_v8 = vrot.slane %v7039_v42, 5  ;;  %v924_v61 = vrot.slane %v923_v17, 4  ;;  %v933_v32 = vor.u32 %v932_v27, %v928_v56  ;;  %v938_v28 = vrot.slane %v936_v6, 5 }
  0x6c   : > { %10236 = vst [vmem:[#allocation31_spill] sm:$0xff] %v7388_v9  ;;  %10237 = vst [vmem:[#allocation32_spill] sm:$0xff] %v7392_v30  ;;  %v1084_v63 = vsel %vm7146_vm5, %v10239_v50, %v10238_v31  ;;  %v943_v31 = vrot.slane %v941_v53, 4  ;;  %v946_v50 = vrot.slane %v944_v55, 5  ;;  %v950_v17 = vshll.u32 %v7373_v40, 16 }
  0x6d   : > { %v1087_v0 = vsel %vm7146_vm5, %v1085_v26, %v10240_v8  ;;  %v929_v39 = vsel %vm6874_vm2, %v924_v61, %v928_v56  ;;  %v934_v42 = vrot.slane %v933_v32, 4  ;;  %v956_v26 = vrot.slane %v954_v48, 4  ;;  %1444 = vrot.lane.b32.xlu0 %v7388_v9, %s6647_s28 }
  0x6e   : > { %v7422_v27 = vcombine.low %v1084_v63, %v1087_v0  ;;  %v965_v6 = vshrl.u32 %v7407_v38, 16  ;;  %v947_v8 = vor.u32 %v946_v50, %v943_v31  ;;  %v960_v53 = vshll.u32 %v7410_v54, 16  ;;  %1424 = vrot.lane.b32.xlu1 %v7392_v30, %s6647_s28 }
  0x6f   : > { %v939_v55 = vsel %vm6874_vm2, %v934_v42, %v938_v28  ;;  %v968_v56 = vshll.u32 %v7407_v38, 16  ;;  %v952_v48 = vrot.slane %v950_v17, 5  ;;  %v10242_v61 = vrot.slane %v7027_v5, 5  ;;  %v7440_v28 = vld [vmem:[%s6811_s21 + $0xbc] sm:$0x1] }
  0x70   : > { %10241 = vst [vmem:[#allocation33_spill] sm:$0xff] %v7422_v27  ;;  %v7434_v0 = vcombine.low %v929_v39, %v939_v55  ;;  %v978_v31 = vshrl.u32 %v7417_v59, 16  ;;  %v948_v50 = vrot.slane %v947_v8, 4  ;;  %v962_v41 = vrot.slane %v960_v53, 5 }
  0x71   : > { %v1092_v32 = vrot.slane %v10242_v61, 4  ;;  %v957_v30 = vor.u32 %v956_v26, %v952_v48  ;;  %v7446_v42 = vcombine.low %v7407_v38, %v7417_v59  ;;  %v10244_v17 = vmov %v10242_v61 }
  0x72   : > { %10243 = vst [vmem:[#allocation34_spill] sm:$0xff] %v7434_v0  ;;  %1341 = vrot.lane.b32.xlu0 %v7434_v0, %s6647_s28  ;;  %v953_v39 = vsel %vm6874_vm2, %v948_v50, %v952_v48  ;;  %v10245_v8 = vrot.slane %v7005_v52, 9  ;;  %v10246_v53 = vrot.slane %v7079_v2, 5  ;;  %1446 = vrot.lane.b32.xlu1 %v7422_v27, %s6647_s28  ;;  %v967_v15 = vrot.slane %v965_v6, 4 }
  0x73   : > { %v958_v61 = vrot.slane %v957_v30, 4  ;;  %v970_v33 = vrot.slane %v968_v56, 5  ;;  %v974_v48 = vshll.u32 %v7417_v59, 16  ;;  %v10247_v52 = vrot.slane %v7068_v20, 5  ;;  %v7474_v30 = vld [vmem:[%s6811_s21 + $0xc4] sm:$0xf] }
  0x74   : > { %v1091_v26 = vsel %vm7146_vm5, %v10245_v8, %v10244_v17  ;;  %v1094_v55 = vsel %vm7146_vm5, %v1092_v32, %v10246_v53  ;;  %v980_v63 = vrot.slane %v978_v31, 4  ;;  %v984_v17 = vshll.u32 %v7440_v28, 16  ;;  %v7471_v8 = vld [vmem:[%s6811_s21 + $0xc0] sm:$0xf] }
  0x75   : > { %v1099_v50 = vrot.slane %v10247_v52, 4  ;;  %v963_v32 = vsel %vm6874_vm2, %v958_v61, %v962_v41  ;;  %v971_v6 = vor.u32 %v970_v33, %v967_v15  ;;  %v976_v56 = vrot.slane %v974_v48, 5 }
  0x76   : > { %v1146_v53 = vrot.slane %v7417_v59, 5  ;;  %1426 = vrot.lane.b32.xlu0 %v7446_v42, %s6647_s28  ;;  %v7479_v52 = vcombine.low %v953_v39, %v963_v32  ;;  %v7481_v31 = vcombine.low %v1091_v26, %v1094_v55  ;;  %v10249_v2 = vrot.slane %v7097_v58, 5 }
  0x77   : > { %v1142_v41 = vrot.slane %v7410_v54, 5  ;;  %v972_v61 = vrot.slane %v971_v6, 4  ;;  %v981_v0 = vor.u32 %v980_v63, %v976_v56  ;;  %v986_v36 = vrot.slane %v984_v17, 5 }
  0x78   : > { %10248 = vst [vmem:[#allocation35_spill] sm:$0xff] %v7481_v31  ;;  %v1106_v5 = vrot.slane %v10249_v2, 4  ;;  %1343 = vrot.lane.b32.xlu1 %v7479_v52, %s6647_s28  ;;  %v7490_v15 = vcombine.low %v7471_v8, %v7474_v30  ;;  %v10250_v33 = vrot.slane %v7068_v20, 5  ;;  %v10251_v39 = vrot.slane %v7057_v16, 9 }
  0x79   : > { %v10252_v55 = vrot.slane %v7110_v25, 5  ;;  %v10253_v48 = vrot.slane %v7177_v35, 5  ;;  %v1152_v2 = vshrl.u32 %v7471_v8, 16  ;;  %v1155_v32 = vshll.u32 %v7471_v8, 16 }
  0x7a   : > { %v1098_v26 = vsel %vm7146_vm5, %v10251_v39, %v10250_v33  ;;  %v977_v20 = vsel %vm6874_vm2, %v972_v61, %v976_v56  ;;  %v982_v16 = vrot.slane %v981_v0, 4  ;;  %1448 = vrot.lane.b32.xlu0 %v7481_v31, %s6647_s28  ;;  %v1165_v25 = vshrl.u32 %v7474_v30, 16 }
  0x7b   : > { %v1101_v63 = vsel %vm7146_vm5, %v1099_v50, %v10252_v55  ;;  %v1113_v17 = vrot.slane %v10253_v48, 4  ;;  %v1149_v50 = vrot.slane %v7440_v28, 5  ;;  %v10254_v6 = vrot.slane %v7097_v58, 5 }
  0x7c   : > { %v10255_v33 = vrot.slane %v7094_v44, 9  ;;  %v10256_v55 = vrot.slane %v7170_v19, 5  ;;  %v7522_v56 = vcombine.low %v1098_v26, %v1101_v63  ;;  %v987_v61 = vsel %vm6874_vm2, %v982_v16, %v986_v36  ;;  %1428 = vrot.lane.b32.xlu1 %v7490_v15, %s6647_s28  ;;  %v7543_v26 = vld [vmem:[%s6811_s21] sm:$0xf] }
  0x7d   : > { %v10258_v58 = vrot.slane %v7156_v21, 9  ;;  %v7536_v19 = vcombine.low %v977_v20, %v987_v61  ;;  %v10261_v35 = vrot.slane %v7274_v62, 5  ;;  %v7612_v21 = vld [vmem:[%s6811_s21 + $0xd4] sm:$0x1]  ;;  %v10282_v59 = vrot.slane %v7543_v26, 9 }
  0x7e   : > { %v1105_v39 = vsel %vm7146_vm5, %v10255_v33, %v10254_v6  ;;  %v1108_v0 = vsel %vm7146_vm5, %v1106_v5, %v10256_v55  ;;  %10257 = vst [vmem:[#allocation36_spill] sm:$0xff] %v7522_v56  ;;  %v10259_v6 = vrot.slane %v7232_v3, 5  ;;  %v10260_v5 = vrot.slane %v7197_v7, 5  ;;  %v7551_v55 = vld [vmem:[%s6811_s21 + $0x4] sm:$0xf] }
  0x7f   : > { %v1112_v44 = vsel %vm7146_vm5, %v10258_v58, %v10253_v48  ;;  %v1127_v63 = vrot.slane %v10261_v35, 4  ;;  %v7548_v16 = vcombine.low %v1105_v39, %v1108_v0  ;;  %v1041_v20 = vrot.slane %v7551_v55, 5  ;;  %v7567_v39 = vld [vmem:[%s6811_s21 + $0xc8] sm:$0x1]  ;;  %1345 = vrot.lane.b32.xlu0 %v7536_v19, %s6647_s28 }
  0x80   : > { %v1120_v33 = vrot.slane %v10259_v6, 4  ;;  %v1115_v36 = vsel %vm7146_vm5, %v1113_v17, %v10260_v5  ;;  %v10263_v61 = vmov %v10259_v6  ;;  %v10264_v7 = vrot.slane %v7228_v12, 9  ;;  %1450 = vrot.lane.b32.xlu1 %v7522_v56, %s6647_s28 }
  0x81   : > { %10262 = vst [vmem:[#allocation37_spill] sm:$0xff] %v7548_v16  ;;  %v10265_v48 = vmov %v10261_v35  ;;  %v10266_v58 = vrot.slane %v7247_v34, 9  ;;  %v10267_v3 = vrot.slane %v7250_v57, 5  ;;  %v10268_v0 = vrot.slane %v7313_v37, 5 }
  0x82   : > { %v1119_v17 = vsel %vm7146_vm5, %v10264_v7, %v10263_v61  ;;  %v10269_v34 = vrot.slane %v7322_v4, 5  ;;  %v1154_v35 = vrot.slane %v1152_v2, 4  ;;  %v7581_v61 = vcombine.low %v1112_v44, %v1115_v36 }
  0x83   : > { %v1126_v6 = vsel %vm7146_vm5, %v10266_v58, %v10265_v48  ;;  %v1122_v12 = vsel %vm7146_vm5, %v1120_v33, %v10267_v3  ;;  %v1129_v62 = vsel %vm7146_vm5, %v1127_v63, %v10268_v0  ;;  %v10272_v48 = vrot.slane %v7310_v49, 9  ;;  %v7591_v58 = vld [vmem:[%s6811_s21 + $0xcc] sm:$0xf]  ;;  %v7605_v3 = vld [vmem:[%s6811_s21 + $0xd0] sm:$0xf]  ;;  %1452 = vrot.lane.b32.xlu0 %v7548_v16, %s6647_s28 }
  0x84   : > { %v1134_v5 = vrot.slane %v10269_v34, 4  ;;  %10270 = vst [vmem:[#allocation38_spill] sm:$0xff] %v7581_v61  ;;  %v10271_v7 = vmov %v10269_v34  ;;  %v1157_v33 = vrot.slane %v1155_v32, 5  ;;  %v1161_v37 = vshll.u32 %v7474_v30, 16  ;;  %1454 = vrot.lane.b32.xlu1 %v7581_v61, %s6647_s28 }
  0x85   : > { %v1133_v57 = vsel %vm7146_vm5, %v10272_v48, %v10271_v7  ;;  %v10273_v2 = vrot.slane %v7373_v40, 5  ;;  %v10274_v44 = vrot.slane %v7344_v11, 9  ;;  %v1167_v63 = vrot.slane %v1165_v25, 4 }
  0x86   : > { %v1171_v32 = vshll.u32 %v7567_v39, 16  ;;  %v7607_v0 = vcombine.low %v1119_v17, %v1122_v12  ;;  %v7609_v34 = vcombine.low %v1126_v6, %v1129_v62  ;;  %v1158_v7 = vor.u32 %v1157_v33, %v1154_v35 }
  0x87   : > { %v1140_v4 = vsel %vm7146_vm5, %v10274_v44, %v10273_v2  ;;  %v10275_v49 = vmov %v10273_v2  ;;  %v1163_v48 = vrot.slane %v1161_v37, 5  ;;  %v10278_v11 = vrot.slane %v7359_v22, 5  ;;  %v6582_v44 = vld [vmem:[%s6811_s21 + $0x8] sm:$0x1]  ;;  %s527_s21 = sand.u32 1, %s6637_s24  }
  0x88   : > { %v1141_v36 = vrot.slane %v10275_v49, 4  ;;  %10276 = vst [vmem:[#allocation39_spill] sm:$0xff] %v7607_v0  ;;  %10277 = vst [vmem:[#allocation40_spill] sm:$0xff] %v7609_v34  ;;  %v1173_v25 = vrot.slane %v1171_v32, 5  ;;  %v1186_v2 = vshrl.u32 %v7591_v58, 16  ;;  %v1189_v17 = vshll.u32 %v7591_v58, 16  ;;  %1456 = vrot.lane.b32.xlu0 %v7607_v0, %s6647_s28  ;;  %1458 = vrot.lane.b32.xlu1 %v7609_v34, %s6647_s28 }
  0x89   : > { %v1136_v40 = vsel %vm7146_vm5, %v1134_v5, %v10278_v11  ;;  %v1159_v6 = vrot.slane %v1158_v7, 4  ;;  %v1168_v12 = vor.u32 %v1167_v63, %v1163_v48  ;;  %v1195_v62 = vshll.u32 %v7605_v3, 16  ;;  %s9835_s0 = sshll.u32 %s527_s21, 8 }
  0x8a   : > { %v1199_v35 = vshrl.u32 %v7605_v3, 16  ;;  %v1143_v22 = vsel %vm7146_vm5, %v1141_v36, %v1142_v41  ;;  %v1188_v5 = vrot.slane %v1186_v2, 4  ;;  %v1191_v33 = vrot.slane %v1189_v17, 5  ;;  %v6435_v2 = vld [vmem:[%s10070_s2 + $0x100] sm:$0xff]  }
  0x8b   : > { %v1205_v37 = vshll.u32 %v7612_v21, 16  ;;  %v1044_v49 = vrot.slane %v6582_v44, 5  ;;  %v1169_v32 = vrot.slane %v1168_v12, 4  ;;  %v1148_v63 = vrot.slane %v1146_v53, 4  ;;  %5851 = vmatprep.subr.bf16.mxu0 %v6435_v2 }
  0x8c   : > { %v1197_v7 = vrot.slane %v1195_v62, 5  ;;  %v1043_v11 = vrot.slane %v1041_v20, 4  ;;  %v7638_v54 = vcombine.low %v1133_v57, %v1136_v40  ;;  %v1192_v41 = vor.u32 %v1191_v33, %v1188_v5 }
  0x8d   : > { %v1201_v36 = vrot.slane %v1199_v35, 4  ;;  %v7643_v17 = vcombine.low %v1140_v4, %v1143_v22  ;;  %v1164_v12 = vsel %vm6874_vm2, %v1159_v6, %v1163_v48  ;;  %v1174_v62 = vsel %vm6874_vm2, %v1169_v32, %v1173_v25 }
  0x8e   : > { %10279 = vst [vmem:[#allocation41_spill] sm:$0xff] %v7638_v54  ;;  %v1180_v44 = vrot.slane %v7474_v30, 5  ;;  %v10281_v57 = vrot.slane %v7407_v38, 9  ;;  %v1193_v4 = vrot.slane %v1192_v41, 4  ;;  %v1207_v22 = vrot.slane %v1205_v37, 5  ;;  %1460 = vrot.lane.b32.xlu0 %v7638_v54, %s6647_s28 }
  0x8f   : > { %10280 = vst [vmem:[#allocation42_spill] sm:$0xff] %v7643_v17  ;;  %v1202_v35 = vor.u32 %v1201_v36, %v1197_v7  ;;  %v1150_v48 = vsel %vm7146_vm5, %v1148_v63, %v1149_v50  ;;  %v5017_v30 = vrot.slane %v7471_v8, 9  ;;  %v1183_v6 = vrot.slane %v7567_v39, 5  ;;  %1462 = vrot.lane.b32.xlu1 %v7643_v17, %s6647_s28 }
  0x90   : > { %v1147_v40 = vsel %vm7146_vm5, %v10281_v57, %v1146_v53  ;;  %v1182_v25 = vrot.slane %v1180_v44, 4  ;;  %v1042_v38 = vsel %vm7146_vm5, %v10282_v59, %v1041_v20  ;;  %v1045_v53 = vsel %vm7146_vm5, %v1043_v11, %v1044_v49 }
  0x91   : > { %v7674_v28 = vcombine.low %v1164_v12, %v1174_v62  ;;  %v1203_v50 = vrot.slane %v1202_v35, 4  ;;  %v1198_v8 = vsel %vm6874_vm2, %v1193_v4, %v1197_v7  ;;  %v7680_v39 = vcombine.low %v1147_v40, %v1150_v48  ;;  %v6436_v62 = vld [vmem:[%s10070_s2 + $0x108] sm:$0xff]   ;;  %v6438_v35 = vld [vmem:[%s10070_s2 + $0x118] sm:$0xff]  }
  0x92   : > { %v5051_v5 = vcombine.low %v1042_v38, %v1045_v53  ;;  %v1181_v33 = vsel %vm7146_vm5, %v5017_v30, %v1180_v44  ;;  %v1184_v37 = vsel %vm7146_vm5, %v1182_v25, %v1183_v6  ;;  %v5019_v11 = vcombine.low %v7543_v26, %v7551_v55  ;;  %v6437_v26 = vld [vmem:[%s10070_s2 + $0x110] sm:$0xff]  }
  0x93   : > { %10283 = vst [vmem:[#allocation43_spill] sm:$0xff] %v7680_v39  ;;  %v1208_v20 = vsel %vm6874_vm2, %v1203_v50, %v1207_v22  ;;  %1474 = vrot.lane.b32.xlu0 %v7674_v28, %s6647_s28  ;;  %1464 = vrot.lane.b32.xlu1 %v7680_v39, %s6647_s28  ;;  %v7692_v63 = vcombine.low %v1181_v33, %v1184_v37 }
  0x94   : > { %v5071_v49 = vcombine.low %v1198_v8, %v1208_v20 }
  0x95   : > { %10284 = vst [vmem:[#allocation44_spill] sm:$0xff] %v7692_v63 }
  0x96   : > { %v1399_v32 = vpop.permute.xlu0 %1398 }
  0x97   : > { %v7695_v51 = vsel %vm1481_vm6, %v5051_v5, %v1399_v32  ;;  %1476 = vrot.lane.b32.xlu0 %v5071_v49, %s6647_s28  ;;  %1466 = vrot.lane.b32.xlu1 %v7692_v63, %s6647_s28  ;;  %v1401_v7 = vpop.permute.xlu1 %1400 }
  0x98   : > { %2043 = vmatprep.mubr.bf16.mxu0 %v7695_v51  ;;  %v7705_v12 = vsel %vm1481_vm6, %v7191_v13, %v1401_v7 }
  0xa2   : > { %v1318_v41 = vpop.permute.xlu1 %1317 }
  0xa3   : > { %v1316_v36 = vpop.permute.xlu0 %1315  ;;  %v7724_v40 = vsel %vm1481_vm6, %v6828_v10, %v1318_v41 }
  0xa4   : > { %v7711_v44 = vsel %vm1481_vm6, %v5019_v11, %v1316_v36 }
  0xa5   : > { %2044 = vmatmul.mubr.bf16.vlgmr.msra.gmra.mrb[0].mxu0 %v7711_v44 }
  0xa6   : > { %2051 = vmatprep.mubr.bf16.mxu0 %v7705_v12  ;;  %5852 = vmatpush3.bf16.msra.mxu0 %v6435_v2 }
  0xa7   : > { %v1403_v57 = vpop.permute.xlu0 %1402  ;;  %5853 = vmatprep.subr.bf16.mxu0 %v6436_v62 }
  0xa8   : > { %v1320_v13 = vpop.permute.xlu1 %1319  ;;  %v7729_v2 = vsel %vm1481_vm6, %v7236_v45, %v1403_v57 }
  0xa9   : > { %v7720_v55 = vsel %vm1481_vm6, %v6844_v18, %v1320_v13 }
  0xaa   : > { %2204 = vmatprep.mubr.bf16.mxu1 %v7720_v55  ;;  %5854 = vmatpush3.bf16.msra.mxu0 %v6436_v62 }
  0xab   : > { %v1405_v4 = vpop.permute.xlu0 %1404  ;;  %5855 = vmatprep.subr.bf16.mxu0 %v6437_v26 }
  0xac   : > { %v7738_v48 = vsel %vm1481_vm6, %v7297_v43, %v1405_v4 }
  0xad   : > { %2052 = vmatmul.mubr.bf16.gmra.mrb[4].mxu0 %v7724_v40 }
  0xae   : > { %2059 = vmatprep.mubr.bf16.mxu0 %v7729_v2  ;;  %5856 = vmatpush3.bf16.msra.mxu0 %v6437_v26  ;;  %v1322_v10 = vpop.permute.xlu1 %1321  ;;  %v10291_v26 = vld [vmem:[#allocation13_spill] sm:$0xff] }
  0xaf   : > { %v1407_v18 = vpop.permute.xlu0 %1406  ;;  %5857 = vmatprep.subr.bf16.mxu0 %v6438_v35  ;;  %v7744_v59 = vsel %vm1481_vm6, %v6917_v24, %v1322_v10 }
  0xb0   : > { %v7748_v53 = vsel %vm1481_vm6, %v7335_v1, %v1407_v18 }
  0xb1   : > { %10285 = vst [vmem:[#allocation45_spill] sm:$0xff] %v7748_v53 }
  0xb2   : > { %5858 = vmatpush3.bf16.msra.mxu0 %v6438_v35  ;;  %v1324_v30 = vpop.permute.xlu1 %1323 }
  0xb3   : > { %v1409_v22 = vpop.permute.xlu0 %1408  ;;  %v7754_v20 = vsel %vm1481_vm6, %v6951_v47, %v1324_v30  ;;  %v10295_v30 = vld [vmem:[#allocation12_spill] sm:$0xff] }
  0xb4   : > { %v7758_v24 = vsel %vm1481_vm6, %v7388_v9, %v1409_v22 }
  0xb5   : > { %2060 = vmatmul.mubr.bf16.gmra.mrb[8].mxu0 %v7720_v55  ;;  %10286 = vst [vmem:[#allocation46_spill] sm:$0xff] %v7758_v24 }
  0xb6   : > { %2067 = vmatprep.mubr.bf16.mxu0 %v7738_v48 }
  0xb7   : > { %v1411_v25 = vpop.permute.xlu0 %1410  ;;  %v1326_v6 = vpop.permute.xlu1 %1325 }
  0xb8   : > { %v7769_v47 = vsel %vm1481_vm6, %v6986_v29, %v1326_v6  ;;  %v7774_v32 = vsel %vm1481_vm6, %v7422_v27, %v1411_v25 }
  0xb9   : > { %10287 = vst [vmem:[#allocation47_spill] sm:$0xff] %v7769_v47  ;;  %10288 = vst [vmem:[#allocation48_spill] sm:$0xff] %v7774_v32 }
  0xbb   : > { %v1413_v38 = vpop.permute.xlu0 %1412  ;;  %v1328_v50 = vpop.permute.xlu1 %1327 }
  0xbc   : > { %v7780_v41 = vsel %vm1481_vm6, %v7023_v60, %v1328_v50  ;;  %v7789_v36 = vsel %vm1481_vm6, %v7481_v31, %v1413_v38  ;;  %v10297_v38 = vld [vmem:[#allocation15_spill] sm:$0xff] }
  0xbd   : > { %2068 = vmatmul.mubr.bf16.gmra.mrb[12].mxu0 %v7744_v59  ;;  %10289 = vst [vmem:[#allocation49_spill] sm:$0xff] %v7780_v41  ;;  %10290 = vst [vmem:[#allocation50_spill] sm:$0xff] %v7789_v36 }
  0xbe   : > { %2075 = vmatprep.mubr.bf16.mxu0 %v7748_v53 }
  0xbf   : > { %v1415_v8 = vpop.permute.xlu0 %1414 }
  0xc0   : > { %v1330_v5 = vpop.permute.xlu1 %1329  ;;  %v7805_v10 = vsel %vm1481_vm6, %v7522_v56, %v1415_v8 }
  0xc1   : > { %v7796_v13 = vsel %vm1481_vm6, %v10291_v26, %v1330_v5 }
  0xc2   : > { %10292 = vst [vmem:[#allocation13_spill] sm:$0xff] %v7796_v13 }
  0xc3   : > { %v1437_v33 = vpop.permute.xlu0 %1436 }
  0xc4   : > { %v7764_v37 = vsel %vm1481_vm6, %v6905_v14, %v1437_v33  ;;  %v1332_v49 = vpop.permute.xlu1 %1331 }
  0xc5   : > { %2076 = vmatmul.mubr.bf16.gmra.mrb[16].mxu0 %v7754_v20  ;;  %2205 = vmatmul.mubr.bf16.vlgmr.msra.gmra.mrb[0].mxu1 %v7764_v37  ;;  %v7816_v50 = vsel %vm1481_vm6, %v10297_v38, %v1332_v49 }
  0xc6   : > { %2083 = vmatprep.mubr.bf16.mxu0 %v7758_v24  ;;  %2212 = vmatprep.mubr.bf16.mxu1 %v7744_v59  ;;  %10298 = vst [vmem:[#allocation15_spill] sm:$0xff] %v7816_v50 }
  0xc8   : > { %v1417_v7 = vpop.permute.xlu1 %1416 }
  0xc9   : > { %v7821_v8 = vsel %vm1481_vm6, %v7548_v16, %v1417_v7 }
  0xca   : > { %10299 = vst [vmem:[#allocation51_spill] sm:$0xff] %v7821_v8 }
  0xcb   : > { %v1334_v11 = vpop.permute.xlu0 %1333 }
  0xcc   : > { %v1439_v14 = vpop.permute.xlu1 %1438 }
  0xcd   : > { %2084 = vmatmul.mubr.bf16.gmra.mrb[20].mxu0 %v7769_v47  ;;  %v7784_v29 = vsel %vm1481_vm6, %v6947_v46, %v1439_v14  ;;  %v10293_v46 = vld [vmem:[#allocation11_spill] sm:$0xff] }
  0xce   : > { %2091 = vmatprep.mubr.bf16.mxu0 %v7774_v32  ;;  %2213 = vmatmul.mubr.bf16.gmra.mrb[4].mxu1 %v7784_v29  ;;  %10294 = vst [vmem:[#allocation11_spill] sm:$0xff] %v7805_v10 }
  0xcf   : > { %2220 = vmatprep.mubr.bf16.mxu1 %v7754_v20  ;;  %v1419_v62 = vpop.permute.xlu0 %1418 }
  0xd0   : > { %v1336_v57 = vpop.permute.xlu1 %1335  ;;  %v7837_v7 = vsel %vm1481_vm6, %v7581_v61, %v1419_v62 }
  0xd1   : > { %10304 = vst [vmem:[#allocation52_spill] sm:$0xff] %v7837_v7 }
  0xd3   : > { %v1441_v60 = vpop.permute.xlu0 %1440 }
  0xd4   : > { %v7800_v4 = vsel %vm1481_vm6, %v10293_v46, %v1441_v60  ;;  %v1421_v35 = vpop.permute.xlu1 %1420  ;;  %v10300_v60 = vld [vmem:[#allocation14_spill] sm:$0xff]  ;;  %v10302_v46 = vld [vmem:[#allocation17_spill] sm:$0xff] }
  0xd5   : > { %2092 = vmatmul.mubr.bf16.gmra.mrb[24].mxu0 %v7780_v41  ;;  %v7853_v62 = vsel %vm1481_vm6, %v7607_v0, %v1421_v35 }
  0xd6   : > { %2099 = vmatprep.mubr.bf16.mxu0 %v7789_v36  ;;  %2221 = vmatmul.mubr.bf16.gmra.mrb[8].mxu1 %v7800_v4  ;;  %10309 = vst [vmem:[#allocation53_spill] sm:$0xff] %v7853_v62 }
  0xd7   : > { %2228 = vmatprep.mubr.bf16.mxu1 %v7769_v47  ;;  %v1338_v18 = vpop.permute.xlu0 %1337 }
  0xd8   : > { %v1443_v22 = vpop.permute.xlu1 %1442 }
  0xd9   : > { %v7812_v25 = vsel %vm1481_vm6, %v10295_v30, %v1443_v22  ;;  %v7832_v22 = vsel %vm1481_vm6, %v10302_v46, %v1334_v11  ;;  %v10307_v46 = vld [vmem:[#allocation20_spill] sm:$0xff] }
  0xda   : > { %10296 = vst [vmem:[#allocation12_spill] sm:$0xff] %v7812_v25  ;;  %10303 = vst [vmem:[#allocation17_spill] sm:$0xff] %v7832_v22 }
  0xdb   : > { %v1423_v6 = vpop.permute.xlu0 %1422 }
  0xdc   : > { %v1340_v5 = vpop.permute.xlu1 %1339  ;;  %v7869_v35 = vsel %vm1481_vm6, %v7609_v34, %v1423_v6 }
  0xdd   : > { %2100 = vmatmul.mubr.bf16.gmra.mrb[28].mxu0 %v7796_v13  ;;  %10314 = vst [vmem:[#allocation54_spill] sm:$0xff] %v7869_v35 }
  0xde   : > { %2107 = vmatprep.mubr.bf16.mxu0 %v7805_v10  ;;  %2229 = vmatmul.mubr.bf16.gmra.mrb[12].mxu1 %v7812_v25 }
  0xdf   : > { %2236 = vmatprep.mubr.bf16.mxu1 %v7780_v41  ;;  %v1445_v33 = vpop.permute.xlu0 %1444 }
  0xe0   : > { %v1425_v14 = vpop.permute.xlu1 %1424  ;;  %v7828_v26 = vsel %vm1481_vm6, %v10300_v60, %v1445_v33  ;;  %v10305_v33 = vld [vmem:[#allocation16_spill] sm:$0xff] }
  0xe1   : > { %10301 = vst [vmem:[#allocation14_spill] sm:$0xff] %v7828_v26  ;;  %v7885_v6 = vsel %vm1481_vm6, %v7638_v54, %v1425_v14 }
  0xe2   : > { %10319 = vst [vmem:[#allocation55_spill] sm:$0xff] %v7885_v6 }
  0xe4   : > { %v1342_v49 = vpop.permute.xlu0 %1341  ;;  %v1447_v30 = vpop.permute.xlu1 %1446 }
  0xe5   : > { %2108 = vmatmul.mubr.bf16.gmra.mrb[32].mxu0 %v7816_v50  ;;  %v7844_v60 = vsel %vm1481_vm6, %v10305_v33, %v1447_v30  ;;  %v10310_v33 = vld [vmem:[#allocation18_spill] sm:$0xff] }
  0xe6   : > { %2115 = vmatprep.mubr.bf16.mxu0 %v7821_v8  ;;  %2237 = vmatmul.mubr.bf16.gmra.mrb[16].mxu1 %v7828_v26  ;;  %10306 = vst [vmem:[#allocation16_spill] sm:$0xff] %v7844_v60  ;;  %v7848_v8 = vsel %vm1481_vm6, %v10307_v46, %v1336_v57  ;;  %v10312_v57 = vld [vmem:[#allocation23_spill] sm:$0xff] }
  0xe7   : > { %2244 = vmatprep.mubr.bf16.mxu1 %v7796_v13  ;;  %10308 = vst [vmem:[#allocation20_spill] sm:$0xff] %v7848_v8  ;;  %v7864_v46 = vsel %vm1481_vm6, %v10312_v57, %v1338_v18  ;;  %v10317_v18 = vld [vmem:[#allocation26_spill] sm:$0xff] }
  0xe8   : > { %v1427_v38 = vpop.permute.xlu0 %1426  ;;  %10313 = vst [vmem:[#allocation23_spill] sm:$0xff] %v7864_v46  ;;  %v7880_v57 = vsel %vm1481_vm6, %v10317_v18, %v1340_v5 }
  0xe9   : > { %10318 = vst [vmem:[#allocation26_spill] sm:$0xff] %v7880_v57  ;;  %v7901_v14 = vsel %vm1481_vm6, %v7643_v17, %v1427_v38 }
  0xea   : > { %v1344_v11 = vpop.permute.xlu1 %1343  ;;  %10324 = vst [vmem:[#allocation56_spill] sm:$0xff] %v7901_v14 }
  0xec   : > { %v1449_v10 = vpop.permute.xlu0 %1448 }
  0xed   : > { %2116 = vmatmul.mubr.bf16.gmra.mrb[36].mxu0 %v7832_v22 }
  0xee   : > { %2123 = vmatprep.mubr.bf16.mxu0 %v7837_v7  ;;  %2245 = vmatmul.mubr.bf16.gmra.mrb[20].mxu1 %v7844_v60  ;;  %v1429_v30 = vpop.permute.xlu1 %1428  ;;  %v7860_v7 = vsel %vm1481_vm6, %v10310_v33, %v1449_v10  ;;  %v10315_v10 = vld [vmem:[#allocation19_spill] sm:$0xff] }
  0xef   : > { %2252 = vmatprep.mubr.bf16.mxu1 %v7816_v50  ;;  %10311 = vst [vmem:[#allocation18_spill] sm:$0xff] %v7860_v7  ;;  %v7917_v38 = vsel %vm1481_vm6, %v7680_v39, %v1429_v30 }
  0xf0   : > { %10329 = vst [vmem:[#allocation57_spill] sm:$0xff] %v7917_v38 }
  0xf2   : > { %v1451_v36 = vpop.permute.xlu1 %1450 }
  0xf3   : > { %v7876_v33 = vsel %vm1481_vm6, %v10315_v10, %v1451_v36  ;;  %v10322_v10 = vld [vmem:[#allocation29_spill] sm:$0xff] }
  0xf4   : > { %10316 = vst [vmem:[#allocation19_spill] sm:$0xff] %v7876_v33  ;;  %v7896_v5 = vsel %vm1481_vm6, %v10322_v10, %v1342_v49 }
  0xf5   : > { %2124 = vmatmul.mubr.bf16.gmra.mrb[40].mxu0 %v7848_v8  ;;  %10323 = vst [vmem:[#allocation29_spill] sm:$0xff] %v7896_v5 }
  0xf6   : > { %2131 = vmatprep.mubr.bf16.mxu0 %v7853_v62  ;;  %2253 = vmatmul.mubr.bf16.gmra.mrb[24].mxu1 %v7860_v7  ;;  %v1346_v62 = vpop.permute.xlu0 %1345  ;;  %v1455_v18 = vpop.permute.xlu1 %1454 }
  0xf7   : > { %2260 = vmatprep.mubr.bf16.mxu1 %v7832_v22 }
  0xfa   : > { %v1453_v22 = vpop.permute.xlu0 %1452  ;;  %v1459_v30 = vpop.permute.xlu1 %1458 }
  0xfd   : > { %2132 = vmatmul.mubr.bf16.gmra.mrb[44].mxu0 %v7864_v46 }
  0xfe   : > { %2139 = vmatprep.mubr.bf16.mxu0 %v7869_v35  ;;  %2261 = vmatmul.mubr.bf16.gmra.mrb[28].mxu1 %v7876_v33  ;;  %v10320_v35 = vld [vmem:[#allocation22_spill] sm:$0xff]  ;;  %v1457_v10 = vpop.permute.xlu0 %1456 }
  0xff   : > { %2268 = vmatprep.mubr.bf16.mxu1 %v7848_v8  ;;  %v7892_v36 = vsel %vm1481_vm6, %v10320_v35, %v1453_v22  ;;  %v10327_v35 = vld [vmem:[#allocation32_spill] sm:$0xff] }
 0x100   : > { %10321 = vst [vmem:[#allocation22_spill] sm:$0xff] %v7892_v36  ;;  %v7912_v49 = vsel %vm1481_vm6, %v10327_v35, %v1344_v11  ;;  %v7928_v11 = vsel %vm1481_vm6, %v7446_v42, %v1346_v62  ;;  %v10335_v62 = vld [vmem:[#allocation34_spill] sm:$0xff] }
 0x101   : > { %10328 = vst [vmem:[#allocation32_spill] sm:$0xff] %v7912_v49  ;;  %10332 = vst [vmem:[#allocation58_spill] sm:$0xff] %v7928_v11 }
 0x102   : > { %v1461_v42 = vpop.permute.xlu0 %1460 }
 0x105   : > { %2140 = vmatmul.mubr.bf16.gmra.mrb[48].mxu0 %v7880_v57 }
 0x106   : > { %2147 = vmatprep.mubr.bf16.mxu0 %v7885_v6  ;;  %2269 = vmatmul.mubr.bf16.gmra.mrb[32].mxu1 %v7892_v36  ;;  %v10325_v6 = vld [vmem:[#allocation24_spill] sm:$0xff] }
 0x107   : > { %2276 = vmatprep.mubr.bf16.mxu1 %v7864_v46  ;;  %v7908_v22 = vsel %vm1481_vm6, %v10325_v6, %v1455_v18  ;;  %v10333_v18 = vld [vmem:[#allocation30_spill] sm:$0xff] }
 0x108   : > { %10326 = vst [vmem:[#allocation24_spill] sm:$0xff] %v7908_v22  ;;  %v7937_v35 = vsel %vm1481_vm6, %v10333_v18, %v1459_v30  ;;  %v1475_v30 = vpop.permute.xlu0 %1474 }
 0x109   : > { %10334 = vst [vmem:[#allocation30_spill] sm:$0xff] %v7937_v35 }
 0x10d   : > { %2148 = vmatmul.mubr.bf16.gmra.mrb[52].mxu0 %v7896_v5 }
 0x10e   : > { %2155 = vmatprep.mubr.bf16.mxu0 %v7901_v14  ;;  %2277 = vmatmul.mubr.bf16.gmra.mrb[36].mxu1 %v7908_v22  ;;  %v10330_v14 = vld [vmem:[#allocation28_spill] sm:$0xff] }
 0x10f   : > { %2284 = vmatprep.mubr.bf16.mxu1 %v7880_v57  ;;  %v7924_v6 = vsel %vm1481_vm6, %v10330_v14, %v1457_v10  ;;  %v7947_v14 = vsel %vm1481_vm6, %v10335_v62, %v1461_v42  ;;  %v1463_v10 = vpop.permute.xlu1 %1462  ;;  %v7961_v42 = vsel %vm1481_vm6, %v7490_v15, %v1475_v30 }
 0x110   : > { %10331 = vst [vmem:[#allocation28_spill] sm:$0xff] %v7924_v6  ;;  %10336 = vst [vmem:[#allocation34_spill] sm:$0xff] %v7947_v14  ;;  %v7957_v18 = vsel %vm1481_vm6, %v7479_v52, %v1463_v10 }
 0x111   : > { %10337 = vst [vmem:[#allocation59_spill] sm:$0xff] %v7957_v18  ;;  %10338 = vst [vmem:[#allocation60_spill] sm:$0xff] %v7961_v42 }
 0x113   : > { %v1465_v62 = vpop.permute.xlu1 %1464 }
 0x114   : > { %v7973_v52 = vsel %vm1481_vm6, %v7536_v19, %v1465_v62  ;;  %v5018_v19 = vrot.slane %v7591_v58, 9 }
 0x115   : > { %2156 = vmatmul.mubr.bf16.gmra.mrb[56].mxu0 %v7912_v49  ;;  %10339 = vst [vmem:[#allocation61_spill] sm:$0xff] %v7973_v52 }
 0x116   : > { %2163 = vmatprep.mubr.bf16.mxu0 %v7917_v38  ;;  %2285 = vmatmul.mubr.bf16.gmra.mrb[40].mxu1 %v7924_v6 }
 0x117   : > { %2292 = vmatprep.mubr.bf16.mxu1 %v7896_v5  ;;  %v1467_v10 = vpop.permute.xlu1 %1466 }
 0x118   : > { %v7986_v30 = vsel %vm1481_vm6, %v7674_v28, %v1467_v10 }
 0x119   : > { %10341 = vst [vmem:[#allocation63_spill] sm:$0xff] %v7986_v30 }
 0x11d   : > { %2164 = vmatmul.mubr.bf16.gmra.mrb[60].mxu0 %v7928_v11 }
 0x11e   : > { %5859 = vmatprep.mubr.msk.bf16.mxu0 %vm1481_vm6, %v7236_v45  ;;  %2293 = vmatmul.mubr.bf16.gmra.mrb[44].mxu1 %v7937_v35 }
 0x11f   : > { %2300 = vmatprep.mubr.bf16.mxu1 %v7912_v49 }
 0x125   : > { %5860 = vmatmul.mubr.msk.bf16.vlgmr.msra.gmra.mrb[64].mxu0 %vm1481_vm6, %v7297_v43 }
 0x126   : > { %5863 = vmatprep.mubr.msk.bf16.mxu0 %vm1481_vm6, %v7335_v1  ;;  %2301 = vmatmul.mubr.bf16.gmra.mrb[48].mxu1 %v7947_v14 }
 0x127   : > { %2308 = vmatprep.mubr.bf16.mxu1 %v7928_v11 }
 0x12d   : > { %5864 = vmatmul.mubr.msk.bf16.gmra.mrb[68].mxu0 %vm1481_vm6, %v7388_v9  ;;  %v5070_v9 = vcombine.low %v7591_v58, %v7605_v3 }
 0x12e   : > { %5867 = vmatprep.mubr.msk.bf16.mxu0 %vm1481_vm6, %v7422_v27  ;;  %2309 = vmatmul.mubr.bf16.gmra.mrb[52].mxu1 %v7957_v18  ;;  %v1477_v27 = vpop.permute.xlu0 %1476 }
 0x12f   : > { %2316 = vmatprep.mubr.bf16.mxu1 %v7961_v42  ;;  %v7976_v15 = vsel %vm1481_vm6, %v5070_v9, %v1477_v27  ;;  %v1214_v9 = vrot.slane %v7605_v3, 5  ;;  %v1217_v27 = vrot.slane %v7612_v21, 5 }
 0x130   : > { %10340 = vst [vmem:[#allocation62_spill] sm:$0xff] %v7976_v15 }
 0x131   : > { %v1216_v28 = vrot.slane %v1214_v9, 4  ;;  %v1215_v62 = vsel %vm7146_vm5, %v5018_v19, %v1214_v9 }
 0x133   : > { %v1218_v10 = vsel %vm7146_vm5, %v1216_v28, %v1217_v27 }
 0x135   : > { %5868 = vmatmul.mubr.msk.bf16.gmra.mrb[72].mxu0 %vm1481_vm6, %v7481_v31 }
 0x136   : > { %5871 = vmatprep.mubr.msk.bf16.mxu0 %vm1481_vm6, %v7522_v56  ;;  %2317 = vmatmul.mubr.bf16.gmra.mrb[56].mxu1 %v7973_v52 }
 0x137   : > { %2324 = vmatprep.mubr.bf16.mxu1 %v7976_v15 }
 0x13d   : > { %5872 = vmatmul.mubr.msk.bf16.gmra.mrb[76].mxu0 %vm1481_vm6, %v7548_v16 }
 0x13e   : > { %5875 = vmatprep.mubr.msk.bf16.mxu0 %vm1481_vm6, %v7581_v61  ;;  %2325 = vmatmul.mubr.bf16.gmra.mrb[60].mxu1 %v7986_v30 }
 0x145   : > { %5876 = vmatmul.mubr.msk.bf16.gmra.mrb[80].mxu0 %vm1481_vm6, %v7607_v0 }
 0x146   : > { %5879 = vmatprep.mubr.msk.bf16.mxu0 %vm1481_vm6, %v7609_v34 }
 0x14d   : > { %5880 = vmatmul.mubr.msk.bf16.gmra.mrb[84].mxu0 %vm1481_vm6, %v7638_v54 }
 0x14e   : > { %5883 = vmatprep.mubr.msk.bf16.mxu0 %vm1481_vm6, %v7643_v17  ;;  %v8008_v17 = vcombine.low %v1215_v62, %v1218_v10 }
 0x150   : > { %10342 = vst [vmem:[#allocation64_spill] sm:$0xff] %v8008_v17 }
 0x155   : > { %5884 = vmatmul.mubr.msk.bf16.gmra.mrb[88].mxu0 %vm1481_vm6, %v7680_v39 }
 0x156   : > { %5887 = vmatprep.mubr.msk.bf16.mxu0 %vm1481_vm6, %v7692_v63 }
 0x15d   : > { %5888 = vmatmul.mubr.msk.bf16.gmra.mrb[92].mxu0 %vm1481_vm6, %v8008_v17 }
 0x178   : > { %v5235_v21 = vpop.f32.mrb[0].mxu0 }
 0x179   : > { %v5236_v58 = vpop.f32.mrb[1].mxu0 }
 0x17a   : > { %v5237_v3 = vadd.f32 %v5236_v58, %v5235_v21  ;;  %v5238_v54 = vpop.f32.mrb[2].mxu0 }
 0x17b   : > { %v5239_v34 = vpop.f32.mrb[3].mxu0 }
 0x17c   : > { %v5240_v39 = vadd.f32 %v5239_v34, %v5238_v54 }
 0x180   : > { %v5241_v0 = vpop.f32.mrb[4].mxu0 }
 0x181   : > { %v5242_v61 = vpop.f32.mrb[5].mxu0 }
 0x182   : > { %v5243_v63 = vadd.f32 %v5242_v61, %v5241_v0  ;;  %v5244_v16 = vpop.f32.mrb[6].mxu0 }
 0x183   : > { %v5245_v56 = vpop.f32.mrb[7].mxu0 }
 0x184   : > { %v5246_v9 = vadd.f32 %v5245_v56, %v5244_v16  ;;  %v8019_v56 = vld [vmem:[%s10071_s3] ss:$0 sm:$0xff] }
 0x188   : > { %v5247_v19 = vpop.f32.mrb[8].mxu0 }
 0x189   : > { %v5248_v23 = vpop.f32.mrb[9].mxu0 }
 0x18a   : > { %v5249_v27 = vadd.f32 %v5248_v23, %v5247_v19  ;;  %v5250_v28 = vpop.f32.mrb[10].mxu0 }
 0x18b   : > { %v5251_v62 = vpop.f32.mrb[11].mxu0 }
 0x18c   : > { %v5252_v10 = vadd.f32 %v5251_v62, %v5250_v28  ;;  %v2049_v62 = vadd.f32 %v5240_v39, %v8019_v56 }
 0x190   : > { %v5253_v31 = vpop.f32.mrb[12].mxu0 }
 0x191   : > { %v5254_v17 = vpop.f32.mrb[13].mxu0 }
 0x192   : > { %v5255_v1 = vadd.f32 %v5254_v17, %v5253_v31  ;;  %v5256_v43 = vpop.f32.mrb[14].mxu0  ;;  %v2046_v31 = vadd.f32 %v5237_v3, %v8019_v56 }
 0x193   : > { %v5257_v21 = vpop.f32.mrb[15].mxu0 }
 0x194   : > { %v8012_v58 = vadd.f32 %v5257_v21, %v5256_v43 }
 0x198   : > { %v5259_v34 = vpop.f32.mrb[16].mxu0  ;;  %v5347_v0 = vpop.f32.mrb[0].mxu1 }
 0x199   : > { %v5260_v54 = vpop.f32.mrb[17].mxu0  ;;  %v5348_v23 = vpop.f32.mrb[1].mxu1 }
 0x19a   : > { %v8014_v45 = vadd.f32 %v5260_v54, %v5259_v34  ;;  %v5262_v61 = vpop.f32.mrb[18].mxu0  ;;  %v5349_v17 = vadd.f32 %v5348_v23, %v5347_v0  ;;  %v5350_v43 = vpop.f32.mrb[2].mxu1  ;;  %v2054_v0 = vadd.f32 %v5243_v63, %v8019_v56 }
 0x19b   : > { %v5263_v16 = vpop.f32.mrb[19].mxu0  ;;  %v5351_v28 = vpop.f32.mrb[3].mxu1 }
 0x19c   : > { %v8021_v19 = vadd.f32 %v5263_v16, %v5262_v61  ;;  %v5352_v21 = vadd.f32 %v5351_v28, %v5350_v43  ;;  %v8025_v54 = vadd.f32 %v5349_v17, %v2046_v31  ;;  %v2057_v31 = vadd.f32 %v5246_v9, %v8019_v56 }
 0x19e   : > { %v8029_v52 = vadd.f32 %v5352_v21, %v2049_v62 }
 0x1a0   : > { %v5265_v34 = vpop.f32.mrb[20].mxu0 }
 0x1a1   : > { %v5266_v30 = vpop.f32.mrb[21].mxu0  ;;  %v5353_v42 = vpop.f32.mrb[4].mxu1 }
 0x1a2   : > { %v8027_v15 = vadd.f32 %v5266_v30, %v5265_v34  ;;  %v5268_v38 = vpop.f32.mrb[22].mxu0  ;;  %v5354_v3 = vpop.f32.mrb[5].mxu1 }
 0x1a3   : > { %v5269_v61 = vpop.f32.mrb[23].mxu0  ;;  %v5355_v23 = vadd.f32 %v5354_v3, %v5353_v42  ;;  %v5356_v18 = vpop.f32.mrb[6].mxu1  ;;  %v2062_v42 = vadd.f32 %v5249_v27, %v8019_v56 }
 0x1a4   : > { %v8031_v16 = vadd.f32 %v5269_v61, %v5268_v38  ;;  %v5357_v43 = vpop.f32.mrb[7].mxu1 }
 0x1a5   : > { %v5358_v17 = vadd.f32 %v5357_v43, %v5356_v18  ;;  %v8037_v62 = vadd.f32 %v5355_v23, %v2054_v0  ;;  %v2065_v18 = vadd.f32 %v5252_v10, %v8019_v56 }
 0x1a7   : > { %v8041_v61 = vadd.f32 %v5358_v17, %v2057_v31 }
 0x1a8   : > { %v5271_v39 = vpop.f32.mrb[24].mxu0 }
 0x1a9   : > { %v5272_v28 = vpop.f32.mrb[25].mxu0  ;;  %v5359_v11 = vpop.f32.mrb[8].mxu1 }
 0x1aa   : > { %v8035_v30 = vadd.f32 %v5272_v28, %v5271_v39  ;;  %v5274_v34 = vpop.f32.mrb[26].mxu0  ;;  %v5360_v63 = vpop.f32.mrb[9].mxu1 }
 0x1ab   : > { %v5275_v21 = vpop.f32.mrb[27].mxu0  ;;  %v5361_v3 = vadd.f32 %v5360_v63, %v5359_v11  ;;  %v5362_v14 = vpop.f32.mrb[10].mxu1  ;;  %v2070_v11 = vadd.f32 %v5255_v1, %v8019_v56 }
 0x1ac   : > { %v8039_v38 = vadd.f32 %v5275_v21, %v5274_v34  ;;  %v5363_v35 = vpop.f32.mrb[11].mxu1 }
 0x1ad   : > { %v5364_v39 = vadd.f32 %v5363_v35, %v5362_v14  ;;  %v8047_v23 = vadd.f32 %v5361_v3, %v2062_v42 }
 0x1af   : > { %v8051_v17 = vadd.f32 %v5364_v39, %v2065_v18 }
 0x1b0   : > { %v5277_v49 = vpop.f32.mrb[28].mxu0 }
 0x1b1   : > { %v5278_v9 = vpop.f32.mrb[29].mxu0  ;;  %v5365_v34 = vpop.f32.mrb[12].mxu1 }
 0x1b2   : > { %v8045_v43 = vadd.f32 %v5278_v9, %v5277_v49  ;;  %v5280_v0 = vpop.f32.mrb[30].mxu0  ;;  %v5366_v27 = vpop.f32.mrb[13].mxu1  ;;  %v2073_v49 = vadd.f32 %v8012_v58, %v8019_v56 }
 0x1b3   : > { %v5281_v28 = vpop.f32.mrb[31].mxu0  ;;  %v5367_v21 = vadd.f32 %v5366_v27, %v5365_v34  ;;  %v5368_v63 = vpop.f32.mrb[14].mxu1 }
 0x1b4   : > { %v8049_v31 = vadd.f32 %v5281_v28, %v5280_v0  ;;  %v5369_v6 = vpop.f32.mrb[15].mxu1  ;;  %v2078_v28 = vadd.f32 %v8014_v45, %v8019_v56 }
 0x1b5   : > { %v5370_v35 = vadd.f32 %v5369_v6, %v5368_v63  ;;  %v8058_v3 = vadd.f32 %v5367_v21, %v2070_v11 }
 0x1b7   : > { %v8062_v39 = vadd.f32 %v5370_v35, %v2073_v49 }
 0x1b8   : > { %v5283_v5 = vpop.f32.mrb[32].mxu0 }
 0x1b9   : > { %v5284_v10 = vpop.f32.mrb[33].mxu0  ;;  %v5371_v1 = vpop.f32.mrb[16].mxu1 }
 0x1ba   : > { %v8056_v14 = vadd.f32 %v5284_v10, %v5283_v5  ;;  %v5286_v42 = vpop.f32.mrb[34].mxu0  ;;  %v5372_v0 = vpop.f32.mrb[17].mxu1  ;;  %v2081_v5 = vadd.f32 %v8021_v19, %v8019_v56 }
 0x1bb   : > { %v5287_v9 = vpop.f32.mrb[35].mxu0  ;;  %v5373_v34 = vadd.f32 %v5372_v0, %v5371_v1  ;;  %v5374_v27 = vpop.f32.mrb[18].mxu1  ;;  %v2086_v1 = vadd.f32 %v8027_v15, %v8019_v56 }
 0x1bc   : > { %v8060_v18 = vadd.f32 %v5287_v9, %v5286_v42  ;;  %v5375_v58 = vpop.f32.mrb[19].mxu1 }
 0x1bd   : > { %v5376_v11 = vadd.f32 %v5375_v58, %v5374_v27  ;;  %v8070_v10 = vadd.f32 %v5373_v34, %v2078_v28 }
 0x1bf   : > { %v8074_v42 = vadd.f32 %v5376_v11, %v2081_v5 }
 0x1c0   : > { %v5289_v57 = vpop.f32.mrb[36].mxu0 }
 0x1c1   : > { %v5290_v6 = vpop.f32.mrb[37].mxu0  ;;  %v5377_v45 = vpop.f32.mrb[20].mxu1 }
 0x1c2   : > { %v8068_v21 = vadd.f32 %v5290_v6, %v5289_v57  ;;  %v5292_v63 = vpop.f32.mrb[38].mxu0  ;;  %v5378_v9 = vpop.f32.mrb[21].mxu1  ;;  %v2089_v57 = vadd.f32 %v8031_v16, %v8019_v56 }
 0x1c3   : > { %v5293_v49 = vpop.f32.mrb[39].mxu0  ;;  %v5379_v0 = vadd.f32 %v5378_v9, %v5377_v45  ;;  %v5380_v22 = vpop.f32.mrb[22].mxu1  ;;  %v2094_v45 = vadd.f32 %v8035_v30, %v8019_v56 }
 0x1c4   : > { %v8072_v35 = vadd.f32 %v5293_v49, %v5292_v63  ;;  %v5381_v19 = vpop.f32.mrb[23].mxu1 }
 0x1c5   : > { %v5382_v28 = vadd.f32 %v5381_v19, %v5380_v22  ;;  %v8082_v6 = vadd.f32 %v5379_v0, %v2086_v1 }
 0x1c7   : > { %v8086_v63 = vadd.f32 %v5382_v28, %v2089_v57 }
 0x1c8   : > { %v5295_v46 = vpop.f32.mrb[40].mxu0 }
 0x1c9   : > { %v5296_v27 = vpop.f32.mrb[41].mxu0  ;;  %v5383_v15 = vpop.f32.mrb[24].mxu1 }
 0x1ca   : > { %v8080_v34 = vadd.f32 %v5296_v27, %v5295_v46  ;;  %v5298_v58 = vpop.f32.mrb[42].mxu0  ;;  %v5384_v49 = vpop.f32.mrb[25].mxu1  ;;  %v2097_v46 = vadd.f32 %v8039_v38, %v8019_v56 }
 0x1cb   : > { %v5299_v5 = vpop.f32.mrb[43].mxu0  ;;  %v5385_v9 = vadd.f32 %v5384_v49, %v5383_v15  ;;  %v5386_v36 = vpop.f32.mrb[26].mxu1  ;;  %v2102_v15 = vadd.f32 %v8045_v43, %v8019_v56 }
 0x1cc   : > { %v8084_v11 = vadd.f32 %v5299_v5, %v5298_v58  ;;  %v5387_v16 = vpop.f32.mrb[27].mxu1 }
 0x1cd   : > { %v5388_v1 = vadd.f32 %v5387_v16, %v5386_v36  ;;  %v8094_v27 = vadd.f32 %v5385_v9, %v2094_v45 }
 0x1cf   : > { %v8098_v58 = vadd.f32 %v5388_v1, %v2097_v46 }
 0x1d0   : > { %v5301_v8 = vpop.f32.mrb[44].mxu0 }
 0x1d1   : > { %v5302_v22 = vpop.f32.mrb[45].mxu0  ;;  %v5389_v30 = vpop.f32.mrb[28].mxu1 }
 0x1d2   : > { %v8092_v0 = vadd.f32 %v5302_v22, %v5301_v8  ;;  %v5304_v19 = vpop.f32.mrb[46].mxu0  ;;  %v5390_v5 = vpop.f32.mrb[29].mxu1  ;;  %v2105_v8 = vadd.f32 %v8049_v31, %v8019_v56 }
 0x1d3   : > { %v5305_v57 = vpop.f32.mrb[47].mxu0  ;;  %v5391_v49 = vadd.f32 %v5390_v5, %v5389_v30  ;;  %v5392_v33 = vpop.f32.mrb[30].mxu1  ;;  %v2110_v30 = vadd.f32 %v8056_v14, %v8019_v56 }
 0x1d4   : > { %v8096_v28 = vadd.f32 %v5305_v57, %v5304_v19  ;;  %v5393_v38 = vpop.f32.mrb[31].mxu1 }
 0x1d5   : > { %v5394_v45 = vadd.f32 %v5393_v38, %v5392_v33  ;;  %v8106_v22 = vadd.f32 %v5391_v49, %v2102_v15 }
 0x1d7   : > { %v8110_v19 = vadd.f32 %v5394_v45, %v2105_v8 }
 0x1d8   : > { %v5307_v7 = vpop.f32.mrb[48].mxu0 }
 0x1d9   : > { %v5308_v36 = vpop.f32.mrb[49].mxu0  ;;  %v5395_v43 = vpop.f32.mrb[32].mxu1 }
 0x1da   : > { %v8104_v9 = vadd.f32 %v5308_v36, %v5307_v7  ;;  %v5310_v16 = vpop.f32.mrb[50].mxu0  ;;  %v5396_v57 = vpop.f32.mrb[33].mxu1  ;;  %v2113_v7 = vadd.f32 %v8060_v18, %v8019_v56 }
 0x1db   : > { %v5311_v46 = vpop.f32.mrb[51].mxu0  ;;  %v5397_v5 = vadd.f32 %v5396_v57, %v5395_v43  ;;  %v5398_v50 = vpop.f32.mrb[34].mxu1  ;;  %v2118_v43 = vadd.f32 %v8068_v21, %v8019_v56 }
 0x1dc   : > { %v8108_v1 = vadd.f32 %v5311_v46, %v5310_v16  ;;  %v5399_v31 = vpop.f32.mrb[35].mxu1 }
 0x1dd   : > { %v5400_v15 = vadd.f32 %v5399_v31, %v5398_v50  ;;  %v8118_v36 = vadd.f32 %v5397_v5, %v2110_v30 }
 0x1df   : > { %v8122_v16 = vadd.f32 %v5400_v15, %v2113_v7 }
 0x1e0   : > { %v5313_v32 = vpop.f32.mrb[52].mxu0 }
 0x1e1   : > { %v5314_v33 = vpop.f32.mrb[53].mxu0  ;;  %v5401_v14 = vpop.f32.mrb[36].mxu1 }
 0x1e2   : > { %v8116_v49 = vadd.f32 %v5314_v33, %v5313_v32  ;;  %v5316_v38 = vpop.f32.mrb[54].mxu0  ;;  %v5402_v46 = vpop.f32.mrb[37].mxu1  ;;  %v2121_v32 = vadd.f32 %v8072_v35, %v8019_v56 }
 0x1e3   : > { %v5317_v8 = vpop.f32.mrb[55].mxu0  ;;  %v5403_v57 = vadd.f32 %v5402_v46, %v5401_v14  ;;  %v5404_v60 = vpop.f32.mrb[38].mxu1  ;;  %v2126_v14 = vadd.f32 %v8080_v34, %v8019_v56 }
 0x1e4   : > { %v8120_v45 = vadd.f32 %v5317_v8, %v5316_v38  ;;  %v5405_v18 = vpop.f32.mrb[39].mxu1 }
 0x1e5   : > { %v5406_v30 = vadd.f32 %v5405_v18, %v5404_v60  ;;  %v8130_v33 = vadd.f32 %v5403_v57, %v2118_v43 }
 0x1e7   : > { %v8134_v38 = vadd.f32 %v5406_v30, %v2121_v32 }
 0x1e8   : > { %v5319_v13 = vpop.f32.mrb[56].mxu0 }
 0x1e9   : > { %v5320_v50 = vpop.f32.mrb[57].mxu0  ;;  %v5407_v21 = vpop.f32.mrb[40].mxu1 }
 0x1ea   : > { %v8128_v5 = vadd.f32 %v5320_v50, %v5319_v13  ;;  %v5322_v31 = vpop.f32.mrb[58].mxu0  ;;  %v5408_v8 = vpop.f32.mrb[41].mxu1  ;;  %v2129_v13 = vadd.f32 %v8084_v11, %v8019_v56 }
 0x1eb   : > { %v5323_v7 = vpop.f32.mrb[59].mxu0  ;;  %v5409_v46 = vadd.f32 %v5408_v8, %v5407_v21  ;;  %v5410_v24 = vpop.f32.mrb[42].mxu1  ;;  %v2134_v21 = vadd.f32 %v8092_v0, %v8019_v56 }
 0x1ec   : > { %v8132_v15 = vadd.f32 %v5323_v7, %v5322_v31  ;;  %v5411_v35 = vpop.f32.mrb[43].mxu1 }
 0x1ed   : > { %v5412_v43 = vadd.f32 %v5411_v35, %v5410_v24  ;;  %v8142_v50 = vadd.f32 %v5409_v46, %v2126_v14  ;;  %v2137_v14 = vadd.f32 %v8096_v28, %v8019_v56 }
 0x1ef   : > { %v8146_v31 = vadd.f32 %v5412_v43, %v2129_v13 }
 0x1f0   : > { %v5325_v26 = vpop.f32.mrb[60].mxu0 }
 0x1f1   : > { %v5326_v60 = vpop.f32.mrb[61].mxu0  ;;  %v5413_v34 = vpop.f32.mrb[44].mxu1 }
 0x1f2   : > { %v8140_v57 = vadd.f32 %v5326_v60, %v5325_v26  ;;  %v5328_v18 = vpop.f32.mrb[62].mxu0  ;;  %v5414_v7 = vpop.f32.mrb[45].mxu1 }
 0x1f3   : > { %v5329_v32 = vpop.f32.mrb[63].mxu0  ;;  %v5415_v8 = vadd.f32 %v5414_v7, %v5413_v34  ;;  %v5416_v41 = vpop.f32.mrb[46].mxu1 }
 0x1f4   : > { %v8144_v30 = vadd.f32 %v5329_v32, %v5328_v18  ;;  %v5417_v11 = vpop.f32.mrb[47].mxu1  ;;  %v2142_v32 = vadd.f32 %v8104_v9, %v8019_v56 }
 0x1f5   : > { %v5418_v46 = vadd.f32 %v5417_v11, %v5416_v41  ;;  %v8158_v13 = vadd.f32 %v5415_v8, %v2134_v21  ;;  %v2145_v8 = vadd.f32 %v8108_v1, %v8019_v56 }
 0x1f8   : > { %v5861_v53 = vpop.f32.mrb[64].mxu0 }
 0x1f9   : > { %v8151_v24 = vadd.f32 %v5861_v53, %v8037_v62  ;;  %v2367_v26 = vpop.f32.mrb[65].mxu0  ;;  %v8166_v53 = vadd.f32 %v5418_v46, %v2137_v14  ;;  %v5419_v62 = vpop.f32.mrb[48].mxu1 }
 0x1fa   : > { %v8156_v35 = vadd.f32 %v2367_v26, %v8025_v54  ;;  %v5862_v60 = vpop.f32.mrb[66].mxu0  ;;  %v5420_v54 = vpop.f32.mrb[49].mxu1 }
 0x1fb   : > { %v8161_v0 = vadd.f32 %v5862_v60, %v8041_v61  ;;  %v2370_v43 = vpop.f32.mrb[67].mxu0  ;;  %v5421_v34 = vadd.f32 %v5420_v54, %v5419_v62  ;;  %v5422_v61 = vpop.f32.mrb[50].mxu1  ;;  %v2496_v46 = vmul.f32 %v8151_v24, %v8151_v24 }
 0x1fc   : > { %v8164_v18 = vadd.f32 %v2370_v43, %v8029_v52  ;;  %v2494_v28 = vmul.f32 %v8156_v35, %v8156_v35  ;;  %v5423_v11 = vpop.f32.mrb[51].mxu1 }
 0x1fd   : > { %v2497_v7 = vmul.f32 %v8161_v0, %v8161_v0  ;;  %v5424_v60 = vadd.f32 %v5423_v11, %v5422_v61  ;;  %v8187_v62 = vadd.f32 %v5421_v34, %v2142_v32  ;;  %v2153_v11 = vadd.f32 %v8120_v45, %v8019_v56 }
 0x1fe   : > { %v2495_v41 = vmul.f32 %v8164_v18, %v8164_v18 }
 0x1ff   : > { %v8195_v54 = vadd.f32 %v5424_v60, %v2145_v8 }
 0x200   : > { %v5865_v52 = vpop.f32.mrb[68].mxu0  ;;  %v6306_v21 = vpack.i.bf16 %v2495_v41, %v2494_v28  ;;  %v6321_v41 = vpack.i.bf16 %v2497_v7, %v2496_v46 }
 0x201   : > { %v8179_v26 = vadd.f32 %v5865_v52, %v8058_v3  ;;  %v2383_v14 = vpop.f32.mrb[69].mxu0  ;;  %v5425_v52 = vpop.f32.mrb[52].mxu1 }
 0x202   : > { %v8184_v9 = vadd.f32 %v2383_v14, %v8047_v23  ;;  %v5866_v43 = vpop.f32.mrb[70].mxu0  ;;  %6307 = vrot.lane.b32.xlu1 %v6306_v21, %s6647_s28  ;;  %v5426_v32 = vpop.f32.mrb[53].mxu1 }
 0x203   : > { %v8190_v28 = vadd.f32 %v5866_v43, %v8062_v39  ;;  %v2386_v1 = vpop.f32.mrb[71].mxu0  ;;  %v2150_v39 = vadd.f32 %v8116_v49, %v8019_v56  ;;  %v5427_v34 = vadd.f32 %v5426_v32, %v5425_v52  ;;  %v5428_v7 = vpop.f32.mrb[54].mxu1  ;;  %v2500_v43 = vmul.f32 %v8179_v26, %v8179_v26 }
 0x204   : > { %v8193_v3 = vadd.f32 %v2386_v1, %v8051_v17  ;;  %v2498_v23 = vmul.f32 %v8184_v9, %v8184_v9  ;;  %v5429_v14 = vpop.f32.mrb[55].mxu1 }
 0x205   : > { %v2501_v17 = vmul.f32 %v8190_v28, %v8190_v28  ;;  %v5430_v1 = vadd.f32 %v5429_v14, %v5428_v7  ;;  %v8217_v52 = vadd.f32 %v5427_v34, %v2150_v39  ;;  %v2161_v14 = vadd.f32 %v8132_v15, %v8019_v56 }
 0x206   : > { %v2499_v61 = vmul.f32 %v8193_v3, %v8193_v3  ;;  %6322 = vrot.lane.b32.xlu1 %v6321_v41, %s6647_s28 }
 0x207   : > { %v8225_v32 = vadd.f32 %v5430_v1, %v2153_v11 }
 0x208   : > { %v5869_v21 = vpop.f32.mrb[72].mxu0  ;;  %v6326_v8 = vpack.i.bf16 %v2499_v61, %v2498_v23  ;;  %v6341_v61 = vpack.i.bf16 %v2501_v17, %v2500_v43 }
 0x209   : > { %v8209_v46 = vadd.f32 %v5869_v21, %v8082_v6  ;;  %v2399_v60 = vpop.f32.mrb[73].mxu0  ;;  %v5431_v21 = vpop.f32.mrb[56].mxu1 }
 0x20a   : > { %v8214_v49 = vadd.f32 %v2399_v60, %v8070_v10  ;;  %v5870_v41 = vpop.f32.mrb[74].mxu0  ;;  %6327 = vrot.lane.b32.xlu1 %v6326_v8, %s6647_s28  ;;  %v5432_v39 = vpop.f32.mrb[57].mxu1 }
 0x20b   : > { %v8220_v23 = vadd.f32 %v5870_v41, %v8086_v63  ;;  %v2402_v45 = vpop.f32.mrb[75].mxu0  ;;  %v2158_v63 = vadd.f32 %v8128_v5, %v8019_v56  ;;  %v5433_v34 = vadd.f32 %v5432_v39, %v5431_v21  ;;  %v5434_v17 = vpop.f32.mrb[58].mxu1  ;;  %v2504_v41 = vmul.f32 %v8209_v46, %v8209_v46 }
 0x20c   : > { %v8223_v6 = vadd.f32 %v2402_v45, %v8074_v42  ;;  %v2502_v10 = vmul.f32 %v8214_v49, %v8214_v49  ;;  %v5435_v60 = vpop.f32.mrb[59].mxu1 }
 0x20d   : > { %v2505_v42 = vmul.f32 %v8220_v23, %v8220_v23  ;;  %v5436_v45 = vadd.f32 %v5435_v60, %v5434_v17  ;;  %v8247_v21 = vadd.f32 %v5433_v34, %v2158_v63  ;;  %v2169_v60 = vadd.f32 %v8144_v30, %v8019_v56 }
 0x20e   : > { %v2503_v7 = vmul.f32 %v8223_v6, %v8223_v6  ;;  %6342 = vrot.lane.b32.xlu1 %v6341_v61, %s6647_s28 }
 0x20f   : > { %v8255_v39 = vadd.f32 %v5436_v45, %v2161_v14 }
 0x210   : > { %v5873_v8 = vpop.f32.mrb[76].mxu0  ;;  %v6346_v11 = vpack.i.bf16 %v2503_v7, %v2502_v10  ;;  %v6361_v7 = vpack.i.bf16 %v2505_v42, %v2504_v41 }
 0x211   : > { %v8239_v43 = vadd.f32 %v5873_v8, %v8106_v22  ;;  %v2415_v1 = vpop.f32.mrb[77].mxu0  ;;  %v5437_v8 = vpop.f32.mrb[60].mxu1 }
 0x212   : > { %v8244_v5 = vadd.f32 %v2415_v1, %v8094_v27  ;;  %v5874_v61 = vpop.f32.mrb[78].mxu0  ;;  %6347 = vrot.lane.b32.xlu1 %v6346_v11, %s6647_s28  ;;  %v5438_v63 = vpop.f32.mrb[61].mxu1 }
 0x213   : > { %v8250_v10 = vadd.f32 %v5874_v61, %v8110_v19  ;;  %v2418_v15 = vpop.f32.mrb[79].mxu0  ;;  %v2166_v19 = vadd.f32 %v8140_v57, %v8019_v56  ;;  %v5439_v34 = vadd.f32 %v5438_v63, %v5437_v8  ;;  %v5440_v42 = vpop.f32.mrb[62].mxu1  ;;  %v2508_v61 = vmul.f32 %v8239_v43, %v8239_v43 }
 0x214   : > { %v8253_v22 = vadd.f32 %v2418_v15, %v8098_v58  ;;  %v2506_v27 = vmul.f32 %v8244_v5, %v8244_v5  ;;  %v5441_v1 = vpop.f32.mrb[63].mxu1 }
 0x215   : > { %v2509_v58 = vmul.f32 %v8250_v10, %v8250_v10  ;;  %v5442_v15 = vadd.f32 %v5441_v1, %v5440_v42  ;;  %v2327_v8 = vadd.f32 %v5439_v34, %v2166_v19 }
 0x216   : > { %v2507_v17 = vmul.f32 %v8253_v22, %v8253_v22  ;;  %6362 = vrot.lane.b32.xlu1 %v6361_v7, %s6647_s28 }
 0x218   : > { %v5877_v11 = vpop.f32.mrb[80].mxu0  ;;  %v6366_v14 = vpack.i.bf16 %v2507_v17, %v2506_v27  ;;  %v2330_v17 = vadd.f32 %v5442_v15, %v2169_v60 }
 0x219   : > { %v8269_v41 = vadd.f32 %v5877_v11, %v8130_v33  ;;  %v2431_v45 = vpop.f32.mrb[81].mxu0  ;;  %v6381_v33 = vpack.i.bf16 %v2509_v58, %v2508_v61 }
 0x21a   : > { %v8274_v57 = vadd.f32 %v2431_v45, %v8118_v36  ;;  %v5878_v7 = vpop.f32.mrb[82].mxu0  ;;  %6367 = vrot.lane.b32.xlu1 %v6366_v14, %s6647_s28 }
 0x21b   : > { %v8278_v27 = vadd.f32 %v5878_v7, %v8134_v38  ;;  %v2434_v56 = vpop.f32.mrb[83].mxu0  ;;  %v2512_v58 = vmul.f32 %v8269_v41, %v8269_v41 }
 0x21c   : > { %v8281_v30 = vadd.f32 %v2434_v56, %v8122_v16  ;;  %v2510_v63 = vmul.f32 %v8274_v57, %v8274_v57 }
 0x21d   : > { %v2513_v19 = vmul.f32 %v8278_v27, %v8278_v27 }
 0x21e   : > { %v2511_v36 = vmul.f32 %v8281_v30, %v8281_v30  ;;  %6382 = vrot.lane.b32.xlu1 %v6381_v33, %s6647_s28 }
 0x21f   : > { %v6316_v61 = vpack.i.bf16 %v2513_v19, %v2512_v58 }
 0x220   : > { %v5881_v34 = vpop.f32.mrb[84].mxu0  ;;  %v6311_v38 = vpack.i.bf16 %v2511_v36, %v2510_v63 }
 0x221   : > { %v8291_v42 = vadd.f32 %v5881_v34, %v8158_v13  ;;  %v2447_v16 = vpop.f32.mrb[85].mxu0 }
 0x222   : > { %v8296_v11 = vadd.f32 %v2447_v16, %v8142_v50  ;;  %v5882_v14 = vpop.f32.mrb[86].mxu0  ;;  %6312 = vrot.lane.b32.xlu0 %v6311_v38, %s6647_s28 }
 0x223   : > { %v8300_v60 = vadd.f32 %v5882_v14, %v8166_v53  ;;  %v2450_v1 = vpop.f32.mrb[87].mxu0 }
 0x224   : > { %v8303_v45 = vadd.f32 %v2450_v1, %v8146_v31  ;;  %v2514_v13 = vmul.f32 %v8296_v11, %v8296_v11  ;;  %v2516_v31 = vmul.f32 %v8291_v42, %v8291_v42 }
 0x225   : > { %v2517_v50 = vmul.f32 %v8300_v60, %v8300_v60 }
 0x226   : > { %v2515_v15 = vmul.f32 %v8303_v45, %v8303_v45  ;;  %6317 = vrot.lane.b32.xlu0 %v6316_v61, %s6647_s28 }
 0x227   : > { %v6336_v16 = vpack.i.bf16 %v2517_v50, %v2516_v31 }
 0x228   : > { %v5885_v7 = vpop.f32.mrb[88].mxu0  ;;  %v6331_v56 = vpack.i.bf16 %v2515_v15, %v2514_v13 }
 0x229   : > { %v8313_v53 = vadd.f32 %v5885_v7, %v8217_v52  ;;  %v2463_v33 = vpop.f32.mrb[89].mxu0 }
 0x22a   : > { %v8318_v63 = vadd.f32 %v2463_v33, %v8187_v62  ;;  %v5886_v36 = vpop.f32.mrb[90].mxu0  ;;  %6332 = vrot.lane.b32.xlu0 %v6331_v56, %s6647_s28 }
 0x22b   : > { %v8322_v19 = vadd.f32 %v5886_v36, %v8225_v32  ;;  %v2466_v34 = vpop.f32.mrb[91].mxu0 }
 0x22c   : > { %v8325_v38 = vadd.f32 %v2466_v34, %v8195_v54  ;;  %v2518_v52 = vmul.f32 %v8318_v63, %v8318_v63  ;;  %v2520_v54 = vmul.f32 %v8313_v53, %v8313_v53  ;;  %v10172_v34 = vmov 1.0  }
 0x22d   : > { %v2521_v62 = vmul.f32 %v8322_v19, %v8322_v19  ;;  %2750 = vmatprep.mubr.f32.mxu1 %v10172_v34 }
 0x22e   : > { %v2519_v58 = vmul.f32 %v8325_v38, %v8325_v38  ;;  %6337 = vrot.lane.b32.xlu0 %v6336_v16, %s6647_s28 }
 0x22f   : > { %v6356_v33 = vpack.i.bf16 %v2521_v62, %v2520_v54 }
 0x230   : > { %v5889_v14 = vpop.f32.mrb[92].mxu0  ;;  %v6351_v1 = vpack.i.bf16 %v2519_v58, %v2518_v52 }
 0x231   : > { %v8334_v32 = vadd.f32 %v5889_v14, %v2327_v8  ;;  %v2479_v61 = vpop.f32.mrb[93].mxu0 }
 0x232   : > { %v8339_v13 = vadd.f32 %v2479_v61, %v8247_v21  ;;  %v5890_v15 = vpop.f32.mrb[94].mxu0  ;;  %6352 = vrot.lane.b32.xlu0 %v6351_v1, %s6647_s28 }
 0x233   : > { %v8342_v50 = vadd.f32 %v5890_v15, %v2330_v17  ;;  %v2482_v7 = vpop.f32.mrb[95].mxu0 }
 0x234   : > { %v8345_v56 = vadd.f32 %v2482_v7, %v8255_v39  ;;  %v2522_v8 = vmul.f32 %v8339_v13, %v8339_v13  ;;  %v2524_v39 = vmul.f32 %v8334_v32, %v8334_v32 }
 0x235   : > { %v2525_v21 = vmul.f32 %v8342_v50, %v8342_v50 }
 0x236   : > { %v2523_v31 = vmul.f32 %v8345_v56, %v8345_v56  ;;  %6357 = vrot.lane.b32.xlu0 %v6356_v33, %s6647_s28 }
 0x237   : > { %v6376_v17 = vpack.i.bf16 %v2525_v21, %v2524_v39 }
 0x238   : > { %v6371_v36 = vpack.i.bf16 %v2523_v31, %v2522_v8 }
 0x23a   : > { %6372 = vrot.lane.b32.xlu0 %v6371_v36, %s6647_s28 }
 0x23e   : > { %6377 = vrot.lane.b32.xlu0 %v6376_v17, %s6647_s28 }
 0x274   : > { %v6308_v16 = vpop.permute.xlu1 %6307 }
 0x275   : > { %v6310_v62 = vunpack.i.h.bf16 %v6308_v16  ;;  %v6309_v14 = vunpack.i.l.bf16 %v6308_v16 }
 0x277   : > { %v2655_v7 = vsel %vm1481_vm6, %v8164_v18, %v6310_v62  ;;  %v2654_v33 = vsel %vm1481_vm6, %v8156_v35, %v6309_v14 }
 0x278   : > { %v6323_v52 = vpop.permute.xlu1 %6322  ;;  %v6067_v16 = vpack.c.bf16 %v2655_v7, %v2654_v33 }
 0x279   : > { %v6325_v8 = vunpack.i.h.bf16 %v6323_v52  ;;  %v6324_v31 = vunpack.i.l.bf16 %v6323_v52 }
 0x27b   : > { %v2657_v62 = vsel %vm1481_vm6, %v8161_v0, %v6325_v8  ;;  %v2656_v14 = vsel %vm1481_vm6, %v8151_v24, %v6324_v31 }
 0x27c   : > { %v6328_v58 = vpop.permute.xlu1 %6327 }
 0x27d   : > { %v6330_v47 = vunpack.i.h.bf16 %v6328_v58  ;;  %v6329_v52 = vunpack.i.l.bf16 %v6328_v58 }
 0x27f   : > { %v2659_v8 = vsel %vm1481_vm6, %v8193_v3, %v6330_v47  ;;  %v2658_v31 = vsel %vm1481_vm6, %v8184_v9, %v6329_v52 }
 0x280   : > { %v6343_v1 = vpop.permute.xlu1 %6342 }
 0x281   : > { %v6345_v58 = vunpack.i.h.bf16 %v6343_v1 }
 0x283   : > { %v2661_v47 = vsel %vm1481_vm6, %v8190_v28, %v6345_v58 }
 0x284   : > { %v6348_v34 = vpop.permute.xlu1 %6347 }
 0x285   : > { %v6350_v52 = vunpack.i.h.bf16 %v6348_v34 }
 0x287   : > { %v2663_v58 = vsel %vm1481_vm6, %v8223_v6, %v6350_v52 }
 0x294   : > { %v6313_v61 = vpop.permute.xlu0 %6312 }
 0x295   : > { %v6315_v54 = vunpack.i.h.bf16 %v6313_v61  ;;  %v6314_v15 = vunpack.i.l.bf16 %v6313_v61 }
 0x297   : > { %v2670_v21 = vsel %vm1481_vm6, %v8274_v57, %v6314_v15  ;;  %v2671_v36 = vsel %vm1481_vm6, %v8281_v30, %v6315_v54 }
 0x298   : > { %v6318_v39 = vpop.permute.xlu0 %6317  ;;  %v6065_v17 = vpack.c.bf16 %v2671_v36, %v2670_v21  ;;  %v6071_v21 = vpack.c.bf16 %v2657_v62, %v2656_v14 }
 0x299   : > { %v6320_v25 = vunpack.i.h.bf16 %v6318_v39  ;;  %v6319_v61 = vunpack.i.l.bf16 %v6318_v39 }
 0x29a   : > { %6066 = vmatprep.subr.bf16.mxu1 %v6065_v17  ;;  %v6344_v17 = vunpack.i.l.bf16 %v6343_v1 }
 0x29b   : > { %6068 = vmatpush3.bf16.msra.mxu1 %v6067_v16  ;;  %v2672_v15 = vsel %vm1481_vm6, %v8269_v41, %v6319_v61  ;;  %v2673_v54 = vsel %vm1481_vm6, %v8278_v27, %v6320_v25  ;;  %v6363_v16 = vpop.permute.xlu1 %6362 }
 0x29c   : > { %v6333_v7 = vpop.permute.xlu0 %6332  ;;  %v6069_v33 = vpack.c.bf16 %v2673_v54, %v2672_v15  ;;  %v6075_v15 = vpack.c.bf16 %v2659_v8, %v2658_v31  ;;  %v2660_v1 = vsel %vm1481_vm6, %v8179_v26, %v6344_v17  ;;  %v6365_v17 = vunpack.i.h.bf16 %v6363_v16 }
 0x29d   : > { %v6335_v36 = vunpack.i.h.bf16 %v6333_v7  ;;  %v6334_v39 = vunpack.i.l.bf16 %v6333_v7  ;;  %v6079_v31 = vpack.c.bf16 %v2661_v47, %v2660_v1 }
 0x29e   : > { %6070 = vmatprep.subr.bf16.mxu1 %v6069_v33  ;;  %v6349_v33 = vunpack.i.l.bf16 %v6348_v34  ;;  %v2665_v52 = vsel %vm1481_vm6, %v8220_v23, %v6365_v17 }
 0x29f   : > { %6072 = vmatpush3.bf16.msra.mxu1 %v6071_v21  ;;  %v2674_v61 = vsel %vm1481_vm6, %v8296_v11, %v6334_v39  ;;  %v2675_v25 = vsel %vm1481_vm6, %v8303_v45, %v6335_v36 }
 0x2a0   : > { %v6338_v62 = vpop.permute.xlu0 %6337  ;;  %v6073_v14 = vpack.c.bf16 %v2675_v25, %v2674_v61  ;;  %v6368_v61 = vpop.permute.xlu1 %6367  ;;  %v2662_v34 = vsel %vm1481_vm6, %v8214_v49, %v6349_v33 }
 0x2a1   : > { %v6340_v54 = vunpack.i.h.bf16 %v6338_v62  ;;  %v6339_v7 = vunpack.i.l.bf16 %v6338_v62  ;;  %v6083_v1 = vpack.c.bf16 %v2663_v58, %v2662_v34 }
 0x2a2   : > { %6074 = vmatprep.subr.bf16.mxu1 %v6073_v14  ;;  %v6364_v14 = vunpack.i.l.bf16 %v6363_v16  ;;  %v6370_v16 = vunpack.i.h.bf16 %v6368_v61 }
 0x2a3   : > { %6076 = vmatpush3.bf16.msra.mxu1 %v6075_v15  ;;  %v2676_v21 = vsel %vm1481_vm6, %v8291_v42, %v6339_v7  ;;  %v2677_v36 = vsel %vm1481_vm6, %v8300_v60, %v6340_v54 }
 0x2a4   : > { %v6353_v39 = vpop.permute.xlu0 %6352  ;;  %v6077_v8 = vpack.c.bf16 %v2677_v36, %v2676_v21  ;;  %v2664_v33 = vsel %vm1481_vm6, %v8209_v46, %v6364_v14  ;;  %v2667_v17 = vsel %vm1481_vm6, %v8253_v22, %v6370_v16 }
 0x2a5   : > { %v6355_v25 = vunpack.i.h.bf16 %v6353_v39  ;;  %v6354_v62 = vunpack.i.l.bf16 %v6353_v39  ;;  %v6369_v39 = vunpack.i.l.bf16 %v6368_v61  ;;  %v6087_v34 = vpack.c.bf16 %v2665_v52, %v2664_v33 }
 0x2a6   : > { %6078 = vmatprep.subr.bf16.mxu1 %v6077_v8  ;;  %v6383_v8 = vpop.permute.xlu1 %6382 }
 0x2a7   : > { %6080 = vmatpush3.bf16.msra.mxu1 %v6079_v31  ;;  %v2678_v15 = vsel %vm1481_vm6, %v8318_v63, %v6354_v62  ;;  %v2679_v54 = vsel %vm1481_vm6, %v8325_v38, %v6355_v25  ;;  %v2666_v61 = vsel %vm1481_vm6, %v8244_v5, %v6369_v39  ;;  %v6385_v14 = vunpack.i.h.bf16 %v6383_v8 }
 0x2a8   : > { %v6358_v7 = vpop.permute.xlu0 %6357  ;;  %v6081_v47 = vpack.c.bf16 %v2679_v54, %v2678_v15  ;;  %v6091_v52 = vpack.c.bf16 %v2667_v17, %v2666_v61 }
 0x2a9   : > { %v6360_v21 = vunpack.i.h.bf16 %v6358_v7  ;;  %v6359_v36 = vunpack.i.l.bf16 %v6358_v7  ;;  %v6384_v7 = vunpack.i.l.bf16 %v6383_v8  ;;  %v2669_v16 = vsel %vm1481_vm6, %v8250_v10, %v6385_v14 }
 0x2aa   : > { %6082 = vmatprep.subr.bf16.mxu1 %v6081_v47 }
 0x2ab   : > { %6084 = vmatpush3.bf16.msra.mxu1 %v6083_v1  ;;  %v2680_v31 = vsel %vm1481_vm6, %v8313_v53, %v6359_v36  ;;  %v2681_v25 = vsel %vm1481_vm6, %v8322_v19, %v6360_v21  ;;  %v2668_v39 = vsel %vm1481_vm6, %v8239_v43, %v6384_v7  ;;  %v3023_v7 = vld [vmem:[%s10075_s7] sm:$0xff] }
 0x2ac   : > { %v6373_v62 = vpop.permute.xlu0 %6372  ;;  %v6085_v58 = vpack.c.bf16 %v2681_v25, %v2680_v31 }
 0x2ad   : > { %v6375_v15 = vunpack.i.h.bf16 %v6373_v62  ;;  %v6374_v54 = vunpack.i.l.bf16 %v6373_v62 }
 0x2ae   : > { %6086 = vmatprep.subr.bf16.mxu1 %v6085_v58  ;;  %v6095_v58 = vpack.c.bf16 %v2669_v16, %v2668_v39 }
 0x2af   : > { %6088 = vmatpush3.bf16.msra.mxu1 %v6087_v34  ;;  %v2682_v47 = vsel %vm1481_vm6, %v8339_v13, %v6374_v54  ;;  %v2683_v1 = vsel %vm1481_vm6, %v8345_v56, %v6375_v15  ;;  %v10343_v34 = vmov 1.0  }
 0x2b0   : > { %v6378_v21 = vpop.permute.xlu0 %6377  ;;  %v6089_v36 = vpack.c.bf16 %v2683_v1, %v2682_v47  ;;  %v3024_v47 = vld [vmem:[%s10075_s7 + $0x8] sm:$0xff]  ;;  %v3025_v1 = vld [vmem:[%s10075_s7 + $0x10] sm:$0xff] }
 0x2b1   : > { %v6380_v33 = vunpack.i.h.bf16 %v6378_v21  ;;  %v6379_v31 = vunpack.i.l.bf16 %v6378_v21  ;;  %v3026_v21 = vld [vmem:[%s10075_s7 + $0x18] sm:$0xff] }
 0x2b2   : > { %6090 = vmatprep.subr.bf16.mxu1 %v6089_v36  ;;  %v6097_v36 = vpack.c.bf16 %v3024_v47, %v3023_v7 }
 0x2b3   : > { %6092 = vmatpush3.bf16.msra.mxu1 %v6091_v52  ;;  %v2684_v8 = vsel %vm1481_vm6, %v8334_v32, %v6379_v31  ;;  %v2685_v25 = vsel %vm1481_vm6, %v8342_v50, %v6380_v33  ;;  %v6101_v52 = vpack.c.bf16 %v3026_v21, %v3025_v1 }
 0x2b4   : > { %v6093_v62 = vpack.c.bf16 %v2685_v25, %v2684_v8  ;;  %v3027_v8 = vld [vmem:[%s10075_s7 + $0x20] sm:$0xff]  ;;  %v3028_v25 = vld [vmem:[%s10075_s7 + $0x28] sm:$0xff] }
 0x2b6   : > { %6094 = vmatprep.subr.bf16.mxu1 %v6093_v62  ;;  %v3029_v62 = vld [vmem:[%s10075_s7 + $0x30] sm:$0xff] }
 0x2b7   : > { %6096 = vmatpush3.bf16.msra.mxu1 %v6095_v58  ;;  %v6105_v58 = vpack.c.bf16 %v3028_v25, %v3027_v8 }
 0x2b8   : > { %6098 = vmatprep.subr.bf16.mxu1 %v6097_v36 }
 0x2ba   : > { %2751 = vmatmul.mubr.f32.vlgmr.msra.gmra.mrb[64].mxu1 %v10343_v34 }
 0x2bb   : > { %6100 = vmatpush3.bf16.msra.mxu1 %v6097_v36 }
 0x2bc   : > { %6102 = vmatprep.subr.bf16.mxu1 %v6101_v52 }
 0x2bf   : > { %6104 = vmatpush3.bf16.msra.mxu1 %v6101_v52 }
 0x2c0   : > { %6106 = vmatprep.subr.bf16.mxu1 %v6105_v58 }
 0x2c3   : > { %6108 = vmatpush3.bf16.msra.mxu1 %v6105_v58 }
 0x38d   : > { %v5495_v15 = vpop.f32.mrb[64].mxu1 }
 0x38e   : > { %v5496_v54 = vpop.f32.mrb[65].mxu1 }
 0x38f   : > { %v5497_v17 = vadd.f32 %v5496_v54, %v5495_v15  ;;  %v3030_v15 = vld [vmem:[%s10075_s7 + $0x38] sm:$0xff]  ;;  %v2764_v54 = vlaneseq }
 0x391   : > { %v2756_v61 = vmul.f32 0.00390625, %v5497_v17  ;;  %v6109_v17 = vpack.c.bf16 %v3030_v15, %v3029_v62 }
 0x393   : > { %v2757_v14 = vmul.f32 %v2756_v61, %v2756_v61  ;;  %6110 = vmatprep.subr.bf16.mxu1 %v6109_v17 }
 0x394   : > { %6112 = vmatpush3.bf16.msra.mxu1 %v6109_v17 }
 0x395   : > { %2759 = vrot.lane.b32.xlu0 %v2757_v14, %s6647_s28  ;;  %v8449_v14 = vshrl.u32 %v2764_v54, 7 }
 0x397   : > { %v8452_v7 = vsub.s32 0, %v8449_v14 }
 0x399   : > { %v8457_v21 = vrot.slane %v2756_v61, %v8452_v7 }
 0x39b   : > { %v2768_v36 = vsub.f32 %v8156_v35, %v8457_v21  ;;  %v2769_v52 = vsub.f32 %v8164_v18, %v8457_v21  ;;  %v8478_v35 = vld [vmem:[%s10072_s4] ss:$0 sm:$0xff] }
 0x407   : > { %v2760_v33 = vpop.permute.xlu0 %2759 }
 0x408   : > { %v2762_v31 = vsub.f32 %v2756_v61, %v2760_v33  ;;  %v2770_v33 = vsub.f32 %v8151_v24, %v8457_v21  ;;  %v2774_v61 = vsub.f32 %v8179_v26, %v8457_v21  ;;  %v8489_v26 = vld [vmem:[%s10073_s5] ss:$0 sm:$0xff] }
 0x40a   : > { %v2763_v16 = vmax.f32 %v2762_v31, 0.0  ;;  %v2771_v31 = vsub.f32 %v8161_v0, %v8457_v21 }
 0x40c   : > { %v2800_v39 = vadd.f32 1e-05, %v2763_v16  ;;  %v2772_v16 = vsub.f32 %v8184_v9, %v8457_v21 }
 0x40e   : > { %6440 = vrsqrt.f32 %v2800_v39  ;;  %v2773_v39 = vsub.f32 %v8193_v3, %v8457_v21  ;;  %v2775_v3 = vsub.f32 %v8190_v28, %v8457_v21  ;;  %v8501_v28 = vld [vmem:[%s10074_s6] ss:$0 sm:$0xff] }
 0x418   : > { %v6441_v47 = vpop.eup %6440 }
 0x419   : > { %v2805_v1 = vrot.slane %v6441_v47, %v8452_v7 }
 0x41b   : > { %2807 = vrot.lane.b32.xlu1 %v2805_v1, %s6647_s28 }
 0x48d   : > { %v8473_v8 = vpop.permute.xlu1 %2807 }
 0x48e   : > { %v2810_v24 = vmul.f32 %v8473_v8, %v2768_v36  ;;  %v2811_v0 = vmul.f32 %v8473_v8, %v2769_v52  ;;  %v2812_v18 = vmul.f32 %v8473_v8, %v2770_v33  ;;  %v2813_v9 = vmul.f32 %v8473_v8, %v2771_v31 }
 0x48f   : > { %v2814_v25 = vmul.f32 %v8473_v8, %v2772_v16  ;;  %v2815_v62 = vmul.f32 %v8473_v8, %v2773_v39  ;;  %v2816_v58 = vmul.f32 %v8473_v8, %v2774_v61  ;;  %v2817_v36 = vmul.f32 %v8473_v8, %v2775_v3 }
 0x490   : > { %v2849_v15 = vmul.f32 %v8478_v35, %v2810_v24  ;;  %v2850_v54 = vmul.f32 %v8478_v35, %v2811_v0  ;;  %v2851_v17 = vmul.f32 %v8478_v35, %v2812_v18  ;;  %v2852_v47 = vmul.f32 %v8478_v35, %v2813_v9 }
 0x491   : > { %v2853_v1 = vmul.f32 %v8478_v35, %v2814_v25  ;;  %v2854_v61 = vmul.f32 %v8478_v35, %v2815_v62  ;;  %v2855_v24 = vmul.f32 %v8478_v35, %v2816_v58  ;;  %v2776_v9 = vsub.f32 %v8214_v49, %v8457_v21 }
 0x492   : > { %v2888_v52 = vadd.f32 %v8489_v26, %v2849_v15  ;;  %v2889_v33 = vadd.f32 %v8489_v26, %v2850_v54  ;;  %v2890_v31 = vadd.f32 %v8489_v26, %v2851_v17  ;;  %v2891_v16 = vadd.f32 %v8489_v26, %v2852_v47 }
 0x493   : > { %v2892_v39 = vadd.f32 %v8489_v26, %v2853_v1  ;;  %v2777_v3 = vsub.f32 %v8223_v6, %v8457_v21  ;;  %v2856_v58 = vmul.f32 %v8478_v35, %v2817_v36  ;;  %v2778_v17 = vsub.f32 %v8209_v46, %v8457_v21 }
 0x494   : > { %vm2920_vm7 = vcmp.ge.f32.partialorder %v2888_v52, 0.0  ;;  %v2959_v0 = vmul.f32 %v8501_v28, %v2888_v52  ;;  %vm2921_vm8 = vcmp.ge.f32.partialorder %v2889_v33, 0.0  ;;  %v2960_v18 = vmul.f32 %v8501_v28, %v2889_v33 }
 0x495   : > { %vm2922_vm9 = vcmp.ge.f32.partialorder %v2890_v31, 0.0  ;;  %v2961_v25 = vmul.f32 %v8501_v28, %v2890_v31  ;;  %v2962_v62 = vmul.f32 %v8501_v28, %v2891_v16  ;;  %v2779_v47 = vsub.f32 %v8220_v23, %v8457_v21 }
 0x496   : > { %v2991_v15 = vsel %vm2920_vm7, %v2888_v52, %v2959_v0  ;;  %v2992_v54 = vsel %vm2921_vm8, %v2889_v33, %v2960_v18  ;;  %vm2923_vm10 = vcmp.ge.f32.partialorder %v2891_v16, 0.0  ;;  %v2893_v49 = vadd.f32 %v8489_v26, %v2854_v61 }
 0x497   : > { %5907 = vmatprep.mubr.msk.f32.mxu1 %vm1481_vm6, %v2991_v15  ;;  %v2780_v6 = vsub.f32 %v8244_v5, %v8457_v21  ;;  %v2993_v1 = vsel %vm2922_vm9, %v2890_v31, %v2961_v25  ;;  %v2963_v52 = vmul.f32 %v8501_v28, %v2892_v39  ;;  %v2894_v36 = vadd.f32 %v8489_v26, %v2855_v24 }
 0x498   : > { %5908 = vmatmul.mubr.msk.f32.vlgmr.msra.gmra.mrb[66].mxu1 %vm1481_vm6, %v2992_v54  ;;  %v2781_v46 = vsub.f32 %v8253_v22, %v8457_v21  ;;  %vm2924_vm11 = vcmp.ge.f32.partialorder %v2892_v39, 0.0  ;;  %v2818_v23 = vmul.f32 %v8473_v8, %v2776_v9  ;;  %v2819_v33 = vmul.f32 %v8473_v8, %v2777_v3 }
 0x499   : > { %5910 = vmatprep.mubr.msk.f32.mxu1 %vm1481_vm6, %v2993_v1  ;;  %v2994_v61 = vsel %vm2923_vm10, %v2891_v16, %v2962_v62  ;;  %v2895_v5 = vadd.f32 %v8489_v26, %v2856_v58  ;;  %v2820_v0 = vmul.f32 %v8473_v8, %v2778_v17  ;;  %v2821_v31 = vmul.f32 %v8473_v8, %v2779_v47 }
 0x49a   : > { %v2964_v18 = vmul.f32 %v8501_v28, %v2893_v49  ;;  %v2857_v24 = vmul.f32 %v8478_v35, %v2818_v23  ;;  %v2858_v22 = vmul.f32 %v8478_v35, %v2819_v33  ;;  %v2822_v25 = vmul.f32 %v8473_v8, %v2780_v6 }
 0x49b   : > { %v2995_v9 = vsel %vm2924_vm11, %v2892_v39, %v2963_v52  ;;  %vm2925_vm12 = vcmp.ge.f32.partialorder %v2893_v49, 0.0  ;;  %v2965_v16 = vmul.f32 %v8501_v28, %v2894_v36  ;;  %v2859_v3 = vmul.f32 %v8478_v35, %v2820_v0 }
 0x49c   : > { %5911 = vmatmul.mubr.msk.f32.gmra.mrb[68].mxu1 %vm1481_vm6, %v2994_v61  ;;  %v2782_v15 = vsub.f32 %v8239_v43, %v8457_v21  ;;  %vm2926_vm13 = vcmp.ge.f32.partialorder %v2894_v36, 0.0  ;;  %v2896_v54 = vadd.f32 %v8489_v26, %v2857_v24  ;;  %vm2927_vm14 = vcmp.ge.f32.partialorder %v2895_v5, 0.0 }
 0x49d   : > { %5913 = vmatprep.mubr.msk.f32.mxu1 %vm1481_vm6, %v2995_v9  ;;  %v2966_v62 = vmul.f32 %v8501_v28, %v2895_v5  ;;  %v2860_v58 = vmul.f32 %v8478_v35, %v2821_v31  ;;  %v2823_v39 = vmul.f32 %v8473_v8, %v2781_v46  ;;  %v2996_v17 = vsel %vm2925_vm12, %v2893_v49, %v2964_v18 }
 0x49e   : > { %v2897_v47 = vadd.f32 %v8489_v26, %v2858_v22  ;;  %v2861_v6 = vmul.f32 %v8478_v35, %v2822_v25  ;;  %v2824_v1 = vmul.f32 %v8473_v8, %v2782_v15  ;;  %v2997_v43 = vsel %vm2926_vm13, %v2894_v36, %v2965_v16 }
 0x49f   : > { %v2967_v52 = vmul.f32 %v8501_v28, %v2896_v54  ;;  %v2898_v23 = vadd.f32 %v8489_v26, %v2859_v3  ;;  %v2783_v33 = vsub.f32 %v8250_v10, %v8457_v21  ;;  %v2784_v46 = vsub.f32 %v8274_v57, %v8457_v21 }
 0x4a0   : > { %5914 = vmatmul.mubr.msk.f32.gmra.mrb[70].mxu1 %vm1481_vm6, %v2996_v17  ;;  %vm2928_vm15 = vcmp.ge.f32.partialorder %v2896_v54, 0.0  ;;  %v2785_v49 = vsub.f32 %v8281_v30, %v8457_v21  ;;  %v2998_v61 = vsel %vm2927_vm14, %v2895_v5, %v2966_v62  ;;  %v2899_v36 = vadd.f32 %v8489_v26, %v2860_v58 }
 0x4a1   : > { %5916 = vmatprep.mubr.msk.f32.mxu1 %vm1481_vm6, %v2997_v43  ;;  %v2862_v0 = vmul.f32 %v8478_v35, %v2823_v39  ;;  %v2968_v31 = vmul.f32 %v8501_v28, %v2897_v47  ;;  %v2900_v18 = vadd.f32 %v8489_v26, %v2861_v6  ;;  %v2863_v10 = vmul.f32 %v8478_v35, %v2824_v1 }
 0x4a2   : > { %v2825_v57 = vmul.f32 %v8473_v8, %v2783_v33  ;;  %v2999_v24 = vsel %vm2928_vm15, %v2896_v54, %v2967_v52  ;;  %vm2929_vm0 = vcmp.ge.f32.partialorder %v2897_v47, 0.0  ;;  %v2969_v30 = vmul.f32 %v8501_v28, %v2898_v23 }
 0x4a3   : > { %v2826_v5 = vmul.f32 %v8473_v8, %v2784_v46  ;;  %vm2930_vm1 = vcmp.ge.f32.partialorder %v2898_v23, 0.0  ;;  %v2786_v22 = vsub.f32 %v8269_v41, %v8457_v21  ;;  %v2970_v25 = vmul.f32 %v8501_v28, %v2899_v36 }
 0x4a4   : > { %5917 = vmatmul.mubr.msk.f32.gmra.mrb[72].mxu1 %vm1481_vm6, %v2998_v61  ;;  %v2901_v9 = vadd.f32 %v8489_v26, %v2862_v0  ;;  %v2827_v16 = vmul.f32 %v8473_v8, %v2785_v49  ;;  %v3000_v3 = vsel %vm2929_vm0, %v2897_v47, %v2968_v31  ;;  %vm2931_vm2 = vcmp.ge.f32.partialorder %v2899_v36, 0.0 }
 0x4a5   : > { %5919 = vmatprep.mubr.msk.f32.mxu1 %vm1481_vm6, %v2999_v24  ;;  %v2902_v15 = vadd.f32 %v8489_v26, %v2863_v10  ;;  %v2864_v54 = vmul.f32 %v8478_v35, %v2825_v57  ;;  %v3001_v62 = vsel %vm2930_vm1, %v2898_v23, %v2969_v30  ;;  %v2971_v58 = vmul.f32 %v8501_v28, %v2900_v18 }
 0x4a6   : > { %v2865_v39 = vmul.f32 %v8478_v35, %v2826_v5  ;;  %v2828_v41 = vmul.f32 %v8473_v8, %v2786_v22  ;;  %v2787_v17 = vsub.f32 %v8278_v27, %v8457_v21  ;;  %v2788_v47 = vsub.f32 %v8296_v11, %v8457_v21 }
 0x4a7   : > { %v2789_v6 = vsub.f32 %v8303_v45, %v8457_v21  ;;  %vm2932_vm3 = vcmp.ge.f32.partialorder %v2900_v18, 0.0  ;;  %v3002_v1 = vsel %vm2931_vm2, %v2899_v36, %v2970_v25  ;;  %vm2933_vm4 = vcmp.ge.f32.partialorder %v2901_v9, 0.0 }
 0x4a8   : > { %5920 = vmatmul.mubr.msk.f32.gmra.mrb[74].mxu1 %vm1481_vm6, %v3000_v3  ;;  %v2972_v43 = vmul.f32 %v8501_v28, %v2901_v9  ;;  %v2866_v52 = vmul.f32 %v8478_v35, %v2827_v16  ;;  %v2973_v23 = vmul.f32 %v8501_v28, %v2902_v15  ;;  %v2903_v33 = vadd.f32 %v8489_v26, %v2864_v54 }
 0x4a9   : > { %5922 = vmatprep.mubr.msk.f32.mxu1 %vm1481_vm6, %v3001_v62  ;;  %v2829_v27 = vmul.f32 %v8473_v8, %v2787_v17  ;;  %v2830_v11 = vmul.f32 %v8473_v8, %v2788_v47  ;;  %v3003_v45 = vsel %vm2932_vm3, %v2900_v18, %v2971_v58  ;;  %vm2934_vm5 = vcmp.ge.f32.partialorder %v2902_v15, 0.0 }
 0x4aa   : > { %v2904_v46 = vadd.f32 %v8489_v26, %v2865_v39  ;;  %v2867_v49 = vmul.f32 %v8478_v35, %v2828_v41  ;;  %v2790_v61 = vsub.f32 %v8291_v42, %v8457_v21  ;;  %v2791_v36 = vsub.f32 %v8300_v60, %v8457_v21 }
 0x4ab   : > { %v3004_v0 = vsel %vm2933_vm4, %v2901_v9, %v2972_v43  ;;  %v2905_v31 = vadd.f32 %v8489_v26, %v2866_v52  ;;  %v2831_v10 = vmul.f32 %v8473_v8, %v2789_v6  ;;  %v3005_v57 = vsel %vm2934_vm5, %v2902_v15, %v2973_v23 }
 0x4ac   : > { %5923 = vmatmul.mubr.msk.f32.gmra.mrb[76].mxu1 %vm1481_vm6, %v3002_v1  ;;  %v2974_v18 = vmul.f32 %v8501_v28, %v2903_v33  ;;  %v2868_v24 = vmul.f32 %v8478_v35, %v2829_v27  ;;  %v2869_v30 = vmul.f32 %v8478_v35, %v2830_v11  ;;  %vm2935_vm7 = vcmp.ge.f32.partialorder %v2903_v33, 0.0 }
 0x4ad   : > { %5925 = vmatprep.mubr.msk.f32.mxu1 %vm1481_vm6, %v3003_v45  ;;  %v2975_v42 = vmul.f32 %v8501_v28, %v2904_v46  ;;  %v2906_v5 = vadd.f32 %v8489_v26, %v2867_v49  ;;  %v2832_v60 = vmul.f32 %v8473_v8, %v2790_v61  ;;  %vm2936_vm8 = vcmp.ge.f32.partialorder %v2904_v46, 0.0 }
 0x4ae   : > { %v2792_v22 = vsub.f32 %v8318_v63, %v8457_v21  ;;  %v2976_v25 = vmul.f32 %v8501_v28, %v2905_v31  ;;  %v2870_v9 = vmul.f32 %v8478_v35, %v2831_v10  ;;  %v2833_v16 = vmul.f32 %v8473_v8, %v2791_v36 }
 0x4af   : > { %v3006_v3 = vsel %vm2935_vm7, %v2903_v33, %v2974_v18  ;;  %vm2937_vm9 = vcmp.ge.f32.partialorder %v2905_v31, 0.0  ;;  %v2907_v15 = vadd.f32 %v8489_v26, %v2868_v24  ;;  %v2908_v54 = vadd.f32 %v8489_v26, %v2869_v30 }
 0x4b0   : > { %5926 = vmatmul.mubr.msk.f32.gmra.mrb[78].mxu1 %vm1481_vm6, %v3004_v0  ;;  %v3007_v62 = vsel %vm2936_vm8, %v2904_v46, %v2975_v42  ;;  %v2977_v58 = vmul.f32 %v8501_v28, %v2906_v5  ;;  %v2871_v39 = vmul.f32 %v8478_v35, %v2832_v60  ;;  %v2834_v63 = vmul.f32 %v8473_v8, %v2792_v22 }
 0x4b1   : > { %5928 = vmatprep.mubr.msk.f32.mxu1 %vm1481_vm6, %v3005_v57  ;;  %v2793_v41 = vsub.f32 %v8325_v38, %v8457_v21  ;;  %v2794_v17 = vsub.f32 %v8313_v53, %v8457_v21  ;;  %vm2938_vm10 = vcmp.ge.f32.partialorder %v2906_v5, 0.0  ;;  %v2795_v47 = vsub.f32 %v8322_v19, %v8457_v21 }
 0x4b2   : > { %v3008_v6 = vsel %vm2937_vm9, %v2905_v31, %v2976_v25  ;;  %v2909_v1 = vadd.f32 %v8489_v26, %v2870_v9  ;;  %v2872_v43 = vmul.f32 %v8478_v35, %v2833_v16  ;;  %vm2939_vm11 = vcmp.ge.f32.partialorder %v2907_v15, 0.0 }
 0x4b3   : > { %v2978_v52 = vmul.f32 %v8501_v28, %v2907_v15  ;;  %v2979_v23 = vmul.f32 %v8501_v28, %v2908_v54  ;;  %v2835_v38 = vmul.f32 %v8473_v8, %v2793_v41  ;;  %v3009_v53 = vsel %vm2938_vm10, %v2906_v5, %v2977_v58 }
 0x4b4   : > { %5929 = vmatmul.mubr.msk.f32.gmra.mrb[80].mxu1 %vm1481_vm6, %v3006_v3  ;;  %v2910_v33 = vadd.f32 %v8489_v26, %v2871_v39  ;;  %v2873_v27 = vmul.f32 %v8478_v35, %v2834_v63  ;;  %v2836_v19 = vmul.f32 %v8473_v8, %v2794_v17  ;;  %v2796_v11 = vsub.f32 %v8339_v13, %v8457_v21 }
 0x4b5   : > { %5931 = vmatprep.mubr.msk.f32.mxu1 %vm1481_vm6, %v3007_v62  ;;  %vm2940_vm12 = vcmp.ge.f32.partialorder %v2908_v54, 0.0  ;;  %v2980_v45 = vmul.f32 %v8501_v28, %v2909_v1  ;;  %v2911_v46 = vadd.f32 %v8489_v26, %v2872_v43  ;;  %v2837_v49 = vmul.f32 %v8473_v8, %v2795_v47 }
 0x4b6   : > { %v3010_v61 = vsel %vm2939_vm11, %v2907_v15, %v2978_v52  ;;  %vm2941_vm13 = vcmp.ge.f32.partialorder %v2909_v1, 0.0  ;;  %v2874_v36 = vmul.f32 %v8478_v35, %v2835_v38  ;;  %v2838_v0 = vmul.f32 %v8473_v8, %v2796_v11 }
 0x4b7   : > { %v3011_v31 = vsel %vm2940_vm12, %v2908_v54, %v2979_v23  ;;  %v2981_v13 = vmul.f32 %v8501_v28, %v2910_v33  ;;  %v2912_v10 = vadd.f32 %v8489_v26, %v2873_v27  ;;  %v2875_v57 = vmul.f32 %v8478_v35, %v2836_v19 }
 0x4b8   : > { %5932 = vmatmul.mubr.msk.f32.gmra.mrb[82].mxu1 %vm1481_vm6, %v3008_v6  ;;  %v2797_v18 = vsub.f32 %v8345_v56, %v8457_v21  ;;  %vm2942_vm14 = vcmp.ge.f32.partialorder %v2910_v33, 0.0  ;;  %v2798_v24 = vsub.f32 %v8334_v32, %v8457_v21  ;;  %v3012_v30 = vsel %vm2941_vm13, %v2909_v1, %v2980_v45  ;;  %v594_v45 = vld [vmem:[%s538_s18] sm:$0x3]  ;;  %s9910_s18 = scalar_lea.vmem [#allocation3], %s9835_s0 }
 0x4b9   : > { %5934 = vmatprep.mubr.msk.f32.mxu1 %vm1481_vm6, %v3009_v53  ;;  %v2982_v42 = vmul.f32 %v8501_v28, %v2911_v46  ;;  %v2876_v5 = vmul.f32 %v8478_v35, %v2837_v49  ;;  %vm2943_vm15 = vcmp.ge.f32.partialorder %v2911_v46, 0.0  ;;  %v2913_v60 = vadd.f32 %v8489_v26, %v2874_v36  ;;  %s4919_s28 = sshll.u32 %s9910_s18, 4  ;;  %s9987_s28 = int_to_ptr.vmem [resolvable:$true] %s4919_s28 }
 0x4ba   : > { %v2877_v22 = vmul.f32 %v8478_v35, %v2838_v0  ;;  %v2839_v25 = vmul.f32 %v8473_v8, %v2797_v18  ;;  %v3013_v56 = vsel %vm2942_vm14, %v2910_v33, %v2981_v13  ;;  %v2983_v9 = vmul.f32 %v8501_v28, %v2912_v10  ;;  %s6583_s22 = scalar_lea.vmem %s9987_s28, 4096  ;;  %p6590_p0 = scmp.lt.s32.totalorder %s9987_s28, %s6588_s23 }
 0x4bb   : > { %v2914_v16 = vadd.f32 %v8489_v26, %v2875_v57  ;;  %v2840_v32 = vmul.f32 %v8473_v8, %v2798_v24  ;;  %v2799_v3 = vsub.f32 %v8342_v50, %v8457_v21  ;;  %vm2944_vm0 = vcmp.ge.f32.partialorder %v2912_v10, 0.0  ;;  %p6584_p11 = scmp.ne.s32.totalorder %s9987_s28, %s6583_s22  ;;  %p6591_p1 = scmp.lt.s32.totalorder %s6589_s25, %s6583_s22 }
 0x4bc   : > { %5935 = vmatmul.mubr.msk.f32.gmra.mrb[84].mxu1 %vm1481_vm6, %v3010_v61  ;;  %v3014_v15 = vsel %vm2943_vm15, %v2911_v46, %v2982_v42  ;;  %v2915_v54 = vadd.f32 %v8489_v26, %v2876_v5  ;;  %v2984_v62 = vmul.f32 %v8501_v28, %v2913_v60  ;;  %v2916_v58 = vadd.f32 %v8489_v26, %v2877_v22 }
 0x4bd   : > { %5937 = vmatprep.mubr.msk.f32.mxu1 %vm1481_vm6, %v3011_v31  ;;  %v2878_v39 = vmul.f32 %v8478_v35, %v2839_v25  ;;  %v2841_v63 = vmul.f32 %v8473_v8, %v2799_v3  ;;  %v3015_v41 = vsel %vm2944_vm0, %v2912_v10, %v2983_v9  ;;  %vm2945_vm1 = vcmp.ge.f32.partialorder %v2913_v60, 0.0  ;;  %p6585_p12 = pnand %p6584_p11, %p6781_p5  ;;  %p6592_p2 = por %p6591_p1, %p6590_p0 }
 0x4be   : > { %v2985_v50 = vmul.f32 %v8501_v28, %v2914_v16  ;;  %v2879_v21 = vmul.f32 %v8478_v35, %v2840_v32  ;;  %vm2946_vm2 = vcmp.ge.f32.partialorder %v2914_v16, 0.0  ;;  %v3016_v17 = vsel %vm2945_vm1, %v2913_v60, %v2984_v62 }
 0x4bf   : > { %v2986_v47 = vmul.f32 %v8501_v28, %v2915_v54  ;;  %v2917_v6 = vadd.f32 %v8489_v26, %v2878_v39  ;;  %v2880_v1 = vmul.f32 %v8478_v35, %v2841_v63  ;;  %vm2947_vm3 = vcmp.ge.f32.partialorder %v2915_v54, 0.0  ;;  %p6586_p13 = pneg %p6585_p12 }
 0x4c0   : > { %5938 = vmatmul.mubr.msk.f32.gmra.mrb[86].mxu1 %vm1481_vm6, %v3012_v30  ;;  %v3017_v8 = vsel %vm2946_vm2, %v2914_v16, %v2985_v50  ;;  %v2987_v43 = vmul.f32 %v8501_v28, %v2916_v58  ;;  %v2918_v52 = vadd.f32 %v8489_v26, %v2879_v21  ;;  %vm2948_vm4 = vcmp.ge.f32.partialorder %v2916_v58, 0.0 }
 0x4c1   : > { %5940 = vmatprep.mubr.msk.f32.mxu1 %vm1481_vm6, %v3013_v56  ;;  %v3018_v23 = vsel %vm2947_vm3, %v2915_v54, %v2986_v47  ;;  %v2988_v38 = vmul.f32 %v8501_v28, %v2917_v6  ;;  %v2919_v53 = vadd.f32 %v8489_v26, %v2880_v1  ;;  %vm2949_vm5 = vcmp.ge.f32.partialorder %v2917_v6, 0.0  ;;  %p6593_p3 = pnand %p6592_p2, %p6586_p13 }
 0x4c2   : > { %v3019_v35 = vsel %vm2948_vm4, %v2916_v58, %v2987_v43  ;;  %v2989_v33 = vmul.f32 %v8501_v28, %v2918_v52  ;;  %vm2950_vm7 = vcmp.ge.f32.partialorder %v2918_v52, 0.0  ;;  %v5000_v46 = vmul.f32 -1.442695, %v594_v45 }
 0x4c3   : > { %v3020_v27 = vsel %vm2949_vm5, %v2917_v6, %v2988_v38  ;;  %v2990_v19 = vmul.f32 %v8501_v28, %v2919_v53  ;;  %vm2951_vm8 = vcmp.ge.f32.partialorder %v2919_v53, 0.0  ;;  %v3558_v61 = vsub.s32 1, %v8449_v14 }
 0x4c4   : > { %5941 = vmatmul.mubr.msk.f32.gmra.mrb[88].mxu1 %vm1481_vm6, %v3014_v15  ;;  %v3021_v11 = vsel %vm2950_vm7, %v2918_v52, %v2989_v33  ;;  %6442 = vpow2.f32 %v5000_v46  ;;  %vm3633_vm9 = vcmask 57344   ;;  %vm3665_vm10 = vcmask 64512  }
 0x4c5   : > { %5943 = vmatprep.mubr.msk.f32.mxu1 %vm1481_vm6, %v3015_v41  ;;  %v3022_v26 = vsel %vm2951_vm8, %v2919_v53, %v2990_v19 }
 0x4c8   : > { %5944 = vmatmul.mubr.msk.f32.gmra.mrb[90].mxu1 %vm1481_vm6, %v3016_v17 }
 0x4c9   : > { %5946 = vmatprep.mubr.msk.f32.mxu1 %vm1481_vm6, %v3017_v8 }
 0x4cc   : > { %5947 = vmatmul.mubr.msk.f32.gmra.mrb[92].mxu1 %vm1481_vm6, %v3018_v23 }
 0x4cd   : > { %5949 = vmatprep.mubr.msk.f32.mxu1 %vm1481_vm6, %v3019_v35 }
 0x4ce   : > { %v6443_v28 = vpop.eup %6442 }
 0x4cf   : > { %v598_v49 = vadd.f32 1.0, %v6443_v28 }
 0x4d0   : > { %5950 = vmatmul.mubr.msk.f32.gmra.mrb[94].mxu1 %vm1481_vm6, %v3020_v27 }
 0x4d1   : > { %5952 = vmatprep.mubr.msk.f32.mxu1 %vm1481_vm6, %v3021_v11  ;;  %6444 = vrcp.f32 %v598_v49 }
 0x4d4   : > { %5953 = vmatmul.mubr.msk.f32.gmra.mrb[96].mxu1 %vm1481_vm6, %v3022_v26 }
 0x4d5   : > { %3909 = vmatprep.mubr.bf16.mxu1 %v7695_v51  ;;  %v8713_v51 = vld [vmem:[%s10076_s8] ss:$0 sm:$0xff] }
 0x4db   : > { %v8707_v36 = vpop.eup %6444 }
 0x4dc   : > { %v3559_v0 = vrot.slane %v8707_v36, %v3558_v61 }
 0x4de   : > { %3626 = vmatprep.mubr.f32.mxu0 %v3559_v0 }
 0x56b   : > { %v5909_v31 = vpop.f32.mrb[66].mxu1 }
 0x56c   : > { %v3206_v13 = vadd.f32 %v5909_v31, %v8713_v51  ;;  %v3200_v10 = vpop.f32.mrb[67].mxu1 }
 0x56d   : > { %v3201_v57 = vadd.f32 %v8713_v51, %v3200_v10 }
 0x56e   : > { %v5163_v18 = vmul.f32 -1.442695, %v3206_v13 }
 0x56f   : > { %v5162_v24 = vmul.f32 -1.442695, %v3201_v57  ;;  %v5912_v30 = vpop.f32.mrb[68].mxu1 }
 0x570   : > { %6446 = vpow2.f32 %v5163_v18  ;;  %v3216_v14 = vadd.f32 %v5912_v30, %v8713_v51  ;;  %v3210_v42 = vpop.f32.mrb[69].mxu1 }
 0x571   : > { %6448 = vpow2.f32 %v5162_v24  ;;  %v3211_v5 = vadd.f32 %v8713_v51, %v3210_v42 }
 0x572   : > { %v5165_v60 = vmul.f32 -1.442695, %v3216_v14 }
 0x573   : > { %v5164_v22 = vmul.f32 -1.442695, %v3211_v5  ;;  %v5915_v25 = vpop.f32.mrb[70].mxu1 }
 0x574   : > { %6450 = vpow2.f32 %v5165_v60  ;;  %v3226_v56 = vadd.f32 %v5915_v25, %v8713_v51  ;;  %v3220_v9 = vpop.f32.mrb[71].mxu1 }
 0x575   : > { %6452 = vpow2.f32 %v5164_v22  ;;  %v3221_v16 = vadd.f32 %v8713_v51, %v3220_v9 }
 0x576   : > { %v5167_v32 = vmul.f32 -1.442695, %v3226_v56 }
 0x577   : > { %v5166_v3 = vmul.f32 -1.442695, %v3221_v16  ;;  %v5918_v15 = vpop.f32.mrb[72].mxu1 }
 0x578   : > { %6454 = vpow2.f32 %v5167_v32  ;;  %v3236_v54 = vadd.f32 %v5918_v15, %v8713_v51  ;;  %v3230_v62 = vpop.f32.mrb[73].mxu1 }
 0x579   : > { %6456 = vpow2.f32 %v5166_v3  ;;  %v3231_v58 = vadd.f32 %v8713_v51, %v3230_v62 }
 0x57a   : > { %v6447_v39 = vpop.eup %6446  ;;  %v5169_v63 = vmul.f32 -1.442695, %v3236_v54 }
 0x57b   : > { %v6449_v41 = vpop.eup %6448  ;;  %v3456_v50 = vadd.f32 1.0, %v6447_v39  ;;  %v5168_v21 = vmul.f32 -1.442695, %v3231_v58  ;;  %v5921_v17 = vpop.f32.mrb[74].mxu1 }
 0x57c   : > { %v3455_v47 = vadd.f32 1.0, %v6449_v41  ;;  %6458 = vpow2.f32 %v5169_v63  ;;  %v3246_v6 = vadd.f32 %v5921_v17, %v8713_v51  ;;  %v3240_v1 = vpop.f32.mrb[75].mxu1 }
 0x57d   : > { %6460 = vrcp.f32 %v3456_v50  ;;  %v3241_v8 = vadd.f32 %v8713_v51, %v3240_v1 }
 0x57e   : > { %v6451_v43 = vpop.eup %6450  ;;  %6462 = vrcp.f32 %v3455_v47  ;;  %v5171_v52 = vmul.f32 -1.442695, %v3246_v6 }
 0x57f   : > { %v6453_v23 = vpop.eup %6452  ;;  %v3458_v38 = vadd.f32 1.0, %v6451_v43  ;;  %6464 = vpow2.f32 %v5168_v21  ;;  %v5170_v53 = vmul.f32 -1.442695, %v3241_v8  ;;  %v5924_v35 = vpop.f32.mrb[76].mxu1 }
 0x580   : > { %v3457_v33 = vadd.f32 1.0, %v6453_v23  ;;  %6466 = vpow2.f32 %v5171_v52  ;;  %v3256_v27 = vadd.f32 %v5924_v35, %v8713_v51  ;;  %v3250_v19 = vpop.f32.mrb[77].mxu1 }
 0x581   : > { %6468 = vrcp.f32 %v3458_v38  ;;  %v3251_v11 = vadd.f32 %v8713_v51, %v3250_v19 }
 0x582   : > { %v6455_v26 = vpop.eup %6454  ;;  %6470 = vrcp.f32 %v3457_v33  ;;  %v5173_v45 = vmul.f32 -1.442695, %v3256_v27 }
 0x583   : > { %v6457_v46 = vpop.eup %6456  ;;  %v3460_v28 = vadd.f32 1.0, %v6455_v26  ;;  %6472 = vpow2.f32 %v5170_v53  ;;  %v5172_v49 = vmul.f32 -1.442695, %v3251_v11  ;;  %v5927_v61 = vpop.f32.mrb[78].mxu1 }
 0x584   : > { %v3459_v0 = vadd.f32 1.0, %v6457_v46  ;;  %6474 = vpow2.f32 %v5173_v45  ;;  %v3266_v31 = vadd.f32 %v5927_v61, %v8713_v51  ;;  %v3260_v13 = vpop.f32.mrb[79].mxu1 }
 0x585   : > { %6476 = vrcp.f32 %v3460_v28  ;;  %v3261_v10 = vadd.f32 %v8713_v51, %v3260_v13 }
 0x586   : > { %v6459_v57 = vpop.eup %6458  ;;  %6478 = vrcp.f32 %v3459_v0  ;;  %v5175_v18 = vmul.f32 -1.442695, %v3266_v31 }
 0x587   : > { %v8729_v24 = vpop.eup %6460  ;;  %v3462_v30 = vadd.f32 1.0, %v6459_v57  ;;  %6480 = vpow2.f32 %v5172_v49  ;;  %v5174_v14 = vmul.f32 -1.442695, %v3261_v10  ;;  %v5930_v42 = vpop.f32.mrb[80].mxu1 }
 0x588   : > { %v8731_v5 = vpop.eup %6462  ;;  %6482 = vpow2.f32 %v5175_v18  ;;  %v3276_v60 = vadd.f32 %v5930_v42, %v8713_v51  ;;  %v3270_v22 = vpop.f32.mrb[81].mxu1 }
 0x589   : > { %v6465_v25 = vpop.eup %6464  ;;  %6484 = vrcp.f32 %v3462_v30  ;;  %v3271_v56 = vadd.f32 %v8713_v51, %v3270_v22  ;;  %v6115_v9 = vpack.c.bf16 %v8729_v24, %v8731_v5 }
 0x58a   : > { %v6467_v16 = vpop.eup %6466  ;;  %v3461_v32 = vadd.f32 1.0, %v6465_v25  ;;  %6486 = vpow2.f32 %v5174_v14  ;;  %v5177_v3 = vmul.f32 -1.442695, %v3276_v60 }
 0x58b   : > { %v8737_v15 = vpop.eup %6468  ;;  %v3464_v54 = vadd.f32 1.0, %v6467_v16  ;;  %v5176_v62 = vmul.f32 -1.442695, %v3271_v56  ;;  %v5933_v58 = vpop.f32.mrb[82].mxu1 }
 0x58c   : > { %v8739_v39 = vpop.eup %6470  ;;  %6488 = vrcp.f32 %v3461_v32  ;;  %v3286_v63 = vadd.f32 %v5933_v58, %v8713_v51  ;;  %v3280_v41 = vpop.f32.mrb[83].mxu1 }
 0x58d   : > { %v6473_v50 = vpop.eup %6472  ;;  %6490 = vrcp.f32 %v3464_v54  ;;  %v3281_v21 = vadd.f32 %v8713_v51, %v3280_v41  ;;  %v6119_v17 = vpack.c.bf16 %v8737_v15, %v8739_v39 }
 0x58e   : > { %v6475_v47 = vpop.eup %6474  ;;  %v3463_v6 = vadd.f32 1.0, %v6473_v50  ;;  %6492 = vpow2.f32 %v5177_v3  ;;  %v5179_v1 = vmul.f32 -1.442695, %v3286_v63 }
 0x58f   : > { %v8745_v8 = vpop.eup %6476  ;;  %v3466_v43 = vadd.f32 1.0, %v6475_v47  ;;  %6494 = vpow2.f32 %v5176_v62  ;;  %v5178_v52 = vmul.f32 -1.442695, %v3281_v21  ;;  %v5936_v23 = vpop.f32.mrb[84].mxu1 }
 0x590   : > { %v8747_v38 = vpop.eup %6478  ;;  %6496 = vrcp.f32 %v3463_v6  ;;  %v3296_v53 = vadd.f32 %v5936_v23, %v8713_v51  ;;  %v3290_v35 = vpop.f32.mrb[85].mxu1 }
 0x591   : > { %v6481_v33 = vpop.eup %6480  ;;  %6498 = vrcp.f32 %v3466_v43  ;;  %v3291_v27 = vadd.f32 %v8713_v51, %v3290_v35  ;;  %v6123_v19 = vpack.c.bf16 %v8745_v8, %v8747_v38 }
 0x592   : > { %v6483_v11 = vpop.eup %6482  ;;  %v3465_v26 = vadd.f32 1.0, %v6481_v33  ;;  %6500 = vpow2.f32 %v5179_v1  ;;  %v5181_v45 = vmul.f32 -1.442695, %v3296_v53 }
 0x593   : > { %v8753_v46 = vpop.eup %6484  ;;  %v3468_v28 = vadd.f32 1.0, %v6483_v11  ;;  %6502 = vpow2.f32 %v5178_v52  ;;  %v5939_v49 = vpop.f32.mrb[86].mxu1  ;;  %v5180_v0 = vmul.f32 -1.442695, %v3291_v27 }
 0x594   : > { %v6487_v61 = vpop.eup %6486  ;;  %6504 = vrcp.f32 %v3465_v26  ;;  %v3306_v31 = vadd.f32 %v5939_v49, %v8713_v51  ;;  %v3300_v13 = vpop.f32.mrb[87].mxu1 }
 0x595   : > { %6506 = vrcp.f32 %v3468_v28  ;;  %v3467_v10 = vadd.f32 1.0, %v6487_v61  ;;  %v3301_v57 = vadd.f32 %v8713_v51, %v3300_v13 }
 0x596   : > { %v8757_v18 = vpop.eup %6488  ;;  %6508 = vpow2.f32 %v5181_v45  ;;  %v5183_v30 = vmul.f32 -1.442695, %v3306_v31 }
 0x597   : > { %v8759_v14 = vpop.eup %6490  ;;  %6510 = vrcp.f32 %v3467_v10  ;;  %v5182_v42 = vmul.f32 -1.442695, %v3301_v57  ;;  %v5942_v60 = vpop.f32.mrb[88].mxu1  ;;  %v6127_v22 = vpack.c.bf16 %v8753_v46, %v8757_v18 }
 0x598   : > { %v6493_v25 = vpop.eup %6492  ;;  %6512 = vpow2.f32 %v5180_v0  ;;  %v3316_v56 = vadd.f32 %v5942_v60, %v8713_v51  ;;  %v3310_v16 = vpop.f32.mrb[89].mxu1 }
 0x599   : > { %v6495_v32 = vpop.eup %6494  ;;  %v3470_v3 = vadd.f32 1.0, %v6493_v25  ;;  %6514 = vpow2.f32 %v5183_v30  ;;  %v3311_v54 = vadd.f32 %v8713_v51, %v3310_v16 }
 0x59a   : > { %v8765_v62 = vpop.eup %6496  ;;  %v3469_v58 = vadd.f32 1.0, %v6495_v32  ;;  %6516 = vpow2.f32 %v5182_v42  ;;  %v5185_v63 = vmul.f32 -1.442695, %v3316_v56 }
 0x59b   : > { %v8767_v41 = vpop.eup %6498  ;;  %6518 = vrcp.f32 %v3470_v3  ;;  %v5184_v50 = vmul.f32 -1.442695, %v3311_v54  ;;  %v5945_v21 = vpop.f32.mrb[90].mxu1  ;;  %v6131_v47 = vpack.c.bf16 %v8759_v14, %v8765_v62  ;;  %v3555_v14 = vrot.slane %v8707_v36, %v8452_v7 }
 0x59c   : > { %v6501_v6 = vpop.eup %6500  ;;  %6520 = vrcp.f32 %v3469_v58  ;;  %v3326_v1 = vadd.f32 %v5945_v21, %v8713_v51  ;;  %v3320_v43 = vpop.f32.mrb[91].mxu1 }
 0x59d   : > { %v6503_v52 = vpop.eup %6502  ;;  %v3472_v23 = vadd.f32 1.0, %v6501_v6  ;;  %6522 = vpow2.f32 %v5185_v63  ;;  %v3321_v53 = vadd.f32 %v8713_v51, %v3320_v43 }
 0x59e   : > { %v8773_v35 = vpop.eup %6504  ;;  %v3471_v33 = vadd.f32 1.0, %v6503_v52  ;;  %6524 = vpow2.f32 %v5184_v50  ;;  %v5187_v27 = vmul.f32 -1.442695, %v3326_v1 }
 0x59f   : > { %v8775_v11 = vpop.eup %6506  ;;  %6526 = vrcp.f32 %v3472_v23  ;;  %v5186_v26 = vmul.f32 -1.442695, %v3321_v53  ;;  %v5948_v45 = vpop.f32.mrb[92].mxu1  ;;  %v6135_v28 = vpack.c.bf16 %v8767_v41, %v8773_v35 }
 0x5a0   : > { %v6509_v49 = vpop.eup %6508  ;;  %6528 = vrcp.f32 %v3471_v33  ;;  %v3336_v61 = vadd.f32 %v5948_v45, %v8713_v51  ;;  %v3330_v0 = vpop.f32.mrb[93].mxu1 }
 0x5a1   : > { %v8780_v31 = vpop.eup %6510  ;;  %v3474_v13 = vadd.f32 1.0, %v6509_v49  ;;  %6530 = vpow2.f32 %v5187_v27  ;;  %v3331_v10 = vadd.f32 %v8713_v51, %v3330_v0 }
 0x5a2   : > { %v6513_v57 = vpop.eup %6512  ;;  %6532 = vpow2.f32 %v5186_v26  ;;  %v5189_v30 = vmul.f32 -1.442695, %v3336_v61  ;;  %v6139_v42 = vpack.c.bf16 %v8775_v11, %v8780_v31 }
 0x5a3   : > { %v6515_v60 = vpop.eup %6514  ;;  %6534 = vrcp.f32 %v3474_v13  ;;  %v3473_v25 = vadd.f32 1.0, %v6513_v57  ;;  %v5951_v56 = vpop.f32.mrb[94].mxu1  ;;  %v5188_v3 = vmul.f32 -1.442695, %v3331_v10 }
 0x5a4   : > { %v6517_v16 = vpop.eup %6516  ;;  %v3476_v32 = vadd.f32 1.0, %v6515_v60  ;;  %6536 = vpow2.f32 %v5189_v30  ;;  %v3346_v54 = vadd.f32 %v5951_v56, %v8713_v51  ;;  %v3340_v58 = vpop.f32.mrb[95].mxu1 }
 0x5a5   : > { %v8786_v63 = vpop.eup %6518  ;;  %6538 = vrcp.f32 %v3473_v25  ;;  %v3475_v50 = vadd.f32 1.0, %v6517_v16  ;;  %v3341_v21 = vadd.f32 %v8713_v51, %v3340_v58 }
 0x5a6   : > { %v8789_v6 = vpop.eup %6520  ;;  %6540 = vrcp.f32 %v3476_v32  ;;  %v5191_v1 = vmul.f32 -1.442695, %v3346_v54 }
 0x5a7   : > { %v6523_v43 = vpop.eup %6522  ;;  %6542 = vrcp.f32 %v3475_v50  ;;  %v5954_v52 = vpop.f32.mrb[96].mxu1  ;;  %v6143_v23 = vpack.c.bf16 %v8786_v63, %v8789_v6  ;;  %v5190_v27 = vmul.f32 -1.442695, %v3341_v21 }
 0x5a8   : > { %v6525_v53 = vpop.eup %6524  ;;  %v3478_v33 = vadd.f32 1.0, %v6523_v43  ;;  %6544 = vpow2.f32 %v5188_v3  ;;  %v3356_v26 = vadd.f32 %v5954_v52, %v8713_v51  ;;  %v3350_v45 = vpop.f32.mrb[97].mxu1 }
 0x5a9   : > { %v6527_v49 = vpop.eup %6526  ;;  %v3477_v61 = vadd.f32 1.0, %v6525_v53  ;;  %6546 = vpow2.f32 %v5191_v1  ;;  %v3351_v0 = vadd.f32 %v8713_v51, %v3350_v45 }
 0x5aa   : > { %v6529_v13 = vpop.eup %6528  ;;  %6548 = vrcp.f32 %v3478_v33  ;;  %v5193_v10 = vmul.f32 -1.442695, %v3356_v26 }
 0x5ab   : > { %v6531_v57 = vpop.eup %6530  ;;  %6550 = vrcp.f32 %v3477_v61  ;;  %v6113_v30 = vpack.c.bf16 %v6527_v49, %v6529_v13  ;;  %v5192_v56 = vmul.f32 -1.442695, %v3351_v0 }
 0x5ac   : > { %v6533_v60 = vpop.eup %6532  ;;  %v3480_v25 = vadd.f32 1.0, %v6531_v57  ;;  %6552 = vpow2.f32 %v5190_v27 }
 0x5ad   : > { %v6535_v16 = vpop.eup %6534  ;;  %v3479_v32 = vadd.f32 1.0, %v6533_v60  ;;  %6554 = vpow2.f32 %v5193_v10  ;;  %6114 = vmatprep.subr.bf16.mxu0 %v6113_v30 }
 0x5ae   : > { %v6537_v3 = vpop.eup %6536  ;;  %6556 = vrcp.f32 %v3480_v25  ;;  %6116 = vmatpush3.bf16.msra.mxu0 %v6115_v9  ;;  %v3645_v25 = vld [vmem:[%s10082_s14] sm:$0xff] }
 0x5af   : > { %v6539_v51 = vpop.eup %6538  ;;  %6558 = vrcp.f32 %v3479_v32  ;;  %v3482_v54 = vadd.f32 1.0, %v6537_v3  ;;  %v3646_v32 = vld [vmem:[%s10082_s14 + $0x8] sm:$0xff] }
 0x5b0   : > { %v6541_v58 = vpop.eup %6540  ;;  %6560 = vpow2.f32 %v5192_v56  ;;  %v6117_v50 = vpack.c.bf16 %v6535_v16, %v6539_v51  ;;  %v3649_v16 = vld [vmem:[%s10082_s14 + $0x20] sm:$0xff] }
 0x5b1   : > { %v6543_v21 = vpop.eup %6542  ;;  %6562 = vrcp.f32 %v3482_v54 }
 0x5b2   : > { %v6545_v1 = vpop.eup %6544  ;;  %6118 = vmatprep.subr.bf16.mxu0 %v6117_v50  ;;  %v6121_v43 = vpack.c.bf16 %v6541_v58, %v6543_v21 }
 0x5b3   : > { %v6547_v52 = vpop.eup %6546  ;;  %v3481_v53 = vadd.f32 1.0, %v6545_v1  ;;  %6120 = vmatpush3.bf16.msra.mxu0 %v6119_v17  ;;  %v3651_v1 = vld [vmem:[%s10082_s14 + $0x30] sm:$0xff] }
 0x5b4   : > { %v6549_v33 = vpop.eup %6548  ;;  %v3484_v24 = vadd.f32 1.0, %v6547_v52  ;;  %6122 = vmatprep.subr.bf16.mxu0 %v6121_v43  ;;  %v3648_v43 = vld [vmem:[%s10082_s14 + $0x18] sm:$0xff] }
 0x5b5   : > { %v6551_v5 = vpop.eup %6550  ;;  %6564 = vrcp.f32 %v3481_v53 }
 0x5b6   : > { %v6553_v9 = vpop.eup %6552  ;;  %v6125_v27 = vpack.c.bf16 %v6549_v33, %v6551_v5  ;;  %6566 = vrcp.f32 %v3484_v24  ;;  %v3650_v5 = vld [vmem:[%s10082_s14 + $0x28] sm:$0xff] }
 0x5b7   : > { %v6555_v26 = vpop.eup %6554  ;;  %v3483_v45 = vadd.f32 1.0, %v6553_v9  ;;  %6124 = vmatpush3.bf16.msra.mxu0 %v6123_v19 }
 0x5b8   : > { %v6557_v49 = vpop.eup %6556  ;;  %v3486_v61 = vadd.f32 1.0, %v6555_v26  ;;  %6126 = vmatprep.subr.bf16.mxu0 %v6125_v27 }
 0x5b9   : > { %v6559_v0 = vpop.eup %6558  ;;  %6568 = vrcp.f32 %v3483_v45  ;;  %v3652_v45 = vld [vmem:[%s10082_s14 + $0x38] sm:$0xff] }
 0x5ba   : > { %v6561_v15 = vpop.eup %6560  ;;  %v6129_v39 = vpack.c.bf16 %v6557_v49, %v6559_v0  ;;  %6570 = vrcp.f32 %v3486_v61 }
 0x5bb   : > { %v3485_v17 = vadd.f32 1.0, %v6561_v15  ;;  %6128 = vmatpush3.bf16.msra.mxu0 %v6127_v22  ;;  %v6563_v13 = vpop.eup %6562 }
 0x5bc   : > { %6130 = vmatprep.subr.bf16.mxu0 %v6129_v39  ;;  %v3706_v39 = vld [vmem:[%s10077_s9 + $0x80] sm:$0xff] }
 0x5bd   : > { %6572 = vrcp.f32 %v3485_v17  ;;  %v3707_v17 = vld [vmem:[%s10077_s9 + $0x88] sm:$0xff] }
 0x5bf   : > { %v6565_v10 = vpop.eup %6564  ;;  %6132 = vmatpush3.bf16.msra.mxu0 %v6131_v47 }
 0x5c0   : > { %v6133_v8 = vpack.c.bf16 %v6563_v13, %v6565_v10  ;;  %v6567_v38 = vpop.eup %6566  ;;  %v3738_v10 = vld [vmem:[%s10077_s9 + $0x180] sm:$0xff] }
 0x5c2   : > { %6134 = vmatprep.subr.bf16.mxu0 %v6133_v8  ;;  %v3690_v8 = vld [vmem:[%s10077_s9] sm:$0xff] }
 0x5c3   : > { %v6569_v19 = vpop.eup %6568  ;;  %6136 = vmatpush3.bf16.msra.mxu0 %v6135_v28 }
 0x5c4   : > { %v6137_v57 = vpack.c.bf16 %v6567_v38, %v6569_v19  ;;  %v6571_v30 = vpop.eup %6570  ;;  %v3722_v38 = vld [vmem:[%s10077_s9 + $0x100] sm:$0xff]  ;;  %v3739_v19 = vld [vmem:[%s10077_s9 + $0x188] sm:$0xff] }
 0x5c6   : > { %6138 = vmatprep.subr.bf16.mxu0 %v6137_v57  ;;  %v3691_v57 = vld [vmem:[%s10077_s9 + $0x8] sm:$0xff] }
 0x5c7   : > { %v6573_v46 = vpop.eup %6572  ;;  %6140 = vmatpush3.bf16.msra.mxu0 %v6139_v42 }
 0x5c8   : > { %v6141_v18 = vpack.c.bf16 %v6571_v30, %v6573_v46  ;;  %v3723_v30 = vld [vmem:[%s10077_s9 + $0x108] sm:$0xff] }
 0x5ca   : > { %6142 = vmatprep.subr.bf16.mxu0 %v6141_v18 }
 0x5cb   : > { %6144 = vmatpush3.bf16.msra.mxu0 %v6143_v23  ;;  %v3647_v23 = vld [vmem:[%s10082_s14 + $0x10] sm:$0xff] }
 0x5ce   : > { %3627 = vmatmul.mubr.f32.vlgmr.msra.gmra.mrb[96].mxu0 %v3555_v14 }
 0x5cf   : > { %4070 = vmatprep.mubr.bf16.mxu0 %v7720_v55 }
 0x6a1   : > { %v5570_v22 = vpop.f32.mrb[96].mxu0 }
 0x6a2   : > { %v5571_v62 = vpop.f32.mrb[97].mxu0 }
 0x6a3   : > { %v5572_v41 = vadd.f32 %v5571_v62, %v5570_v22 }
 0x6a5   : > { %v3632_v47 = vmul.f32 0.00390625, %v5572_v41 }
 0x6a7   : > { %v3634_v35 = vsel %vm3633_vm9, %v3632_v47, -inf }
 0x6a8   : > { %3635 = vmax.xlane.f32.xlu0 %v3634_v35 }
 0x735   : > { %v3636_v11 = vpop.xlane.xlu0 %3635 }
 0x736   : > { %v3637_v28 = vsub.f32 %v3632_v47, %v3636_v11 }
 0x738   : > { %v3638_v31 = vmul.f32 1.442695, %v3637_v28  ;;  %v3708_v28 = vld [vmem:[%s10077_s9 + $0x90] sm:$0xff] }
 0x73a   : > { %6574 = vpow2.f32 %v3638_v31  ;;  %v3740_v31 = vld [vmem:[%s10077_s9 + $0x190] sm:$0xff] }
 0x744   : > { %v6575_v42 = vpop.eup %6574 }
 0x745   : > { %v3640_v36 = vsel %vm3633_vm9, %v6575_v42, 0.0 }
 0x746   : > { %3641 = vadd.xlane.f32.xlu1 %v3640_v36  ;;  %v3709_v36 = vld [vmem:[%s10077_s9 + $0x98] sm:$0xff] }
 0x7d3   : > { %v3642_v60 = vpop.xlane.xlu1 %3641 }
 0x7d4   : > { %6576 = vrcp.f32 %v3642_v60  ;;  %v3741_v60 = vld [vmem:[%s10077_s9 + $0x198] sm:$0xff] }
 0x7de   : > { %v6577_v63 = vpop.eup %6576 }
 0x7df   : > { %v3644_v6 = vmul.f32 %v6577_v63, %v6575_v42  ;;  %v3692_v42 = vld [vmem:[%s10077_s9 + $0x10] sm:$0xff]  ;;  %v3693_v63 = vld [vmem:[%s10077_s9 + $0x18] sm:$0xff] }
 0x7e1   : > { %v3656_v56 = vrot.slane %v3644_v6, %v8452_v7 }
 0x7e3   : > { %v3659_v3 = vmul.f32 %v3656_v56, %v3647_v23  ;;  %v3657_v51 = vmul.f32 %v3656_v56, %v3645_v25  ;;  %v3661_v50 = vmul.f32 %v3656_v56, %v3649_v16  ;;  %v3658_v21 = vmul.f32 %v3656_v56, %v3646_v32  ;;  %v3724_v32 = vld [vmem:[%s10077_s9 + $0x110] sm:$0xff] }
 0x7e4   : > { %v3663_v33 = vmul.f32 %v3656_v56, %v3651_v1  ;;  %v3660_v24 = vmul.f32 %v3656_v56, %v3648_v43  ;;  %v3662_v26 = vmul.f32 %v3656_v56, %v3650_v5  ;;  %v3664_v61 = vmul.f32 %v3656_v56, %v3652_v45 }
 0x7e5   : > { %v3672_v54 = vsel %vm3665_vm10, %v3659_v3, 0.0  ;;  %v3666_v58 = vsel %vm3665_vm10, %v3657_v51, 0.0  ;;  %v3678_v52 = vsel %vm3665_vm10, %v3661_v50, 0.0  ;;  %v3669_v53 = vsel %vm3665_vm10, %v3658_v21, 0.0  ;;  %v3725_v3 = vld [vmem:[%s10077_s9 + $0x118] sm:$0xff] }
 0x7e6   : > { %3673 = vadd.xlane.f32.xlu1 %v3672_v54  ;;  %3667 = vadd.xlane.f32.xlu0 %v3666_v58  ;;  %v3684_v9 = vsel %vm3665_vm10, %v3663_v33, 0.0  ;;  %v3675_v27 = vsel %vm3665_vm10, %v3660_v24, 0.0  ;;  %v3681_v49 = vsel %vm3665_vm10, %v3662_v26, 0.0  ;;  %v3687_v0 = vsel %vm3665_vm10, %v3664_v61, 0.0  ;;  %v3694_v33 = vld [vmem:[%s10077_s9 + $0x20] sm:$0xff]  ;;  %v3695_v26 = vld [vmem:[%s10077_s9 + $0x28] sm:$0xff] }
 0x7ea   : > { %3679 = vadd.xlane.f32.xlu1 %v3678_v52  ;;  %3670 = vadd.xlane.f32.xlu0 %v3669_v53  ;;  %v3710_v52 = vld [vmem:[%s10077_s9 + $0xa0] sm:$0xff] }
 0x7eb   : > { %v3742_v53 = vld [vmem:[%s10077_s9 + $0x1a0] sm:$0xff] }
 0x7ee   : > { %3685 = vadd.xlane.f32.xlu1 %v3684_v9  ;;  %3676 = vadd.xlane.f32.xlu0 %v3675_v27  ;;  %v3711_v9 = vld [vmem:[%s10077_s9 + $0xa8] sm:$0xff] }
 0x7ef   : > { %v3743_v27 = vld [vmem:[%s10077_s9 + $0x1a8] sm:$0xff] }
 0x7f2   : > { %3682 = vadd.xlane.f32.xlu0 %v3681_v49 }
 0x7f6   : > { %3688 = vadd.xlane.f32.xlu0 %v3687_v0  ;;  %v3726_v0 = vld [vmem:[%s10077_s9 + $0x120] sm:$0xff] }
 0x873   : > { %v8855_v15 = vpop.xlane.xlu0 %3667  ;;  %v8863_v13 = vpop.xlane.xlu1 %3673 }
 0x874   : > { %v3778_v18 = vmul.f32 %v3706_v39, %v8855_v15  ;;  %v3810_v14 = vmul.f32 %v3738_v10, %v8855_v15  ;;  %v3762_v22 = vmul.f32 %v3690_v8, %v8855_v15  ;;  %v3794_v62 = vmul.f32 %v3722_v38, %v8855_v15  ;;  %v3727_v39 = vld [vmem:[%s10077_s9 + $0x128] sm:$0xff] }
 0x875   : > { %v3780_v54 = vmul.f32 %v3708_v28, %v8863_v13  ;;  %v3812_v58 = vmul.f32 %v3740_v31, %v8863_v13  ;;  %v3764_v50 = vmul.f32 %v3692_v42, %v8863_v13  ;;  %v3796_v24 = vmul.f32 %v3724_v32, %v8863_v13  ;;  %v3713_v31 = vld [vmem:[%s10077_s9 + $0xb8] sm:$0xff]  ;;  %v3714_v32 = vld [vmem:[%s10077_s9 + $0xc0] sm:$0xff] }
 0x876   : > { %v3745_v42 = vld [vmem:[%s10077_s9 + $0x1b8] sm:$0xff] }
 0x877   : > { %v8883_v46 = vpop.xlane.xlu0 %3670  ;;  %v8911_v6 = vpop.xlane.xlu1 %3679 }
 0x878   : > { %v3779_v41 = vmul.f32 %v3707_v17, %v8883_v46  ;;  %v3811_v47 = vmul.f32 %v3739_v19, %v8883_v46  ;;  %v3763_v35 = vmul.f32 %v3691_v57, %v8883_v46  ;;  %v3795_v11 = vmul.f32 %v3723_v30, %v8883_v46  ;;  %v3715_v17 = vld [vmem:[%s10077_s9 + $0xc8] sm:$0xff] }
 0x879   : > { %v3782_v38 = vmul.f32 %v3710_v52, %v8911_v6  ;;  %v3814_v19 = vmul.f32 %v3742_v53, %v8911_v6  ;;  %v3766_v57 = vmul.f32 %v3694_v33, %v8911_v6  ;;  %v3747_v30 = vld [vmem:[%s10077_s9 + $0x1c8] sm:$0xff] }
 0x87a   : > { %v3842_v23 = vpack.c.bf16 %v3779_v41, %v3778_v18  ;;  %v3858_v25 = vpack.c.bf16 %v3811_v47, %v3810_v14  ;;  %v3834_v56 = vpack.c.bf16 %v3763_v35, %v3762_v22  ;;  %v3850_v16 = vpack.c.bf16 %v3795_v11, %v3794_v62  ;;  %v3712_v41 = vld [vmem:[%s10077_s9 + $0xb0] sm:$0xff] }
 0x87b   : > { %v8919_v51 = vpop.xlane.xlu0 %3676  ;;  %v8964_v18 = vpop.xlane.xlu1 %3685  ;;  %v3744_v47 = vld [vmem:[%s10077_s9 + $0x1b0] sm:$0xff]  ;;  %v3798_v11 = vmul.f32 %v3726_v0, %v8911_v6 }
 0x87c   : > { %5573 = vmatprep.subr.bf16.mxu1 %v3842_v23  ;;  %5685 = vmatprep.subr.bf16.mxu0 %v3858_v25  ;;  %v3781_v21 = vmul.f32 %v3709_v36, %v8919_v51  ;;  %v3813_v1 = vmul.f32 %v3741_v60, %v8919_v51  ;;  %v3765_v43 = vmul.f32 %v3693_v63, %v8919_v51  ;;  %v3696_v35 = vld [vmem:[%s10077_s9 + $0x30] sm:$0xff]  ;;  %v3697_v36 = vld [vmem:[%s10077_s9 + $0x38] sm:$0xff] }
 0x87d   : > { %5574 = vmatpush3.bf16.msra.mxu1 %v3834_v56  ;;  %5686 = vmatpush3.bf16.msra.mxu0 %v3850_v16  ;;  %v3797_v5 = vmul.f32 %v3725_v3, %v8919_v51  ;;  %v3787_v60 = vmul.f32 %v3715_v17, %v8883_v46  ;;  %v3728_v56 = vld [vmem:[%s10077_s9 + $0x130] sm:$0xff]  ;;  %v3729_v16 = vld [vmem:[%s10077_s9 + $0x138] sm:$0xff]  ;;  %v3819_v3 = vmul.f32 %v3747_v30, %v8883_v46 }
 0x87e   : > { %v3843_v45 = vpack.c.bf16 %v3781_v21, %v3780_v54  ;;  %v3859_v49 = vpack.c.bf16 %v3813_v1, %v3812_v58  ;;  %v3835_v61 = vpack.c.bf16 %v3765_v43, %v3764_v50  ;;  %v3784_v50 = vmul.f32 %v3712_v41, %v8964_v18  ;;  %v3746_v43 = vld [vmem:[%s10077_s9 + $0x1c0] sm:$0xff] }
 0x87f   : > { %v8956_v10 = vpop.xlane.xlu0 %3682  ;;  %v3851_v8 = vpack.c.bf16 %v3797_v5, %v3796_v24  ;;  %v3816_v21 = vmul.f32 %v3744_v47, %v8964_v18  ;;  %v3768_v1 = vmul.f32 %v3696_v35, %v8964_v18  ;;  %v3699_v24 = vld [vmem:[%s10077_s9 + $0x48] sm:$0xff]  ;;  %v3818_v17 = vmul.f32 %v3746_v43, %v8855_v15 }
 0x880   : > { %5575 = vmatprep.subr.bf16.mxu1 %v3843_v45  ;;  %5687 = vmatprep.subr.bf16.mxu0 %v3859_v49  ;;  %v3783_v14 = vmul.f32 %v3711_v9, %v8956_v10  ;;  %v3815_v22 = vmul.f32 %v3743_v27, %v8956_v10  ;;  %v3767_v62 = vmul.f32 %v3695_v26, %v8956_v10  ;;  %v3731_v5 = vld [vmem:[%s10077_s9 + $0x148] sm:$0xff]  ;;  %v3717_v45 = vld [vmem:[%s10077_s9 + $0xd8] sm:$0xff] }
 0x881   : > { %5576 = vmatpush3.bf16.msra.mxu1 %v3835_v61  ;;  %5688 = vmatpush3.bf16.msra.mxu0 %v3851_v8  ;;  %v3799_v28 = vmul.f32 %v3727_v39, %v8956_v10  ;;  %v3800_v9 = vmul.f32 %v3728_v56, %v8964_v18  ;;  %v3786_v26 = vmul.f32 %v3714_v32, %v8855_v15  ;;  %v3749_v49 = vld [vmem:[%s10077_s9 + $0x1d8] sm:$0xff]  ;;  %v3698_v8 = vld [vmem:[%s10077_s9 + $0x40] sm:$0xff]  ;;  %v3732_v56 = vld [vmem:[%s10077_s9 + $0x150] sm:$0xff] }
 0x882   : > { %v3844_v63 = vpack.c.bf16 %v3783_v14, %v3782_v38  ;;  %v3860_v23 = vpack.c.bf16 %v3815_v22, %v3814_v19  ;;  %v3836_v25 = vpack.c.bf16 %v3767_v62, %v3766_v57  ;;  %v3730_v38 = vld [vmem:[%s10077_s9 + $0x140] sm:$0xff]  ;;  %v3771_v30 = vmul.f32 %v3699_v24, %v8883_v46  ;;  %v3716_v22 = vld [vmem:[%s10077_s9 + $0xd0] sm:$0xff]  ;;  %v3735_v24 = vld [vmem:[%s10077_s9 + $0x168] sm:$0xff] }
 0x883   : > { %v9000_v54 = vpop.xlane.xlu0 %3688  ;;  %v3852_v58 = vpack.c.bf16 %v3799_v28, %v3798_v11  ;;  %v3846_v57 = vpack.c.bf16 %v3787_v60, %v3786_v26  ;;  %v3803_v14 = vmul.f32 %v3731_v5, %v8883_v46  ;;  %v3748_v62 = vld [vmem:[%s10077_s9 + $0x1d0] sm:$0xff]  ;;  %v3862_v41 = vpack.c.bf16 %v3819_v3, %v3818_v17  ;;  %v3701_v11 = vld [vmem:[%s10077_s9 + $0x58] sm:$0xff]  ;;  %v3751_v60 = vld [vmem:[%s10077_s9 + $0x1e8] sm:$0xff] }
 0x884   : > { %5577 = vmatprep.subr.bf16.mxu1 %v3844_v63  ;;  %5689 = vmatprep.subr.bf16.mxu0 %v3860_v23  ;;  %v3785_v52 = vmul.f32 %v3713_v31, %v9000_v54  ;;  %v3817_v53 = vmul.f32 %v3745_v42, %v9000_v54  ;;  %v3769_v33 = vmul.f32 %v3697_v36, %v9000_v54  ;;  %v3733_v28 = vld [vmem:[%s10077_s9 + $0x158] sm:$0xff]  ;;  %v3719_v36 = vld [vmem:[%s10077_s9 + $0xe8] sm:$0xff] }
 0x885   : > { %5578 = vmatpush3.bf16.msra.mxu1 %v3836_v25  ;;  %5690 = vmatpush3.bf16.msra.mxu0 %v3852_v58  ;;  %v3801_v27 = vmul.f32 %v3729_v16, %v9000_v54  ;;  %v3789_v47 = vmul.f32 %v3717_v45, %v8919_v51  ;;  %v3821_v35 = vmul.f32 %v3749_v49, %v8919_v51  ;;  %v3700_v25 = vld [vmem:[%s10077_s9 + $0x50] sm:$0xff]  ;;  %v3753_v26 = vld [vmem:[%s10077_s9 + $0x1f8] sm:$0xff] }
 0x886   : > { %v3845_v61 = vpack.c.bf16 %v3785_v52, %v3784_v50  ;;  %v3861_v0 = vpack.c.bf16 %v3817_v53, %v3816_v21  ;;  %v3837_v39 = vpack.c.bf16 %v3769_v33, %v3768_v1  ;;  %v3770_v31 = vmul.f32 %v3698_v8, %v8855_v15  ;;  %v3718_v50 = vld [vmem:[%s10077_s9 + $0xe0] sm:$0xff]  ;;  %v3703_v33 = vld [vmem:[%s10077_s9 + $0x68] sm:$0xff] }
 0x887   : > { %v3853_v19 = vpack.c.bf16 %v3801_v27, %v3800_v9  ;;  %v3802_v42 = vmul.f32 %v3730_v38, %v8855_v15  ;;  %v3788_v63 = vmul.f32 %v3716_v22, %v8863_v13  ;;  %v3820_v23 = vmul.f32 %v3748_v62, %v8863_v13  ;;  %v3750_v21 = vld [vmem:[%s10077_s9 + $0x1e0] sm:$0xff]  ;;  %v3721_v27 = vld [vmem:[%s10077_s9 + $0xf8] sm:$0xff] }
 0x888   : > { %5579 = vmatprep.subr.bf16.mxu1 %v3845_v61  ;;  %5691 = vmatprep.subr.bf16.mxu0 %v3861_v0  ;;  %v3838_v16 = vpack.c.bf16 %v3771_v30, %v3770_v31  ;;  %v3773_v3 = vmul.f32 %v3701_v11, %v8919_v51  ;;  %v3805_v58 = vmul.f32 %v3733_v28, %v8919_v51  ;;  %v3702_v61 = vld [vmem:[%s10077_s9 + $0x60] sm:$0xff]  ;;  %v3755_v28 = vld [vmem:[%s10077_s9 + $0x208] sm:$0xff] }
 0x889   : > { %5580 = vmatpush3.bf16.msra.mxu1 %v3837_v39  ;;  %5692 = vmatpush3.bf16.msra.mxu0 %v3853_v19  ;;  %v3854_v32 = vpack.c.bf16 %v3803_v14, %v3802_v42  ;;  %v3847_v1 = vpack.c.bf16 %v3789_v47, %v3788_v63  ;;  %v3863_v43 = vpack.c.bf16 %v3821_v35, %v3820_v23  ;;  %v3734_v0 = vld [vmem:[%s10077_s9 + $0x160] sm:$0xff]  ;;  %v3720_v19 = vld [vmem:[%s10077_s9 + $0xf0] sm:$0xff]  ;;  %v3737_v47 = vld [vmem:[%s10077_s9 + $0x178] sm:$0xff] }
 0x88a   : > { %5581 = vmatprep.subr.bf16.mxu1 %v3846_v57  ;;  %5693 = vmatprep.subr.bf16.mxu0 %v3862_v41  ;;  %v3791_v52 = vmul.f32 %v3719_v36, %v8956_v10  ;;  %v3823_v53 = vmul.f32 %v3751_v60, %v8956_v10  ;;  %v3772_v5 = vmul.f32 %v3700_v25, %v8863_v13  ;;  %v3752_v57 = vld [vmem:[%s10077_s9 + $0x1f0] sm:$0xff]  ;;  %v3705_v41 = vld [vmem:[%s10077_s9 + $0x78] sm:$0xff] }
 0x88b   : > { %v3804_v9 = vmul.f32 %v3732_v56, %v8863_v13  ;;  %v3790_v45 = vmul.f32 %v3718_v50, %v8911_v6  ;;  %v3822_v49 = vmul.f32 %v3750_v21, %v8911_v6  ;;  %v3775_v8 = vmul.f32 %v3703_v33, %v8956_v10  ;;  %v3704_v36 = vld [vmem:[%s10077_s9 + $0x70] sm:$0xff] }
 0x88c   : > { %v3839_v39 = vpack.c.bf16 %v3773_v3, %v3772_v5  ;;  %v3807_v38 = vmul.f32 %v3735_v24, %v8956_v10  ;;  %v3793_v22 = vmul.f32 %v3721_v27, %v9000_v54  ;;  %v3825_v62 = vmul.f32 %v3753_v26, %v9000_v54  ;;  %v3736_v60 = vld [vmem:[%s10077_s9 + $0x170] sm:$0xff] }
 0x88d   : > { %5582 = vmatpush3.bf16.msra.mxu1 %v3838_v16  ;;  %5694 = vmatpush3.bf16.msra.mxu0 %v3854_v32  ;;  %v3855_v17 = vpack.c.bf16 %v3805_v58, %v3804_v9  ;;  %v3848_v30 = vpack.c.bf16 %v3791_v52, %v3790_v45  ;;  %v3864_v14 = vpack.c.bf16 %v3823_v53, %v3822_v49  ;;  %v3754_v16 = vld [vmem:[%s10077_s9 + $0x200] sm:$0xff] }
 0x88e   : > { %5583 = vmatprep.subr.bf16.mxu1 %v3847_v1  ;;  %5695 = vmatprep.subr.bf16.mxu0 %v3863_v43  ;;  %v3774_v35 = vmul.f32 %v3702_v61, %v8911_v6  ;;  %v3806_v11 = vmul.f32 %v3734_v0, %v8911_v6  ;;  %v3792_v31 = vmul.f32 %v3720_v19, %v8964_v18  ;;  %v3757_v43 = vld [vmem:[%s10077_s9 + $0x218] sm:$0xff]  ;;  %v3758_v9 = vld [vmem:[%s10077_s9 + $0x220] sm:$0xff] }
 0x88f   : > { %v3824_v42 = vmul.f32 %v3752_v57, %v8964_v18  ;;  %v3777_v25 = vmul.f32 %v3705_v41, %v9000_v54  ;;  %v3809_v56 = vmul.f32 %v3737_v47, %v9000_v54  ;;  %v3827_v58 = vmul.f32 %v3755_v28, %v8883_v46  ;;  %v3756_v46 = vld [vmem:[%s10077_s9 + $0x210] sm:$0xff]  ;;  %v10354_v49 = vld [vmem:[#allocation18_spill] sm:$0xff]  ;;  %v10357_v0 = vld [vmem:[#allocation19_spill] sm:$0xff] }
 0x890   : > { %v3840_v63 = vpack.c.bf16 %v3775_v8, %v3774_v35  ;;  %v3856_v23 = vpack.c.bf16 %v3807_v38, %v3806_v11  ;;  %v3849_v32 = vpack.c.bf16 %v3793_v22, %v3792_v31  ;;  %v3776_v50 = vmul.f32 %v3704_v36, %v8964_v18  ;;  %v10355_v61 = vld [vmem:[#allocation50_spill] sm:$0xff]  ;;  %v10361_v38 = vld [vmem:[#allocation51_spill] sm:$0xff]  ;;  %v10363_v57 = vld [vmem:[#allocation24_spill] sm:$0xff] }
 0x891   : > { %5584 = vmatpush3.bf16.msra.mxu1 %v3839_v39  ;;  %5696 = vmatpush3.bf16.msra.mxu0 %v3855_v17  ;;  %v3865_v3 = vpack.c.bf16 %v3825_v62, %v3824_v42  ;;  %v3808_v21 = vmul.f32 %v3736_v60, %v8964_v18  ;;  %v3826_v1 = vmul.f32 %v3754_v16, %v8855_v15  ;;  %v3759_v15 = vld [vmem:[%s10077_s9 + $0x228] sm:$0xff]  ;;  %v10360_v8 = vld [vmem:[#allocation22_spill] sm:$0xff]  ;;  %v10367_v62 = vld [vmem:[#allocation53_spill] sm:$0xff] }
 0x892   : > { %5585 = vmatprep.subr.bf16.mxu1 %v3848_v30  ;;  %5697 = vmatprep.subr.bf16.mxu0 %v3864_v14  ;;  %v3841_v52 = vpack.c.bf16 %v3777_v25, %v3776_v50  ;;  %v3829_v24 = vmul.f32 %v3757_v43, %v8919_v51  ;;  %v3828_v5 = vmul.f32 %v3756_v46, %v8863_v13  ;;  %v3761_v13 = vld [vmem:[%s10077_s9 + $0x238] sm:$0xff]  ;;  %v10358_v39 = vld [vmem:[#allocation11_spill] sm:$0xff]  ;;  %v10359_v17 = vld [vmem:[#allocation20_spill] sm:$0xff] }
 0x893   : > { %v3857_v53 = vpack.c.bf16 %v3809_v56, %v3808_v21  ;;  %v3866_v33 = vpack.c.bf16 %v3827_v58, %v3826_v1  ;;  %v3831_v27 = vmul.f32 %v3759_v15, %v8956_v10  ;;  %v10344_v10 = vld [vmem:[#allocation47_spill] sm:$0xff]  ;;  %v10364_v30 = vld [vmem:[#allocation52_spill] sm:$0xff]  ;;  %v10365_v14 = vld [vmem:[#allocation26_spill] sm:$0xff] }
 0x894   : > { %v3867_v51 = vpack.c.bf16 %v3829_v24, %v3828_v5  ;;  %v10362_v19 = vld [vmem:[#allocation23_spill] sm:$0xff]  ;;  %v10366_v22 = vld [vmem:[#allocation28_spill] sm:$0xff]  ;;  %v10368_v41 = vld [vmem:[#allocation29_spill] sm:$0xff] }
 0x895   : > { %5586 = vmatpush3.bf16.msra.mxu1 %v3840_v63  ;;  %5698 = vmatpush3.bf16.msra.mxu0 %v3856_v23  ;;  %v10369_v47 = vld [vmem:[#allocation30_spill] sm:$0xff]  ;;  %v10371_v11 = vld [vmem:[#allocation32_spill] sm:$0xff]  ;;  %v10373_v31 = vld [vmem:[#allocation55_spill] sm:$0xff] }
 0x896   : > { %5587 = vmatprep.subr.bf16.mxu1 %v3849_v32  ;;  %5699 = vmatprep.subr.bf16.mxu0 %v3865_v3  ;;  %v10370_v35 = vld [vmem:[#allocation54_spill] sm:$0xff]  ;;  %v10375_v36 = vld [vmem:[#allocation59_spill] sm:$0xff]  ;;  %v10376_v60 = vld [vmem:[#allocation56_spill] sm:$0xff] }
 0x897   : > { %v10372_v28 = vld [vmem:[#allocation34_spill] sm:$0xff]  ;;  %v10377_v63 = vld [vmem:[#allocation60_spill] sm:$0xff]  ;;  %v10378_v23 = vld [vmem:[#allocation61_spill] sm:$0xff] }
 0x898   : > { %v10374_v42 = vld [vmem:[#allocation58_spill] sm:$0xff]  ;;  %v10379_v25 = vld [vmem:[#allocation57_spill] sm:$0xff]  ;;  %v10381_v16 = vld [vmem:[#allocation63_spill] sm:$0xff] }
 0x899   : > { %5588 = vmatpush3.bf16.msra.mxu1 %v3841_v52  ;;  %5700 = vmatpush3.bf16.msra.mxu0 %v3857_v53  ;;  %v10380_v56 = vld [vmem:[#allocation62_spill] sm:$0xff]  ;;  %v10382_v32 = vld [vmem:[#allocation21_spill] sm:$0xff]  ;;  %v10384_v58 = vld [vmem:[#allocation27_spill] sm:$0xff] }
 0x89a   : > { %5955 = vmatprep.subr.bf16.mxu1 %v3866_v33  ;;  %v10383_v3 = vld [vmem:[#allocation25_spill] sm:$0xff]  ;;  %v10385_v50 = vld [vmem:[#allocation31_spill] sm:$0xff]  ;;  %v10388_v43 = vld [vmem:[#allocation36_spill] sm:$0xff] }
 0x89b   : > { %v10386_v21 = vld [vmem:[#allocation33_spill] sm:$0xff]  ;;  %v10387_v1 = vld [vmem:[#allocation35_spill] sm:$0xff]  ;;  %v10390_v53 = vld [vmem:[#allocation38_spill] sm:$0xff] }
 0x89c   : > { %3910 = vmatmul.mubr.bf16.vlgmr.msra.gmra.mrb[100].mxu1 %v7711_v44  ;;  %4071 = vmatmul.mubr.bf16.vlgmr.msra.gmra.mrb[100].mxu0 %v7764_v37  ;;  %v3830_v44 = vmul.f32 %v3758_v9, %v8911_v6  ;;  %v3760_v37 = vld [vmem:[%s10077_s9 + $0x230] sm:$0xff]  ;;  %v10394_v15 = vld [vmem:[#allocation42_spill] sm:$0xff]  ;;  %v10395_v5 = vld [vmem:[#allocation43_spill] sm:$0xff] }
 0x89d   : > { %3917 = vmatprep.mubr.bf16.mxu1 %v7705_v12  ;;  %4078 = vmatprep.mubr.bf16.mxu0 %v7744_v59  ;;  %v3833_v12 = vmul.f32 %v3761_v13, %v9000_v54  ;;  %v3832_v45 = vmul.f32 %v3760_v37, %v8964_v18  ;;  %v10348_v18 = vld [vmem:[#allocation14_spill] sm:$0xff]  ;;  %v10389_v52 = vld [vmem:[#allocation37_spill] sm:$0xff]  ;;  %v10392_v46 = vld [vmem:[#allocation40_spill] sm:$0xff] }
 0x89e   : > { %5956 = vmatpush3.bf16.msra.mxu1 %v3866_v33  ;;  %v3868_v26 = vpack.c.bf16 %v3831_v27, %v3830_v44  ;;  %v10349_v54 = vld [vmem:[#allocation46_spill] sm:$0xff]  ;;  %v10391_v33 = vld [vmem:[#allocation39_spill] sm:$0xff]  ;;  %v10393_v24 = vld [vmem:[#allocation41_spill] sm:$0xff] }
 0x89f   : > { %5957 = vmatprep.subr.bf16.mxu1 %v3867_v51  ;;  %v3869_v6 = vpack.c.bf16 %v3833_v12, %v3832_v45  ;;  %v10396_v9 = vld [vmem:[#allocation44_spill] sm:$0xff]  ;;  %v9257_v44 = vld [vmem:[%s10078_s10] ss:$0 sm:$0xff] }
 0x8a2   : > { %5958 = vmatpush3.bf16.msra.mxu1 %v3867_v51  ;;  %v10397_v51 = vld [vmem:[#allocation64_spill] sm:$0xff] }
 0x8a3   : > { %5959 = vmatprep.subr.bf16.mxu1 %v3868_v26 }
 0x8a4   : > { %3918 = vmatmul.mubr.bf16.gmra.mrb[104].mxu1 %v7724_v40  ;;  %4079 = vmatmul.mubr.bf16.gmra.mrb[104].mxu0 %v7784_v29  ;;  %v10345_v40 = vld [vmem:[#allocation12_spill] sm:$0xff]  ;;  %v10346_v29 = vld [vmem:[#allocation45_spill] sm:$0xff] }
 0x8a5   : > { %3925 = vmatprep.mubr.bf16.mxu1 %v7729_v2  ;;  %4086 = vmatprep.mubr.bf16.mxu0 %v7754_v20  ;;  %v10347_v2 = vld [vmem:[#allocation49_spill] sm:$0xff] }
 0x8a6   : > { %5960 = vmatpush3.bf16.msra.mxu1 %v3868_v26 }
 0x8a7   : > { %5961 = vmatprep.subr.bf16.mxu1 %v3869_v6 }
 0x8aa   : > { %5962 = vmatpush3.bf16.msra.mxu1 %v3869_v6 }
 0x8ac   : > { %3926 = vmatmul.mubr.bf16.gmra.mrb[108].mxu1 %v7720_v55  ;;  %4087 = vmatmul.mubr.bf16.gmra.mrb[108].mxu0 %v7800_v4  ;;  %v10350_v55 = vld [vmem:[#allocation13_spill] sm:$0xff]  ;;  %v10352_v4 = vld [vmem:[#allocation48_spill] sm:$0xff] }
 0x8ad   : > { %3933 = vmatprep.mubr.bf16.mxu1 %v7738_v48  ;;  %4094 = vmatprep.mubr.bf16.mxu0 %v10344_v10  ;;  %v10351_v48 = vld [vmem:[#allocation16_spill] sm:$0xff] }
 0x8b4   : > { %3934 = vmatmul.mubr.bf16.gmra.mrb[112].mxu1 %v7744_v59  ;;  %4095 = vmatmul.mubr.bf16.gmra.mrb[112].mxu0 %v10345_v40  ;;  %v10353_v59 = vld [vmem:[#allocation15_spill] sm:$0xff] }
 0x8b5   : > { %3941 = vmatprep.mubr.bf16.mxu1 %v10346_v29  ;;  %4102 = vmatprep.mubr.bf16.mxu0 %v10347_v2 }
 0x8bc   : > { %3942 = vmatmul.mubr.bf16.gmra.mrb[116].mxu1 %v7754_v20  ;;  %4103 = vmatmul.mubr.bf16.gmra.mrb[116].mxu0 %v10348_v18  ;;  %v10356_v20 = vld [vmem:[#allocation17_spill] sm:$0xff] }
 0x8bd   : > { %3949 = vmatprep.mubr.bf16.mxu1 %v10349_v54  ;;  %4110 = vmatprep.mubr.bf16.mxu0 %v10350_v55 }
 0x8c4   : > { %3950 = vmatmul.mubr.bf16.gmra.mrb[120].mxu1 %v10344_v10  ;;  %4111 = vmatmul.mubr.bf16.gmra.mrb[120].mxu0 %v10351_v48 }
 0x8c5   : > { %3957 = vmatprep.mubr.bf16.mxu1 %v10352_v4  ;;  %4118 = vmatprep.mubr.bf16.mxu0 %v10353_v59 }
 0x8cc   : > { %3958 = vmatmul.mubr.bf16.gmra.mrb[124].mxu1 %v10347_v2  ;;  %4119 = vmatmul.mubr.bf16.gmra.mrb[124].mxu0 %v10354_v49 }
 0x8cd   : > { %3965 = vmatprep.mubr.bf16.mxu1 %v10355_v61  ;;  %4126 = vmatprep.mubr.bf16.mxu0 %v10356_v20 }
 0x8d4   : > { %3966 = vmatmul.mubr.bf16.gmra.mrb[128].mxu1 %v10350_v55  ;;  %4127 = vmatmul.mubr.bf16.gmra.mrb[128].mxu0 %v10357_v0 }
 0x8d5   : > { %3973 = vmatprep.mubr.bf16.mxu1 %v10358_v39  ;;  %4134 = vmatprep.mubr.bf16.mxu0 %v10359_v17 }
 0x8dc   : > { %3974 = vmatmul.mubr.bf16.gmra.mrb[132].mxu1 %v10353_v59  ;;  %4135 = vmatmul.mubr.bf16.gmra.mrb[132].mxu0 %v10360_v8 }
 0x8dd   : > { %3981 = vmatprep.mubr.bf16.mxu1 %v10361_v38  ;;  %4142 = vmatprep.mubr.bf16.mxu0 %v10362_v19 }
 0x8e4   : > { %3982 = vmatmul.mubr.bf16.gmra.mrb[136].mxu1 %v10356_v20  ;;  %4143 = vmatmul.mubr.bf16.gmra.mrb[136].mxu0 %v10363_v57 }
 0x8e5   : > { %3989 = vmatprep.mubr.bf16.mxu1 %v10364_v30  ;;  %4150 = vmatprep.mubr.bf16.mxu0 %v10365_v14 }
 0x8ec   : > { %3990 = vmatmul.mubr.bf16.gmra.mrb[140].mxu1 %v10359_v17  ;;  %4151 = vmatmul.mubr.bf16.gmra.mrb[140].mxu0 %v10366_v22 }
 0x8ed   : > { %3997 = vmatprep.mubr.bf16.mxu1 %v10367_v62  ;;  %4158 = vmatprep.mubr.bf16.mxu0 %v10368_v41 }
 0x8f4   : > { %3998 = vmatmul.mubr.bf16.gmra.mrb[144].mxu1 %v10362_v19  ;;  %4159 = vmatmul.mubr.bf16.gmra.mrb[144].mxu0 %v10369_v47 }
 0x8f5   : > { %4005 = vmatprep.mubr.bf16.mxu1 %v10370_v35  ;;  %4166 = vmatprep.mubr.bf16.mxu0 %v10371_v11 }
 0x8fc   : > { %4006 = vmatmul.mubr.bf16.gmra.mrb[148].mxu1 %v10365_v14  ;;  %4167 = vmatmul.mubr.bf16.gmra.mrb[148].mxu0 %v10372_v28 }
 0x8fd   : > { %4013 = vmatprep.mubr.bf16.mxu1 %v10373_v31  ;;  %4174 = vmatprep.mubr.bf16.mxu0 %v10374_v42 }
 0x904   : > { %4014 = vmatmul.mubr.bf16.gmra.mrb[152].mxu1 %v10368_v41  ;;  %4175 = vmatmul.mubr.bf16.gmra.mrb[152].mxu0 %v10375_v36 }
 0x905   : > { %4021 = vmatprep.mubr.bf16.mxu1 %v10376_v60  ;;  %4182 = vmatprep.mubr.bf16.mxu0 %v10377_v63 }
 0x90c   : > { %4022 = vmatmul.mubr.bf16.gmra.mrb[156].mxu1 %v10371_v11  ;;  %4183 = vmatmul.mubr.bf16.gmra.mrb[156].mxu0 %v10378_v23 }
 0x90d   : > { %4029 = vmatprep.mubr.bf16.mxu1 %v10379_v25  ;;  %4190 = vmatprep.mubr.bf16.mxu0 %v10380_v56 }
 0x914   : > { %4030 = vmatmul.mubr.bf16.gmra.mrb[160].mxu1 %v10374_v42  ;;  %4191 = vmatmul.mubr.bf16.gmra.mrb[160].mxu0 %v10381_v16 }
 0x915   : > { %5963 = vmatprep.mubr.msk.bf16.mxu1 %vm1481_vm6, %v10382_v32  ;;  %4456 = vmatprep.mubr.f32.mxu0 %v10343_v34 }
 0x91c   : > { %5964 = vmatmul.mubr.msk.bf16.vlgmr.msra.gmra.mrb[164].mxu1 %vm1481_vm6, %v10383_v3 }
 0x91d   : > { %5967 = vmatprep.mubr.msk.bf16.mxu1 %vm1481_vm6, %v10384_v58 }
 0x924   : > { %5968 = vmatmul.mubr.msk.bf16.gmra.mrb[168].mxu1 %vm1481_vm6, %v10385_v50 }
 0x925   : > { %5971 = vmatprep.mubr.msk.bf16.mxu1 %vm1481_vm6, %v10386_v21 }
 0x92c   : > { %5972 = vmatmul.mubr.msk.bf16.gmra.mrb[172].mxu1 %vm1481_vm6, %v10387_v1 }
 0x92d   : > { %5975 = vmatprep.mubr.msk.bf16.mxu1 %vm1481_vm6, %v10388_v43 }
 0x934   : > { %5976 = vmatmul.mubr.msk.bf16.gmra.mrb[176].mxu1 %vm1481_vm6, %v10389_v52 }
 0x935   : > { %5979 = vmatprep.mubr.msk.bf16.mxu1 %vm1481_vm6, %v10390_v53 }
 0x93c   : > { %5980 = vmatmul.mubr.msk.bf16.gmra.mrb[180].mxu1 %vm1481_vm6, %v10391_v33 }
 0x93d   : > { %5983 = vmatprep.mubr.msk.bf16.mxu1 %vm1481_vm6, %v10392_v46 }
 0x944   : > { %5984 = vmatmul.mubr.msk.bf16.gmra.mrb[184].mxu1 %vm1481_vm6, %v10393_v24 }
 0x945   : > { %5987 = vmatprep.mubr.msk.bf16.mxu1 %vm1481_vm6, %v10394_v15 }
 0x94c   : > { %5988 = vmatmul.mubr.msk.bf16.gmra.mrb[188].mxu1 %vm1481_vm6, %v10395_v5 }
 0x94d   : > { %5991 = vmatprep.mubr.msk.bf16.mxu1 %vm1481_vm6, %v10396_v9 }
 0x954   : > { %5992 = vmatmul.mubr.msk.bf16.gmra.mrb[192].mxu1 %vm1481_vm6, %v10397_v51  ;;  %vm6650_vm6 = vmmov 0  }
 0x96f   : > { %v5589_v27 = vpop.f32.mrb[100].mxu1  ;;  %v5701_v13 = vpop.f32.mrb[100].mxu0 }
 0x970   : > { %v5590_v37 = vpop.f32.mrb[101].mxu1  ;;  %v5702_v26 = vpop.f32.mrb[101].mxu0 }
 0x971   : > { %v5591_v12 = vadd.f32 %v5590_v37, %v5589_v27  ;;  %v5703_v45 = vadd.f32 %v5702_v26, %v5701_v13  ;;  %v5592_v6 = vpop.f32.mrb[102].mxu1  ;;  %v5704_v10 = vpop.f32.mrb[102].mxu0 }
 0x972   : > { %v5593_v40 = vpop.f32.mrb[103].mxu1  ;;  %v5705_v29 = vpop.f32.mrb[103].mxu0 }
 0x973   : > { %v3912_v2 = vadd.f32 %v5591_v12, %v9257_v44  ;;  %v5594_v18 = vadd.f32 %v5593_v40, %v5592_v6  ;;  %v5706_v54 = vadd.f32 %v5705_v29, %v5704_v10 }
 0x975   : > { %v3915_v55 = vadd.f32 %v5594_v18, %v9257_v44  ;;  %v9261_v48 = vadd.f32 %v5703_v45, %v3912_v2 }
 0x977   : > { %v5595_v4 = vpop.f32.mrb[104].mxu1  ;;  %v5707_v59 = vpop.f32.mrb[104].mxu0  ;;  %v9263_v49 = vadd.f32 %v5706_v54, %v3915_v55 }
 0x978   : > { %v5596_v61 = vpop.f32.mrb[105].mxu1  ;;  %v5708_v20 = vpop.f32.mrb[105].mxu0 }
 0x979   : > { %v5597_v0 = vadd.f32 %v5596_v61, %v5595_v4  ;;  %v5709_v39 = vadd.f32 %v5708_v20, %v5707_v59  ;;  %v5598_v17 = vpop.f32.mrb[106].mxu1  ;;  %v5710_v8 = vpop.f32.mrb[106].mxu0 }
 0x97a   : > { %v5599_v38 = vpop.f32.mrb[107].mxu1  ;;  %v5711_v19 = vpop.f32.mrb[107].mxu0 }
 0x97b   : > { %v3920_v57 = vadd.f32 %v5597_v0, %v9257_v44  ;;  %v5600_v30 = vadd.f32 %v5599_v38, %v5598_v17  ;;  %v5712_v14 = vadd.f32 %v5711_v19, %v5710_v8 }
 0x97d   : > { %v3923_v22 = vadd.f32 %v5600_v30, %v9257_v44  ;;  %v9267_v62 = vadd.f32 %v5709_v39, %v3920_v57 }
 0x97f   : > { %v5601_v41 = vpop.f32.mrb[108].mxu1  ;;  %v5713_v47 = vpop.f32.mrb[108].mxu0  ;;  %v9269_v35 = vadd.f32 %v5712_v14, %v3923_v22 }
 0x980   : > { %v5602_v11 = vpop.f32.mrb[109].mxu1  ;;  %v5714_v28 = vpop.f32.mrb[109].mxu0 }
 0x981   : > { %v5603_v31 = vadd.f32 %v5602_v11, %v5601_v41  ;;  %v5715_v42 = vadd.f32 %v5714_v28, %v5713_v47  ;;  %v5604_v36 = vpop.f32.mrb[110].mxu1  ;;  %v5716_v60 = vpop.f32.mrb[110].mxu0 }
 0x982   : > { %v5605_v63 = vpop.f32.mrb[111].mxu1  ;;  %v5717_v23 = vpop.f32.mrb[111].mxu0 }
 0x983   : > { %v3928_v25 = vadd.f32 %v5603_v31, %v9257_v44  ;;  %v5606_v56 = vadd.f32 %v5605_v63, %v5604_v36  ;;  %v5718_v16 = vadd.f32 %v5717_v23, %v5716_v60 }
 0x985   : > { %v3931_v32 = vadd.f32 %v5606_v56, %v9257_v44  ;;  %v9273_v3 = vadd.f32 %v5715_v42, %v3928_v25 }
 0x987   : > { %v5607_v58 = vpop.f32.mrb[112].mxu1  ;;  %v5719_v50 = vpop.f32.mrb[112].mxu0  ;;  %v9275_v21 = vadd.f32 %v5718_v16, %v3931_v32 }
 0x988   : > { %v5608_v1 = vpop.f32.mrb[113].mxu1  ;;  %v5720_v43 = vpop.f32.mrb[113].mxu0 }
 0x989   : > { %v5609_v52 = vadd.f32 %v5608_v1, %v5607_v58  ;;  %v5721_v53 = vadd.f32 %v5720_v43, %v5719_v50  ;;  %v5610_v33 = vpop.f32.mrb[114].mxu1  ;;  %v5722_v46 = vpop.f32.mrb[114].mxu0 }
 0x98a   : > { %v5611_v24 = vpop.f32.mrb[115].mxu1  ;;  %v5723_v15 = vpop.f32.mrb[115].mxu0 }
 0x98b   : > { %v3936_v5 = vadd.f32 %v5609_v52, %v9257_v44  ;;  %v5612_v9 = vadd.f32 %v5611_v24, %v5610_v33  ;;  %v5724_v51 = vadd.f32 %v5723_v15, %v5722_v46 }
 0x98d   : > { %v3939_v27 = vadd.f32 %v5612_v9, %v9257_v44  ;;  %v9279_v13 = vadd.f32 %v5721_v53, %v3936_v5 }
 0x98f   : > { %v5613_v37 = vpop.f32.mrb[116].mxu1  ;;  %v5725_v26 = vpop.f32.mrb[116].mxu0  ;;  %v9281_v12 = vadd.f32 %v5724_v51, %v3939_v27 }
 0x990   : > { %v5614_v45 = vpop.f32.mrb[117].mxu1  ;;  %v5726_v6 = vpop.f32.mrb[117].mxu0 }
 0x991   : > { %v5615_v10 = vadd.f32 %v5614_v45, %v5613_v37  ;;  %v5727_v40 = vadd.f32 %v5726_v6, %v5725_v26  ;;  %v5616_v29 = vpop.f32.mrb[118].mxu1  ;;  %v5728_v2 = vpop.f32.mrb[118].mxu0 }
 0x992   : > { %v5617_v18 = vpop.f32.mrb[119].mxu1  ;;  %v5729_v54 = vpop.f32.mrb[119].mxu0 }
 0x993   : > { %v3944_v55 = vadd.f32 %v5615_v10, %v9257_v44  ;;  %v5618_v4 = vadd.f32 %v5617_v18, %v5616_v29  ;;  %v5730_v59 = vadd.f32 %v5729_v54, %v5728_v2 }
 0x995   : > { %v3947_v61 = vadd.f32 %v5618_v4, %v9257_v44  ;;  %v9285_v20 = vadd.f32 %v5727_v40, %v3944_v55 }
 0x997   : > { %v5619_v0 = vpop.f32.mrb[120].mxu1  ;;  %v5731_v39 = vpop.f32.mrb[120].mxu0  ;;  %v9287_v17 = vadd.f32 %v5730_v59, %v3947_v61 }
 0x998   : > { %v5620_v8 = vpop.f32.mrb[121].mxu1  ;;  %v5732_v38 = vpop.f32.mrb[121].mxu0 }
 0x999   : > { %v5621_v19 = vadd.f32 %v5620_v8, %v5619_v0  ;;  %v5733_v57 = vadd.f32 %v5732_v38, %v5731_v39  ;;  %v5622_v30 = vpop.f32.mrb[122].mxu1  ;;  %v5734_v14 = vpop.f32.mrb[122].mxu0 }
 0x99a   : > { %v5623_v22 = vpop.f32.mrb[123].mxu1  ;;  %v5735_v41 = vpop.f32.mrb[123].mxu0 }
 0x99b   : > { %v3952_v47 = vadd.f32 %v5621_v19, %v9257_v44  ;;  %v5624_v11 = vadd.f32 %v5623_v22, %v5622_v30  ;;  %v5736_v28 = vadd.f32 %v5735_v41, %v5734_v14 }
 0x99d   : > { %v3955_v31 = vadd.f32 %v5624_v11, %v9257_v44  ;;  %v9291_v42 = vadd.f32 %v5733_v57, %v3952_v47 }
 0x99f   : > { %v5625_v36 = vpop.f32.mrb[124].mxu1  ;;  %v5737_v60 = vpop.f32.mrb[124].mxu0  ;;  %v9293_v63 = vadd.f32 %v5736_v28, %v3955_v31 }
 0x9a0   : > { %v5626_v23 = vpop.f32.mrb[125].mxu1  ;;  %v5738_v25 = vpop.f32.mrb[125].mxu0 }
 0x9a1   : > { %v5627_v56 = vadd.f32 %v5626_v23, %v5625_v36  ;;  %v5739_v16 = vadd.f32 %v5738_v25, %v5737_v60  ;;  %v5628_v32 = vpop.f32.mrb[126].mxu1  ;;  %v5740_v58 = vpop.f32.mrb[126].mxu0 }
 0x9a2   : > { %v5629_v50 = vpop.f32.mrb[127].mxu1  ;;  %v5741_v1 = vpop.f32.mrb[127].mxu0 }
 0x9a3   : > { %v3960_v43 = vadd.f32 %v5627_v56, %v9257_v44  ;;  %v5630_v52 = vadd.f32 %v5629_v50, %v5628_v32  ;;  %v5742_v53 = vadd.f32 %v5741_v1, %v5740_v58  ;;  %v4463_v58 = vld [vmem:[%s10083_s15] sm:$0xff]  ;;  %v4464_v50 = vld [vmem:[%s10083_s15 + $0x8] sm:$0xff] }
 0x9a5   : > { %v3963_v33 = vadd.f32 %v5630_v52, %v9257_v44  ;;  %v9297_v46 = vadd.f32 %v5739_v16, %v3960_v43  ;;  %v9319_v52 = vpack.c.bf16 %v4464_v50, %v4463_v58 }
 0x9a7   : > { %v5631_v24 = vpop.f32.mrb[128].mxu1  ;;  %v5743_v15 = vpop.f32.mrb[128].mxu0  ;;  %v9299_v5 = vadd.f32 %v5742_v53, %v3963_v33  ;;  %v6649_v53 = vmov 0.0|0.0  }
 0x9a8   : > { %v5632_v9 = vpop.f32.mrb[129].mxu1  ;;  %v5744_v51 = vpop.f32.mrb[129].mxu0  ;;  %6233 = vmatprep.subr.bf16.mxu1 %v6649_v53 }
 0x9a9   : > { %v5633_v27 = vadd.f32 %v5632_v9, %v5631_v24  ;;  %v5745_v37 = vadd.f32 %v5744_v51, %v5743_v15  ;;  %v5634_v26 = vpop.f32.mrb[130].mxu1  ;;  %v5746_v45 = vpop.f32.mrb[130].mxu0  ;;  %v4465_v9 = vld [vmem:[%s10083_s15 + $0x10] sm:$0xff]  ;;  %v4466_v51 = vld [vmem:[%s10083_s15 + $0x18] sm:$0xff]  ;;  %6235 = vmatpush3.bf16.msra.mxu1 %v9319_v52 }
 0x9aa   : > { %v5635_v6 = vpop.f32.mrb[131].mxu1  ;;  %v5747_v10 = vpop.f32.mrb[131].mxu0  ;;  %6236 = vmatprep.subr.bf16.mxu1 %v6649_v53 }
 0x9ab   : > { %v3968_v40 = vadd.f32 %v5633_v27, %v9257_v44  ;;  %v5636_v29 = vadd.f32 %v5635_v6, %v5634_v26  ;;  %v5748_v2 = vadd.f32 %v5747_v10, %v5746_v45  ;;  %v9330_v27 = vpack.c.bf16 %v4466_v51, %v4465_v9 }
 0x9ad   : > { %v3971_v18 = vadd.f32 %v5636_v29, %v9257_v44  ;;  %v9303_v54 = vadd.f32 %v5745_v37, %v3968_v40  ;;  %v4467_v40 = vld [vmem:[%s10083_s15 + $0x20] sm:$0xff]  ;;  %v4468_v29 = vld [vmem:[%s10083_s15 + $0x28] sm:$0xff]  ;;  %6238 = vmatpush3.bf16.msra.mxu1 %v9330_v27 }
 0x9ae   : > { %6239 = vmatprep.subr.bf16.mxu1 %v6649_v53 }
 0x9af   : > { %v5637_v55 = vpop.f32.mrb[132].mxu1  ;;  %v5749_v4 = vpop.f32.mrb[132].mxu0  ;;  %v9305_v59 = vadd.f32 %v5748_v2, %v3971_v18 }
 0x9b0   : > { %v5638_v61 = vpop.f32.mrb[133].mxu1  ;;  %v5750_v0 = vpop.f32.mrb[133].mxu0 }
 0x9b1   : > { %v5639_v39 = vadd.f32 %v5638_v61, %v5637_v55  ;;  %v5751_v8 = vadd.f32 %v5750_v0, %v5749_v4  ;;  %v5640_v38 = vpop.f32.mrb[134].mxu1  ;;  %v5752_v19 = vpop.f32.mrb[134].mxu0  ;;  %v9345_v55 = vpack.c.bf16 %v4468_v29, %v4467_v40 }
 0x9b2   : > { %v5641_v57 = vpop.f32.mrb[135].mxu1  ;;  %v5753_v30 = vpop.f32.mrb[135].mxu0 }
 0x9b3   : > { %v3976_v14 = vadd.f32 %v5639_v39, %v9257_v44  ;;  %v5642_v22 = vadd.f32 %v5641_v57, %v5640_v38  ;;  %v5754_v41 = vadd.f32 %v5753_v30, %v5752_v19  ;;  %6241 = vmatpush3.bf16.msra.mxu1 %v9345_v55 }
 0x9b4   : > { %6242 = vmatprep.subr.bf16.mxu1 %v6649_v53 }
 0x9b5   : > { %v3979_v47 = vadd.f32 %v5642_v22, %v9257_v44  ;;  %v9309_v11 = vadd.f32 %v5751_v8, %v3976_v14  ;;  %v4469_v14 = vld [vmem:[%s10083_s15 + $0x30] sm:$0xff]  ;;  %v4470_v22 = vld [vmem:[%s10083_s15 + $0x38] sm:$0xff] }
 0x9b7   : > { %v5643_v28 = vpop.f32.mrb[136].mxu1  ;;  %v5755_v31 = vpop.f32.mrb[136].mxu0  ;;  %v9311_v36 = vadd.f32 %v5754_v41, %v3979_v47  ;;  %v9356_v41 = vpack.c.bf16 %v4470_v22, %v4469_v14 }
 0x9b8   : > { %v5644_v60 = vpop.f32.mrb[137].mxu1  ;;  %v5756_v23 = vpop.f32.mrb[137].mxu0 }
 0x9b9   : > { %v5645_v25 = vadd.f32 %v5644_v60, %v5643_v28  ;;  %v5757_v56 = vadd.f32 %v5756_v23, %v5755_v31  ;;  %v5646_v16 = vpop.f32.mrb[138].mxu1  ;;  %v5758_v32 = vpop.f32.mrb[138].mxu0  ;;  %6244 = vmatpush3.bf16.msra.mxu1 %v9356_v41 }
 0x9ba   : > { %v5647_v1 = vpop.f32.mrb[139].mxu1  ;;  %v5759_v43 = vpop.f32.mrb[139].mxu0  ;;  %6245 = vmatprep.subr.bf16.mxu1 %v6649_v53 }
 0x9bb   : > { %v3984_v33 = vadd.f32 %v5645_v25, %v9257_v44  ;;  %v5648_v24 = vadd.f32 %v5647_v1, %v5646_v16  ;;  %v5760_v15 = vadd.f32 %v5759_v43, %v5758_v32  ;;  %v4471_v25 = vld [vmem:[%s10083_s15 + $0x40] sm:$0xff] }
 0x9bd   : > { %v3987_v37 = vadd.f32 %v5648_v24, %v9257_v44  ;;  %v9333_v26 = vadd.f32 %v5757_v56, %v3984_v33  ;;  %v4472_v56 = vld [vmem:[%s10083_s15 + $0x48] sm:$0xff] }
 0x9be   : > { %v9371_v58 = vpack.c.bf16 %v4472_v56, %v4471_v25 }
 0x9bf   : > { %v5649_v45 = vpop.f32.mrb[140].mxu1  ;;  %v5761_v6 = vpop.f32.mrb[140].mxu0  ;;  %v9336_v10 = vadd.f32 %v5760_v15, %v3987_v37 }
 0x9c0   : > { %v5650_v2 = vpop.f32.mrb[141].mxu1  ;;  %v5762_v18 = vpop.f32.mrb[141].mxu0  ;;  %6247 = vmatpush3.bf16.msra.mxu1 %v9371_v58 }
 0x9c1   : > { %v5651_v4 = vadd.f32 %v5650_v2, %v5649_v45  ;;  %v5763_v61 = vadd.f32 %v5762_v18, %v5761_v6  ;;  %v5652_v0 = vpop.f32.mrb[142].mxu1  ;;  %v5764_v39 = vpop.f32.mrb[142].mxu0  ;;  %v4473_v45 = vld [vmem:[%s10083_s15 + $0x50] sm:$0xff]  ;;  %v4474_v6 = vld [vmem:[%s10083_s15 + $0x58] sm:$0xff]  ;;  %6248 = vmatprep.subr.bf16.mxu1 %v6649_v53 }
 0x9c2   : > { %v5653_v8 = vpop.f32.mrb[143].mxu1  ;;  %v5765_v38 = vpop.f32.mrb[143].mxu0  ;;  %v9382_v40 = vpack.c.bf16 %v4474_v6, %v4473_v45 }
 0x9c3   : > { %v3992_v19 = vadd.f32 %v5651_v4, %v9257_v44  ;;  %v5654_v57 = vadd.f32 %v5653_v8, %v5652_v0  ;;  %v5766_v30 = vadd.f32 %v5765_v38, %v5764_v39  ;;  %v4475_v0 = vld [vmem:[%s10083_s15 + $0x60] sm:$0xff]  ;;  %v4476_v39 = vld [vmem:[%s10083_s15 + $0x68] sm:$0xff] }
 0x9c4   : > { %6250 = vmatpush3.bf16.msra.mxu1 %v9382_v40 }
 0x9c5   : > { %v3995_v47 = vadd.f32 %v5654_v57, %v9257_v44  ;;  %v9359_v28 = vadd.f32 %v5763_v61, %v3992_v19  ;;  %v9397_v19 = vpack.c.bf16 %v4476_v39, %v4475_v0  ;;  %6251 = vmatprep.subr.bf16.mxu1 %v6649_v53 }
 0x9c7   : > { %v5655_v31 = vpop.f32.mrb[144].mxu1  ;;  %v5767_v60 = vpop.f32.mrb[144].mxu0  ;;  %v9362_v23 = vadd.f32 %v5766_v30, %v3995_v47 }
 0x9c8   : > { %v5656_v16 = vpop.f32.mrb[145].mxu1  ;;  %v5768_v32 = vpop.f32.mrb[145].mxu0  ;;  %6253 = vmatpush3.bf16.msra.mxu1 %v9397_v19 }
 0x9c9   : > { %v5657_v50 = vadd.f32 %v5656_v16, %v5655_v31  ;;  %v5769_v1 = vadd.f32 %v5768_v32, %v5767_v60  ;;  %v5658_v43 = vpop.f32.mrb[146].mxu1  ;;  %v5770_v33 = vpop.f32.mrb[146].mxu0  ;;  %v4477_v16 = vld [vmem:[%s10083_s15 + $0x70] sm:$0xff]  ;;  %v4478_v32 = vld [vmem:[%s10083_s15 + $0x78] sm:$0xff]  ;;  %6254 = vmatprep.subr.bf16.mxu1 %v6649_v53 }
 0x9ca   : > { %v5659_v24 = vpop.f32.mrb[147].mxu1  ;;  %v5771_v15 = vpop.f32.mrb[147].mxu0 }
 0x9cb   : > { %v4000_v9 = vadd.f32 %v5657_v50, %v9257_v44  ;;  %v5660_v51 = vadd.f32 %v5659_v24, %v5658_v43  ;;  %v5772_v37 = vadd.f32 %v5771_v15, %v5770_v33  ;;  %v9408_v50 = vpack.c.bf16 %v4478_v32, %v4477_v16 }
 0x9cd   : > { %v4003_v29 = vadd.f32 %v5660_v51, %v9257_v44  ;;  %v9385_v2 = vadd.f32 %v5769_v1, %v4000_v9  ;;  %6256 = vmatpush3.bf16.msra.mxu1 %v9408_v50 }
 0x9cf   : > { %v5661_v18 = vpop.f32.mrb[148].mxu1  ;;  %v5773_v4 = vpop.f32.mrb[148].mxu0  ;;  %v9388_v61 = vadd.f32 %v5772_v37, %v4003_v29 }
 0x9d0   : > { %v5662_v8 = vpop.f32.mrb[149].mxu1  ;;  %v5774_v38 = vpop.f32.mrb[149].mxu0 }
 0x9d1   : > { %v5663_v57 = vadd.f32 %v5662_v8, %v5661_v18  ;;  %v5775_v30 = vadd.f32 %v5774_v38, %v5773_v4  ;;  %v5664_v14 = vpop.f32.mrb[150].mxu1  ;;  %v5776_v22 = vpop.f32.mrb[150].mxu0 }
 0x9d2   : > { %v5665_v47 = vpop.f32.mrb[151].mxu1  ;;  %v5777_v31 = vpop.f32.mrb[151].mxu0 }
 0x9d3   : > { %v4008_v60 = vadd.f32 %v5663_v57, %v9257_v44  ;;  %v5666_v25 = vadd.f32 %v5665_v47, %v5664_v14  ;;  %v5778_v56 = vadd.f32 %v5777_v31, %v5776_v22 }
 0x9d5   : > { %v4011_v1 = vadd.f32 %v5666_v25, %v9257_v44  ;;  %v9411_v43 = vadd.f32 %v5775_v30, %v4008_v60 }
 0x9d7   : > { %v5667_v33 = vpop.f32.mrb[152].mxu1  ;;  %v5779_v24 = vpop.f32.mrb[152].mxu0  ;;  %v9414_v15 = vadd.f32 %v5778_v56, %v4011_v1 }
 0x9d8   : > { %v5668_v9 = vpop.f32.mrb[153].mxu1  ;;  %v5780_v51 = vpop.f32.mrb[153].mxu0 }
 0x9d9   : > { %v5669_v37 = vadd.f32 %v5668_v9, %v5667_v33  ;;  %v5781_v45 = vadd.f32 %v5780_v51, %v5779_v24  ;;  %v5670_v6 = vpop.f32.mrb[154].mxu1  ;;  %v5782_v29 = vpop.f32.mrb[154].mxu0 }
 0x9da   : > { %v5671_v18 = vpop.f32.mrb[155].mxu1  ;;  %v5783_v4 = vpop.f32.mrb[155].mxu0 }
 0x9db   : > { %v4016_v0 = vadd.f32 %v5669_v37, %v9257_v44  ;;  %v5672_v39 = vadd.f32 %v5671_v18, %v5670_v6  ;;  %v5784_v8 = vadd.f32 %v5783_v4, %v5782_v29 }
 0x9dd   : > { %v4019_v38 = vadd.f32 %v5672_v39, %v9257_v44  ;;  %v9419_v57 = vadd.f32 %v5781_v45, %v4016_v0 }
 0x9df   : > { %v5673_v30 = vpop.f32.mrb[156].mxu1  ;;  %v5785_v14 = vpop.f32.mrb[156].mxu0  ;;  %v9421_v22 = vadd.f32 %v5784_v8, %v4019_v38 }
 0x9e0   : > { %v5674_v47 = vpop.f32.mrb[157].mxu1  ;;  %v5786_v31 = vpop.f32.mrb[157].mxu0 }
 0x9e1   : > { %v5675_v60 = vadd.f32 %v5674_v47, %v5673_v30  ;;  %v5787_v25 = vadd.f32 %v5786_v31, %v5785_v14  ;;  %v5676_v56 = vpop.f32.mrb[158].mxu1  ;;  %v5788_v16 = vpop.f32.mrb[158].mxu0 }
 0x9e2   : > { %v5677_v32 = vpop.f32.mrb[159].mxu1  ;;  %v5789_v1 = vpop.f32.mrb[159].mxu0 }
 0x9e3   : > { %v4024_v33 = vadd.f32 %v5675_v60, %v9257_v44  ;;  %v5678_v24 = vadd.f32 %v5677_v32, %v5676_v56  ;;  %v5790_v9 = vadd.f32 %v5789_v1, %v5788_v16 }
 0x9e5   : > { %v4027_v51 = vadd.f32 %v5678_v24, %v9257_v44  ;;  %v9425_v37 = vadd.f32 %v5787_v25, %v4024_v33 }
 0x9e7   : > { %v5679_v45 = vpop.f32.mrb[160].mxu1  ;;  %v5791_v6 = vpop.f32.mrb[160].mxu0  ;;  %v9427_v29 = vadd.f32 %v5790_v9, %v4027_v51 }
 0x9e8   : > { %v5680_v18 = vpop.f32.mrb[161].mxu1  ;;  %v5792_v4 = vpop.f32.mrb[161].mxu0 }
 0x9e9   : > { %v5681_v0 = vadd.f32 %v5680_v18, %v5679_v45  ;;  %v5793_v39 = vadd.f32 %v5792_v4, %v5791_v6  ;;  %v5682_v8 = vpop.f32.mrb[162].mxu1  ;;  %v5794_v38 = vpop.f32.mrb[162].mxu0 }
 0x9ea   : > { %v5683_v30 = vpop.f32.mrb[163].mxu1  ;;  %v5795_v14 = vpop.f32.mrb[163].mxu0 }
 0x9eb   : > { %v4032_v47 = vadd.f32 %v5681_v0, %v9257_v44  ;;  %v5684_v31 = vadd.f32 %v5683_v30, %v5682_v8  ;;  %v5796_v60 = vadd.f32 %v5795_v14, %v5794_v38 }
 0x9ed   : > { %v4035_v56 = vadd.f32 %v5684_v31, %v9257_v44  ;;  %v9431_v25 = vadd.f32 %v5793_v39, %v4032_v47 }
 0x9ef   : > { %v5965_v16 = vpop.f32.mrb[164].mxu1  ;;  %v9433_v32 = vadd.f32 %v5796_v60, %v4035_v56 }
 0x9f0   : > { %v9436_v1 = vadd.f32 %v5965_v16, %v9267_v62  ;;  %v4233_v33 = vpop.f32.mrb[165].mxu1 }
 0x9f1   : > { %v9439_v24 = vadd.f32 %v4233_v33, %v9261_v48  ;;  %v5966_v9 = vpop.f32.mrb[166].mxu1 }
 0x9f2   : > { %v9442_v51 = vadd.f32 %v5966_v9, %v9269_v35  ;;  %v4236_v45 = vpop.f32.mrb[167].mxu1  ;;  %v4362_v48 = vmul.f32 %v9436_v1, %v9436_v1 }
 0x9f3   : > { %v9445_v6 = vadd.f32 %v4236_v45, %v9263_v49  ;;  %v4360_v44 = vmul.f32 %v9439_v24, %v9439_v24 }
 0x9f4   : > { %v4363_v18 = vmul.f32 %v9442_v51, %v9442_v51 }
 0x9f5   : > { %v4361_v62 = vmul.f32 %v9445_v6, %v9445_v6  ;;  %v6147_v35 = vpack.c.bf16 %v9445_v6, %v9439_v24 }
 0x9f6   : > { %v6149_v30 = vpack.c.bf16 %v4363_v18, %v4362_v48 }
 0x9f7   : > { %v5969_v4 = vpop.f32.mrb[168].mxu1  ;;  %v6145_v0 = vpack.c.bf16 %v4361_v62, %v4360_v44 }
 0x9f8   : > { %v9458_v49 = vadd.f32 %v5969_v4, %v9279_v13  ;;  %v4249_v39 = vpop.f32.mrb[169].mxu1  ;;  %v6151_v13 = vpack.c.bf16 %v9442_v51, %v9436_v1 }
 0x9f9   : > { %v9461_v8 = vadd.f32 %v4249_v39, %v9273_v3  ;;  %v5970_v38 = vpop.f32.mrb[170].mxu1  ;;  %6146 = vmatprep.subr.bf16.mxu0 %v6145_v0 }
 0x9fa   : > { %v9464_v14 = vadd.f32 %v5970_v38, %v9281_v12  ;;  %v4252_v47 = vpop.f32.mrb[171].mxu1  ;;  %6148 = vmatpush1.bf16.msra.mxu0 %v6147_v35  ;;  %v4366_v12 = vmul.f32 %v9458_v49, %v9458_v49 }
 0x9fb   : > { %v9467_v31 = vadd.f32 %v4252_v47, %v9275_v21  ;;  %6150 = vmatprep.subr.bf16.mxu0 %v6149_v30  ;;  %v4364_v60 = vmul.f32 %v9461_v8, %v9461_v8 }
 0x9fc   : > { %v4367_v3 = vmul.f32 %v9464_v14, %v9464_v14 }
 0x9fd   : > { %v4365_v56 = vmul.f32 %v9467_v31, %v9467_v31  ;;  %v6155_v33 = vpack.c.bf16 %v9467_v31, %v9461_v8 }
 0x9fe   : > { %6152 = vmatpush1.bf16.msra.mxu0 %v6151_v13  ;;  %v6157_v62 = vpack.c.bf16 %v4367_v3, %v4366_v12 }
 0x9ff   : > { %v5973_v16 = vpop.f32.mrb[172].mxu1  ;;  %v6153_v21 = vpack.c.bf16 %v4365_v56, %v4364_v60 }
 0xa00   : > { %v9482_v9 = vadd.f32 %v5973_v16, %v9291_v42  ;;  %v4265_v45 = vpop.f32.mrb[173].mxu1  ;;  %v6159_v42 = vpack.c.bf16 %v9464_v14, %v9458_v49 }
 0xa01   : > { %v9485_v44 = vadd.f32 %v4265_v45, %v9285_v20  ;;  %v5974_v18 = vpop.f32.mrb[174].mxu1  ;;  %6154 = vmatprep.subr.bf16.mxu0 %v6153_v21 }
 0xa02   : > { %v9488_v48 = vadd.f32 %v5974_v18, %v9293_v63  ;;  %v4268_v4 = vpop.f32.mrb[175].mxu1  ;;  %6156 = vmatpush1.bf16.msra.mxu0 %v6155_v33  ;;  %v4370_v63 = vmul.f32 %v9482_v9, %v9482_v9 }
 0xa03   : > { %v9491_v0 = vadd.f32 %v4268_v4, %v9287_v17  ;;  %6158 = vmatprep.subr.bf16.mxu0 %v6157_v62  ;;  %v4368_v35 = vmul.f32 %v9485_v44, %v9485_v44 }
 0xa04   : > { %v4371_v20 = vmul.f32 %v9488_v48, %v9488_v48 }
 0xa05   : > { %v4369_v39 = vmul.f32 %v9491_v0, %v9491_v0  ;;  %v6163_v30 = vpack.c.bf16 %v9491_v0, %v9485_v44 }
 0xa06   : > { %6160 = vmatpush1.bf16.msra.mxu0 %v6159_v42  ;;  %v6165_v56 = vpack.c.bf16 %v4371_v20, %v4370_v63 }
 0xa07   : > { %v5977_v38 = vpop.f32.mrb[176].mxu1  ;;  %v6161_v17 = vpack.c.bf16 %v4369_v39, %v4368_v35 }
 0xa08   : > { %v9506_v47 = vadd.f32 %v5977_v38, %v9303_v54  ;;  %v4281_v13 = vpop.f32.mrb[177].mxu1  ;;  %v6167_v54 = vpack.c.bf16 %v9488_v48, %v9482_v9 }
 0xa09   : > { %v9509_v60 = vadd.f32 %v4281_v13, %v9297_v46  ;;  %v5978_v3 = vpop.f32.mrb[178].mxu1  ;;  %6162 = vmatprep.subr.bf16.mxu0 %v6161_v17 }
 0xa0a   : > { %v9512_v12 = vadd.f32 %v5978_v3, %v9305_v59  ;;  %v4284_v16 = vpop.f32.mrb[179].mxu1  ;;  %6164 = vmatpush1.bf16.msra.mxu0 %v6163_v30  ;;  %v4374_v59 = vmul.f32 %v9506_v47, %v9506_v47 }
 0xa0b   : > { %v9515_v21 = vadd.f32 %v4284_v16, %v9299_v5  ;;  %6166 = vmatprep.subr.bf16.mxu0 %v6165_v56  ;;  %v4372_v33 = vmul.f32 %v9509_v60, %v9509_v60 }
 0xa0c   : > { %v4375_v46 = vmul.f32 %v9512_v12, %v9512_v12 }
 0xa0d   : > { %v4373_v45 = vmul.f32 %v9515_v21, %v9515_v21  ;;  %v6171_v62 = vpack.c.bf16 %v9515_v21, %v9509_v60 }
 0xa0e   : > { %6168 = vmatpush1.bf16.msra.mxu0 %v6167_v54  ;;  %v6173_v39 = vpack.c.bf16 %v4375_v46, %v4374_v59 }
 0xa0f   : > { %v5981_v18 = vpop.f32.mrb[180].mxu1  ;;  %v6169_v5 = vpack.c.bf16 %v4373_v45, %v4372_v33 }
 0xa10   : > { %v9530_v4 = vadd.f32 %v5981_v18, %v9333_v26  ;;  %v4297_v42 = vpop.f32.mrb[181].mxu1  ;;  %v6175_v26 = vpack.c.bf16 %v9512_v12, %v9506_v47 }
 0xa11   : > { %v9533_v35 = vadd.f32 %v4297_v42, %v9309_v11  ;;  %v5982_v20 = vpop.f32.mrb[182].mxu1  ;;  %6170 = vmatprep.subr.bf16.mxu0 %v6169_v5 }
 0xa12   : > { %v9536_v63 = vadd.f32 %v5982_v20, %v9336_v10  ;;  %v4300_v38 = vpop.f32.mrb[183].mxu1  ;;  %6172 = vmatpush1.bf16.msra.mxu0 %v6171_v62  ;;  %v4378_v10 = vmul.f32 %v9530_v4, %v9530_v4 }
 0xa13   : > { %v9539_v17 = vadd.f32 %v4300_v38, %v9311_v36  ;;  %6174 = vmatprep.subr.bf16.mxu0 %v6173_v39  ;;  %v4376_v30 = vmul.f32 %v9533_v35, %v9533_v35 }
 0xa14   : > { %v4379_v11 = vmul.f32 %v9536_v63, %v9536_v63 }
 0xa15   : > { %v4377_v13 = vmul.f32 %v9539_v17, %v9539_v17  ;;  %v6179_v56 = vpack.c.bf16 %v9539_v17, %v9533_v35 }
 0xa16   : > { %6176 = vmatpush1.bf16.msra.mxu0 %v6175_v26  ;;  %v6181_v45 = vpack.c.bf16 %v4379_v11, %v4378_v10 }
 0xa17   : > { %v5985_v3 = vpop.f32.mrb[184].mxu1  ;;  %v6177_v36 = vpack.c.bf16 %v4377_v13, %v4376_v30 }
 0xa18   : > { %v9554_v16 = vadd.f32 %v5985_v3, %v9385_v2  ;;  %v4313_v54 = vpop.f32.mrb[185].mxu1  ;;  %v6183_v2 = vpack.c.bf16 %v9536_v63, %v9530_v4 }
 0xa19   : > { %v9557_v33 = vadd.f32 %v4313_v54, %v9359_v28  ;;  %v5986_v46 = vpop.f32.mrb[186].mxu1  ;;  %6178 = vmatprep.subr.bf16.mxu0 %v6177_v36 }
 0xa1a   : > { %v9560_v59 = vadd.f32 %v5986_v46, %v9388_v61  ;;  %v4316_v18 = vpop.f32.mrb[187].mxu1  ;;  %6180 = vmatpush1.bf16.msra.mxu0 %v6179_v56  ;;  %v4382_v61 = vmul.f32 %v9554_v16, %v9554_v16 }
 0xa1b   : > { %v9563_v5 = vadd.f32 %v4316_v18, %v9362_v23  ;;  %6182 = vmatprep.subr.bf16.mxu0 %v6181_v45  ;;  %v4380_v62 = vmul.f32 %v9557_v33, %v9557_v33 }
 0xa1c   : > { %v4383_v28 = vmul.f32 %v9560_v59, %v9560_v59 }
 0xa1d   : > { %v4381_v42 = vmul.f32 %v9563_v5, %v9563_v5  ;;  %v6187_v39 = vpack.c.bf16 %v9563_v5, %v9557_v33 }
 0xa1e   : > { %6184 = vmatpush1.bf16.msra.mxu0 %v6183_v2  ;;  %v6189_v13 = vpack.c.bf16 %v4383_v28, %v4382_v61 }
 0xa1f   : > { %v5989_v20 = vpop.f32.mrb[188].mxu1  ;;  %v6185_v23 = vpack.c.bf16 %v4381_v42, %v4380_v62 }
 0xa20   : > { %v9578_v38 = vadd.f32 %v5989_v20, %v9419_v57  ;;  %v4329_v26 = vpop.f32.mrb[189].mxu1  ;;  %v6191_v57 = vpack.c.bf16 %v9560_v59, %v9554_v16 }
 0xa21   : > { %v9581_v30 = vadd.f32 %v4329_v26, %v9411_v43  ;;  %v5990_v11 = vpop.f32.mrb[190].mxu1  ;;  %6186 = vmatprep.subr.bf16.mxu0 %v6185_v23 }
 0xa22   : > { %v9584_v10 = vadd.f32 %v5990_v11, %v9421_v22  ;;  %v4332_v3 = vpop.f32.mrb[191].mxu1  ;;  %6188 = vmatpush1.bf16.msra.mxu0 %v6187_v39  ;;  %v4386_v22 = vmul.f32 %v9578_v38, %v9578_v38 }
 0xa23   : > { %v9587_v36 = vadd.f32 %v4332_v3, %v9414_v15  ;;  %6190 = vmatprep.subr.bf16.mxu0 %v6189_v13  ;;  %v4384_v56 = vmul.f32 %v9581_v30, %v9581_v30 }
 0xa24   : > { %v4387_v43 = vmul.f32 %v9584_v10, %v9584_v10 }
 0xa25   : > { %v4385_v54 = vmul.f32 %v9587_v36, %v9587_v36  ;;  %v6195_v45 = vpack.c.bf16 %v9587_v36, %v9581_v30 }
 0xa26   : > { %6192 = vmatpush1.bf16.msra.mxu0 %v6191_v57  ;;  %v6197_v42 = vpack.c.bf16 %v4387_v43, %v4386_v22 }
 0xa27   : > { %v5993_v46 = vpop.f32.mrb[192].mxu1  ;;  %v6193_v15 = vpack.c.bf16 %v4385_v54, %v4384_v56 }
 0xa28   : > { %v9602_v18 = vadd.f32 %v5993_v46, %v9431_v25  ;;  %v4345_v2 = vpop.f32.mrb[193].mxu1  ;;  %v6199_v25 = vpack.c.bf16 %v9584_v10, %v9578_v38 }
 0xa29   : > { %v9605_v62 = vadd.f32 %v4345_v2, %v9425_v37  ;;  %v5994_v28 = vpop.f32.mrb[194].mxu1  ;;  %6194 = vmatprep.subr.bf16.mxu0 %v6193_v15 }
 0xa2a   : > { %v9608_v61 = vadd.f32 %v5994_v28, %v9433_v32  ;;  %v4348_v20 = vpop.f32.mrb[195].mxu1  ;;  %6196 = vmatpush1.bf16.msra.mxu0 %v6195_v45  ;;  %v4390_v32 = vmul.f32 %v9602_v18, %v9602_v18 }
 0xa2b   : > { %v9611_v23 = vadd.f32 %v4348_v20, %v9427_v29  ;;  %6198 = vmatprep.subr.bf16.mxu0 %v6197_v42  ;;  %v4388_v39 = vmul.f32 %v9605_v62, %v9605_v62 }
 0xa2c   : > { %v4391_v37 = vmul.f32 %v9608_v61, %v9608_v61  ;;  %v6207_v3 = vpack.c.bf16 %v9608_v61, %v9602_v18 }
 0xa2d   : > { %v4389_v26 = vmul.f32 %v9611_v23, %v9611_v23  ;;  %v6203_v29 = vpack.c.bf16 %v9611_v23, %v9605_v62 }
 0xa2e   : > { %6200 = vmatpush1.bf16.msra.mxu0 %v6199_v25  ;;  %v6205_v13 = vpack.c.bf16 %v4391_v37, %v4390_v32 }
 0xa2f   : > { %v6201_v11 = vpack.c.bf16 %v4389_v26, %v4388_v39 }
 0xa31   : > { %6202 = vmatprep.subr.bf16.mxu0 %v6201_v11 }
 0xa32   : > { %6204 = vmatpush1.bf16.msra.mxu0 %v6203_v29 }
 0xa33   : > { %6206 = vmatprep.subr.bf16.mxu0 %v6205_v13 }
 0xa36   : > { %6208 = vmatpush1.bf16.msra.mxu0 %v6207_v3 }
 0xa37   : > { %6209 = vmatprep.subr.bf16.mxu0 %v6649_v53 }
 0xa39   : > { %4457 = vmatmul.mubr.f32.vlgmr.msra.gmra.mrb[98].mxu0 %v10343_v34  ;;  %v6651_v34 = vmov 0.0  }
 0xa3a   : > { %6211 = vmatpush3.bf16.msra.mxu0 %v9319_v52  ;;  %6027 = vmatprep.mubr.msk.f32.mxu0 %vm6650_vm6, %v6651_v34  ;;  %v4806_v52 = vld [vmem:[#allocation2] sm:$0x1] }
 0xa3b   : > { %6212 = vmatprep.subr.bf16.mxu0 %v6649_v53  ;;  %6062 = vmatprep.mubr.msk.f32.mxu1 %vm6650_vm6, %v6651_v34  ;;  %6258 = vpush %v4806_v52 }
 0xa3e   : > { %6214 = vmatpush3.bf16.msra.mxu0 %v9330_v27 }
 0xa3f   : > { %6215 = vmatprep.subr.bf16.mxu0 %v6649_v53 }
 0xa42   : > { %6217 = vmatpush3.bf16.msra.mxu0 %v9345_v55 }
 0xa43   : > { %6218 = vmatprep.subr.bf16.mxu0 %v6649_v53 }
 0xa46   : > { %6220 = vmatpush3.bf16.msra.mxu0 %v9356_v41 }
 0xa47   : > { %6221 = vmatprep.subr.bf16.mxu0 %v6649_v53 }
 0xa4a   : > { %6223 = vmatpush3.bf16.msra.mxu0 %v9371_v58 }
 0xa4b   : > { %6224 = vmatprep.subr.bf16.mxu0 %v6649_v53 }
 0xa4e   : > { %6226 = vmatpush3.bf16.msra.mxu0 %v9382_v40 }
 0xa4f   : > { %6227 = vmatprep.subr.bf16.mxu0 %v6649_v53 }
 0xa52   : > { %6229 = vmatpush3.bf16.msra.mxu0 %v9397_v19 }
 0xa53   : > { %6230 = vmatprep.subr.bf16.mxu0 %v6649_v53 }
 0xa56   : > { %6232 = vmatpush3.bf16.msra.mxu0 %v9408_v50 }
 0xa6c   : > { %s6259_s20 = spop %6258 }
 0xb0c   : > { %v4458_v27 = vpop.f32.mrb[98].mxu0 }
 0xb0d   : > { %6028 = vmatmul.mubr.f32.vlgmr.msra.gmra.mrb[164].mxu0 %v4458_v27  ;;  %v4460_v55 = vpop.f32.mrb[99].mxu0 }
 0xb0e   : > { %6063 = vmatmul.mubr.f32.vlgmr.msra.gmra.mrb[98].mxu1 %v4460_v55 }
 0xbe0   : > { %v4545_v41 = vpop.f32.mrb[164].mxu0 }
 0xbe1   : > { %v4615_v58 = vpop.f32.mrb[98].mxu1  ;;  %v6029_v40 = vpop.f32.mrb[165].mxu0  ;;  %v4619_v56 = vmul.f32 %v4545_v41, %v4545_v41  ;;  %v9645_v50 = vrot.slane %v4545_v41, %v8452_v7 }
 0xbe2   : > { %v6064_v57 = vpop.f32.mrb[99].mxu1 }
 0xbe3   : > { %v4620_v19 = vsub.f32 %v4615_v58, %v4619_v56  ;;  %v4626_v54 = vsub.f32 %v9439_v24, %v9645_v50  ;;  %v4627_v22 = vsub.f32 %v9445_v6, %v9645_v50  ;;  %v4628_v46 = vsub.f32 %v9436_v1, %v9645_v50 }
 0xbe4   : > { %v4629_v15 = vsub.f32 %v9442_v51, %v9645_v50  ;;  %v4630_v45 = vsub.f32 %v9461_v8, %v9645_v50  ;;  %v4631_v2 = vsub.f32 %v9467_v31, %v9645_v50  ;;  %v4632_v28 = vsub.f32 %v9458_v49, %v9645_v50 }
 0xbe5   : > { %v4621_v43 = vmax.f32 %v4620_v19, 0.0  ;;  %v4633_v24 = vsub.f32 %v9464_v14, %v9645_v50  ;;  %v4634_v6 = vsub.f32 %v9485_v44, %v9645_v50  ;;  %v4635_v1 = vsub.f32 %v9491_v0, %v9645_v50 }
 0xbe6   : > { %v4636_v51 = vsub.f32 %v9482_v9, %v9645_v50  ;;  %v4637_v8 = vsub.f32 %v9488_v48, %v9645_v50  ;;  %v4638_v31 = vsub.f32 %v9509_v60, %v9645_v50  ;;  %v4639_v49 = vsub.f32 %v9515_v21, %v9645_v50 }
 0xbe7   : > { %v4658_v53 = vadd.f32 1e-05, %v4621_v43  ;;  %v4640_v14 = vsub.f32 %v9506_v47, %v9645_v50  ;;  %v4641_v44 = vsub.f32 %v9512_v12, %v9645_v50  ;;  %v4642_v0 = vsub.f32 %v9533_v35, %v9645_v50 }
 0xbe8   : > { %v4643_v9 = vsub.f32 %v9539_v17, %v9645_v50  ;;  %v4644_v48 = vsub.f32 %v9530_v4, %v9645_v50  ;;  %v4645_v60 = vsub.f32 %v9536_v63, %v9645_v50  ;;  %v4646_v21 = vsub.f32 %v9557_v33, %v9645_v50 }
 0xbe9   : > { %6578 = vrsqrt.f32 %v4658_v53  ;;  %v4647_v47 = vsub.f32 %v9563_v5, %v9645_v50  ;;  %v4648_v12 = vsub.f32 %v9554_v16, %v9645_v50  ;;  %v4649_v35 = vsub.f32 %v9560_v59, %v9645_v50 }
 0xbea   : > { %v4650_v17 = vsub.f32 %v9581_v30, %v9645_v50  ;;  %v4651_v4 = vsub.f32 %v9587_v36, %v9645_v50  ;;  %v4652_v63 = vsub.f32 %v9578_v38, %v9645_v50  ;;  %v4653_v33 = vsub.f32 %v9584_v10, %v9645_v50 }
 0xbeb   : > { %v4654_v16 = vsub.f32 %v9605_v62, %v9645_v50  ;;  %v4655_v59 = vsub.f32 %v9611_v23, %v9645_v50  ;;  %v4656_v30 = vsub.f32 %v9602_v18, %v9645_v50  ;;  %v4657_v36 = vsub.f32 %v9608_v61, %v9645_v50 }
 0xbf3   : > { %v6579_v42 = vpop.eup %6578 }
 0xbf4   : > { %v4663_v5 = vrot.slane %v6579_v42, %v8452_v7 }
 0xbf6   : > { %v4664_v20 = vmul.f32 %v4663_v5, %v4626_v54  ;;  %v4665_v25 = vmul.f32 %v4663_v5, %v4627_v22  ;;  %v4666_v38 = vmul.f32 %v4663_v5, %v4628_v46  ;;  %v4667_v39 = vmul.f32 %v4663_v5, %v4629_v15  ;;  %v5211_v46 = vld [vmem:[%s10079_s11] ss:$0 sm:$0xff] }
 0xbf7   : > { %v4668_v37 = vmul.f32 %v4663_v5, %v4630_v45  ;;  %v4669_v10 = vmul.f32 %v4663_v5, %v4631_v2  ;;  %v4670_v26 = vmul.f32 %v4663_v5, %v4632_v28  ;;  %v4671_v7 = vmul.f32 %v4663_v5, %v4633_v24 }
 0xbf8   : > { %v4672_v32 = vmul.f32 %v4663_v5, %v4634_v6  ;;  %v4673_v11 = vmul.f32 %v4663_v5, %v4635_v1  ;;  %v4674_v62 = vmul.f32 %v4663_v5, %v4636_v51  ;;  %v4675_v29 = vmul.f32 %v4663_v5, %v4637_v8 }
 0xbf9   : > { %v4676_v13 = vmul.f32 %v4663_v5, %v4638_v31  ;;  %v4677_v23 = vmul.f32 %v4663_v5, %v4639_v49  ;;  %v4678_v3 = vmul.f32 %v4663_v5, %v4640_v14  ;;  %v4679_v34 = vmul.f32 %v4663_v5, %v4641_v44 }
 0xbfa   : > { %v4680_v18 = vmul.f32 %v4663_v5, %v4642_v0  ;;  %v4681_v52 = vmul.f32 %v4663_v5, %v4643_v9  ;;  %v4682_v27 = vmul.f32 %v4663_v5, %v4644_v48  ;;  %v4683_v61 = vmul.f32 %v4663_v5, %v4645_v60 }
 0xbfb   : > { %v4684_v55 = vmul.f32 %v4663_v5, %v4646_v21  ;;  %v4685_v41 = vmul.f32 %v4663_v5, %v4647_v47  ;;  %v4686_v58 = vmul.f32 %v4663_v5, %v4648_v12  ;;  %v4687_v40 = vmul.f32 %v4663_v5, %v4649_v35  ;;  %v5212_v35 = vld [vmem:[%s10080_s12] ss:$0 sm:$0xff] }
 0xbfc   : > { %v4688_v57 = vmul.f32 %v4663_v5, %v4650_v17  ;;  %v4689_v56 = vmul.f32 %v4663_v5, %v4651_v4  ;;  %v4690_v19 = vmul.f32 %v4663_v5, %v4652_v63  ;;  %v4691_v43 = vmul.f32 %v4663_v5, %v4653_v33 }
 0xbfd   : > { %v4692_v53 = vmul.f32 %v4663_v5, %v4654_v16  ;;  %v4693_v50 = vmul.f32 %v4663_v5, %v4655_v59  ;;  %v4694_v54 = vmul.f32 %v4663_v5, %v4656_v30  ;;  %v4695_v22 = vmul.f32 %v4663_v5, %v4657_v36 }
 0xbfe   : > { %v9715_v15 = vstv %s6259_s20  ;;  %v4703_v45 = vmul.f32 %v5211_v46, %v4664_v20  ;;  %v4704_v2 = vmul.f32 %v5211_v46, %v4665_v25  ;;  %v4705_v28 = vmul.f32 %v5211_v46, %v4666_v38  ;;  %s10027_s20 = scalar_lea.sflag [#allocation4], %s527_s21 }
 0xbff   : > { %v4706_v24 = vmul.f32 %v5211_v46, %v4667_v39  ;;  %v4707_v6 = vmul.f32 %v5211_v46, %v4668_v37  ;;  %v4708_v1 = vmul.f32 %v5211_v46, %v4669_v10  ;;  %v4709_v51 = vmul.f32 %v5211_v46, %v4670_v26 }
 0xc00   : > { %v4710_v8 = vmul.f32 %v5211_v46, %v4671_v7  ;;  %v4711_v31 = vmul.f32 %v5211_v46, %v4672_v32  ;;  %v4712_v49 = vmul.f32 %v5211_v46, %v4673_v11  ;;  %v4713_v14 = vmul.f32 %v5211_v46, %v4674_v62 }
 0xc01   : > { %v4714_v44 = vmul.f32 %v5211_v46, %v4675_v29  ;;  %v4715_v0 = vmul.f32 %v5211_v46, %v4676_v13  ;;  %v4716_v9 = vmul.f32 %v5211_v46, %v4677_v23  ;;  %v4717_v48 = vmul.f32 %v5211_v46, %v4678_v3 }
 0xc02   : > { %v4718_v60 = vmul.f32 %v5211_v46, %v4679_v34  ;;  %v4719_v21 = vmul.f32 %v5211_v46, %v4680_v18  ;;  %v4720_v42 = vmul.f32 %v5211_v46, %v4681_v52  ;;  %v4721_v47 = vmul.f32 %v5211_v46, %v4682_v27 }
 0xc03   : > { %v4722_v12 = vmul.f32 %v5211_v46, %v4683_v61  ;;  %v4723_v17 = vmul.f32 %v5211_v46, %v4684_v55  ;;  %v4724_v4 = vmul.f32 %v5211_v46, %v4685_v41  ;;  %v4725_v63 = vmul.f32 %v5211_v46, %v4686_v58 }
 0xc04   : > { %v4726_v33 = vmul.f32 %v5211_v46, %v4687_v40  ;;  %v4727_v5 = vmul.f32 %v5211_v46, %v4688_v57  ;;  %v4728_v16 = vmul.f32 %v5211_v46, %v4689_v56  ;;  %v4729_v59 = vmul.f32 %v5211_v46, %v4690_v19 }
 0xc05   : > { %v4730_v30 = vmul.f32 %v5211_v46, %v4691_v43  ;;  %v4731_v36 = vmul.f32 %v5211_v46, %v4692_v53  ;;  %v4732_v20 = vmul.f32 %v5211_v46, %v4693_v50  ;;  %v4733_v25 = vmul.f32 %v5211_v46, %v4694_v54 }
 0xc06   : > { %v4734_v38 = vmul.f32 %v5211_v46, %v4695_v22  ;;  %v9720_v39 = vadd.f32 %v5212_v35, %v4703_v45  ;;  %v9722_v37 = vadd.f32 %v5212_v35, %v4704_v2  ;;  %v9724_v10 = vadd.f32 %v5212_v35, %v4705_v28 }
 0xc07   : > { %v9726_v26 = vadd.f32 %v5212_v35, %v4706_v24  ;;  %v9728_v7 = vadd.f32 %v5212_v35, %v4707_v6  ;;  %v9730_v32 = vadd.f32 %v5212_v35, %v4708_v1  ;;  %v9732_v11 = vadd.f32 %v5212_v35, %v4709_v51 }
 0xc08   : > { %v9734_v62 = vadd.f32 %v5212_v35, %v4710_v8  ;;  %v9736_v29 = vadd.f32 %v5212_v35, %v4711_v31  ;;  %v9738_v13 = vadd.f32 %v5212_v35, %v4712_v49  ;;  %v9740_v23 = vadd.f32 %v5212_v35, %v4713_v14 }
 0xc09   : > { %v9742_v3 = vadd.f32 %v5212_v35, %v4714_v44  ;;  %v9744_v34 = vadd.f32 %v5212_v35, %v4715_v0  ;;  %v9746_v18 = vadd.f32 %v5212_v35, %v4716_v9  ;;  %v9748_v52 = vadd.f32 %v5212_v35, %v4717_v48 }
 0xc0a   : > { %v9750_v27 = vadd.f32 %v5212_v35, %v4718_v60  ;;  %v9752_v61 = vadd.f32 %v5212_v35, %v4719_v21  ;;  %v9754_v55 = vadd.f32 %v5212_v35, %v4720_v42  ;;  %v9756_v41 = vadd.f32 %v5212_v35, %v4721_v47 }
 0xc0b   : > { %v9758_v58 = vadd.f32 %v5212_v35, %v4722_v12  ;;  %v9760_v40 = vadd.f32 %v5212_v35, %v4723_v17  ;;  %v9762_v57 = vadd.f32 %v5212_v35, %v4724_v4  ;;  %v9764_v56 = vadd.f32 %v5212_v35, %v4725_v63 }
 0xc0c   : > { %v9766_v19 = vadd.f32 %v5212_v35, %v4726_v33  ;;  %v9768_v43 = vadd.f32 %v5212_v35, %v4727_v5  ;;  %v9770_v53 = vadd.f32 %v5212_v35, %v4728_v16  ;;  %v9772_v50 = vadd.f32 %v5212_v35, %v4729_v59 }
 0xc0d   : > { %v9774_v54 = vadd.f32 %v5212_v35, %v4730_v30  ;;  %v9776_v22 = vadd.f32 %v5212_v35, %v4731_v36  ;;  %v9778_v46 = vadd.f32 %v5212_v35, %v4732_v20  ;;  %v9780_v45 = vadd.f32 %v5212_v35, %v4733_v25 }
 0xc0e   : > { %10398 = vst [vmem:[#allocation47_spill] sm:$0xff] %v9768_v43  ;;  %10399 = vst [vmem:[#allocation12_spill] sm:$0xff] %v9770_v53  ;;  %v9782_v2 = vadd.f32 %v5212_v35, %v4734_v38  ;;  %vm4774_vm11 = vcmp.ge.f32.partialorder %v9720_v39, 0.0  ;;  %vm4775_vm12 = vcmp.ge.f32.partialorder %v9722_v37, 0.0  ;;  %vm4776_vm13 = vcmp.ge.f32.partialorder %v9724_v10, 0.0 }
 0xc0f   : > { %10400 = vst [vmem:[#allocation45_spill] sm:$0xff] %v9774_v54  ;;  %10401 = vst [vmem:[#allocation49_spill] sm:$0xff] %v9776_v22  ;;  %vm4777_vm14 = vcmp.ge.f32.partialorder %v9726_v26, 0.0  ;;  %vm4778_vm15 = vcmp.ge.f32.partialorder %v9728_v7, 0.0  ;;  %vm4779_vm0 = vcmp.ge.f32.partialorder %v9730_v32, 0.0  ;;  %vm4780_vm1 = vcmp.ge.f32.partialorder %v9732_v11, 0.0 }
 0xc10   : > { %10402 = vst [vmem:[#allocation14_spill] sm:$0xff] %v9778_v46  ;;  %vm4781_vm2 = vcmp.ge.f32.partialorder %v9734_v62, 0.0  ;;  %vm4782_vm3 = vcmp.ge.f32.partialorder %v9736_v29, 0.0  ;;  %vm4783_vm4 = vcmp.ge.f32.partialorder %v9738_v13, 0.0  ;;  %vm4784_vm5 = vcmp.ge.f32.partialorder %v9740_v23, 0.0 }
 0xc11   : > { %vm4785_vm7 = vcmp.ge.f32.partialorder %v9742_v3, 0.0  ;;  %v4809_v28 = vmul.f32 %v9715_v15, %v9720_v39  ;;  %v4810_v24 = vmul.f32 %v9715_v15, %v9722_v37  ;;  %v4811_v6 = vmul.f32 %v9715_v15, %v9724_v10 }
 0xc12   : > { %v4812_v1 = vmul.f32 %v9715_v15, %v9726_v26  ;;  %v4813_v51 = vmul.f32 %v9715_v15, %v9728_v7  ;;  %v4814_v8 = vmul.f32 %v9715_v15, %v9730_v32  ;;  %v4815_v31 = vmul.f32 %v9715_v15, %v9732_v11 }
 0xc13   : > { %v4816_v49 = vmul.f32 %v9715_v15, %v9734_v62  ;;  %v4817_v14 = vmul.f32 %v9715_v15, %v9736_v29  ;;  %v4818_v44 = vmul.f32 %v9715_v15, %v9738_v13  ;;  %v4819_v0 = vmul.f32 %v9715_v15, %v9740_v23 }
 0xc14   : > { %v4820_v9 = vmul.f32 %v9715_v15, %v9742_v3  ;;  %v4821_v48 = vmul.f32 %v9715_v15, %v9744_v34  ;;  %v4822_v60 = vmul.f32 %v9715_v15, %v9746_v18  ;;  %v4823_v21 = vmul.f32 %v9715_v15, %v9748_v52 }
 0xc15   : > { %v4824_v42 = vmul.f32 %v9715_v15, %v9750_v27  ;;  %vm4802_vm9 = vcmp.ge.f32.partialorder %v9776_v22, 0.0  ;;  %vm4803_vm10 = vcmp.ge.f32.partialorder %v9778_v46, 0.0  ;;  %vm4804_vm6 = vcmp.ge.f32.partialorder %v9780_v45, 0.0 }
 0xc16   : > { %vm4805_vm8 = vcmp.ge.f32.partialorder %v9782_v2, 0.0  ;;  %v4825_v47 = vmul.f32 %v9715_v15, %v9752_v61  ;;  %v4826_v12 = vmul.f32 %v9715_v15, %v9754_v55  ;;  %v4827_v35 = vmul.f32 %v9715_v15, %v9756_v41 }
 0xc17   : > { %v4828_v17 = vmul.f32 %v9715_v15, %v9758_v58  ;;  %v4829_v4 = vmul.f32 %v9715_v15, %v9760_v40  ;;  %v4830_v63 = vmul.f32 %v9715_v15, %v9762_v57  ;;  %v4831_v33 = vmul.f32 %v9715_v15, %v9764_v56 }
 0xc18   : > { %v4832_v5 = vmul.f32 %v9715_v15, %v9766_v19  ;;  %v4833_v16 = vmul.f32 %v9715_v15, %v9768_v43  ;;  %v4834_v59 = vmul.f32 %v9715_v15, %v9770_v53  ;;  %v4835_v30 = vmul.f32 %v9715_v15, %v9772_v50 }
 0xc19   : > { %v4836_v36 = vmul.f32 %v9715_v15, %v9774_v54  ;;  %v4837_v20 = vmul.f32 %v9715_v15, %v9776_v22  ;;  %v4838_v25 = vmul.f32 %v9715_v15, %v9778_v46  ;;  %v4839_v38 = vmul.f32 %v9715_v15, %v9780_v45 }
 0xc1a   : > { %v4840_v43 = vmul.f32 %v9715_v15, %v9782_v2  ;;  %v4841_v53 = vsel %vm4774_vm11, %v9720_v39, %v4809_v28  ;;  %v4842_v54 = vsel %vm4775_vm12, %v9722_v37, %v4810_v24  ;;  %v4843_v22 = vsel %vm4776_vm13, %v9724_v10, %v4811_v6  ;;  %v10423_v28 = vld [vmem:[#allocation14_spill] sm:$0xff] }
 0xc1b   : > { %v4844_v46 = vsel %vm4777_vm14, %v9726_v26, %v4812_v1  ;;  %v4845_v15 = vsel %vm4778_vm15, %v9728_v7, %v4813_v51  ;;  %v4846_v39 = vsel %vm4779_vm0, %v9730_v32, %v4814_v8  ;;  %v4847_v37 = vsel %vm4780_vm1, %v9732_v11, %v4815_v31  ;;  %4873 = vst [vmem:[%s9910_s18] sm:$0xff] %v4841_v53  ;;  %v10420_v53 = vld [vmem:[#allocation45_spill] sm:$0xff] }
 0xc1c   : > { %v4848_v10 = vsel %vm4781_vm2, %v9734_v62, %v4816_v49  ;;  %4874 = vst [vmem:[%s9910_s18 + $0x8] sm:$0xff] %v4842_v54  ;;  %4875 = vst [vmem:[%s9910_s18 + $0x10] sm:$0xff] %v4843_v22  ;;  %v4849_v26 = vsel %vm4782_vm3, %v9736_v29, %v4817_v14  ;;  %v4850_v7 = vsel %vm4783_vm4, %v9738_v13, %v4818_v44  ;;  %vm10403_vm11 = vcmp.ge.f32.partialorder %v9744_v34, 0.0  ;;  %v10422_v22 = vld [vmem:[#allocation49_spill] sm:$0xff] }
 0xc1d   : > { %4876 = vst [vmem:[%s9910_s18 + $0x18] sm:$0xff] %v4844_v46  ;;  %v4851_v32 = vsel %vm4784_vm5, %v9740_v23, %v4819_v0  ;;  %v4852_v11 = vsel %vm4785_vm7, %v9742_v3, %v4820_v9  ;;  %4877 = vst [vmem:[%s9910_s18 + $0x20] sm:$0xff] %v4845_v15  ;;  %v4853_v62 = vsel %vm10403_vm11, %v9744_v34, %v4821_v48  ;;  %vm10404_vm12 = vcmp.ge.f32.partialorder %v9746_v18, 0.0 }
 0xc1e   : > { %4878 = vst [vmem:[%s9910_s18 + $0x28] sm:$0xff] %v4846_v39  ;;  %4879 = vst [vmem:[%s9910_s18 + $0x30] sm:$0xff] %v4847_v37  ;;  %v4854_v29 = vsel %vm10404_vm12, %v9746_v18, %v4822_v60  ;;  %vm10405_vm13 = vcmp.ge.f32.partialorder %v9748_v52, 0.0  ;;  %vm10406_vm14 = vcmp.ge.f32.partialorder %v9750_v27, 0.0  ;;  %vm10407_vm15 = vcmp.ge.f32.partialorder %v9752_v61, 0.0 }
 0xc1f   : > { %4880 = vst [vmem:[%s9910_s18 + $0x38] sm:$0xff] %v4848_v10  ;;  %v4855_v13 = vsel %vm10405_vm13, %v9748_v52, %v4823_v21  ;;  %v4856_v23 = vsel %vm10406_vm14, %v9750_v27, %v4824_v42  ;;  %4881 = vst [vmem:[%s9910_s18 + $0x40] sm:$0xff] %v4849_v26  ;;  %v4857_v3 = vsel %vm10407_vm15, %v9752_v61, %v4825_v47  ;;  %vm10408_vm0 = vcmp.ge.f32.partialorder %v9754_v55, 0.0 }
 0xc20   : > { %4882 = vst [vmem:[%s9910_s18 + $0x48] sm:$0xff] %v4850_v7  ;;  %4883 = vst [vmem:[%s9910_s18 + $0x50] sm:$0xff] %v4851_v32  ;;  %v4858_v34 = vsel %vm10408_vm0, %v9754_v55, %v4826_v12  ;;  %vm10409_vm1 = vcmp.ge.f32.partialorder %v9756_v41, 0.0  ;;  %vm10410_vm2 = vcmp.ge.f32.partialorder %v9758_v58, 0.0  ;;  %vm10411_vm3 = vcmp.ge.f32.partialorder %v9760_v40, 0.0 }
 0xc21   : > { %4884 = vst [vmem:[%s9910_s18 + $0x58] sm:$0xff] %v4852_v11  ;;  %v4859_v18 = vsel %vm10409_vm1, %v9756_v41, %v4827_v35  ;;  %v4860_v52 = vsel %vm10410_vm2, %v9758_v58, %v4828_v17  ;;  %4885 = vst [vmem:[%s9910_s18 + $0x60] sm:$0xff] %v4853_v62  ;;  %v4861_v27 = vsel %vm10411_vm3, %v9760_v40, %v4829_v4  ;;  %vm10412_vm4 = vcmp.ge.f32.partialorder %v9762_v57, 0.0  ;;  %v10415_v58 = vld [vmem:[#allocation47_spill] sm:$0xff] }
 0xc22   : > { %4886 = vst [vmem:[%s9910_s18 + $0x68] sm:$0xff] %v4854_v29  ;;  %4887 = vst [vmem:[%s9910_s18 + $0x70] sm:$0xff] %v4855_v13  ;;  %v4862_v61 = vsel %vm10412_vm4, %v9762_v57, %v4830_v63  ;;  %vm10413_vm5 = vcmp.ge.f32.partialorder %v9764_v56, 0.0  ;;  %vm10414_vm7 = vcmp.ge.f32.partialorder %v9766_v19, 0.0  ;;  %vm10416_vm11 = vcmp.ge.f32.partialorder %v10415_v58, 0.0  ;;  %v10417_v57 = vld [vmem:[#allocation12_spill] sm:$0xff] }
 0xc23   : > { %4888 = vst [vmem:[%s9910_s18 + $0x78] sm:$0xff] %v4856_v23  ;;  %v4863_v55 = vsel %vm10413_vm5, %v9764_v56, %v4831_v33  ;;  %v4864_v41 = vsel %vm10414_vm7, %v9766_v19, %v4832_v5  ;;  %4889 = vst [vmem:[%s9910_s18 + $0x80] sm:$0xff] %v4857_v3  ;;  %v4865_v40 = vsel %vm10416_vm11, %v10415_v58, %v4833_v16  ;;  %vm10418_vm12 = vcmp.ge.f32.partialorder %v10417_v57, 0.0 }
 0xc24   : > { %4890 = vst [vmem:[%s9910_s18 + $0x88] sm:$0xff] %v4858_v34  ;;  %4891 = vst [vmem:[%s9910_s18 + $0x90] sm:$0xff] %v4859_v18  ;;  %v4866_v56 = vsel %vm10418_vm12, %v10417_v57, %v4834_v59  ;;  %vm10419_vm13 = vcmp.ge.f32.partialorder %v9772_v50, 0.0  ;;  %vm10421_vm14 = vcmp.ge.f32.partialorder %v10420_v53, 0.0  ;;  %v4869_v46 = vsel %vm4802_vm9, %v10422_v22, %v4837_v20 }
 0xc25   : > { %4892 = vst [vmem:[%s9910_s18 + $0x98] sm:$0xff] %v4860_v52  ;;  %v4867_v19 = vsel %vm10419_vm13, %v9772_v50, %v4835_v30  ;;  %v4868_v54 = vsel %vm10421_vm14, %v10420_v53, %v4836_v36  ;;  %4893 = vst [vmem:[%s9910_s18 + $0xa0] sm:$0xff] %v4861_v27  ;;  %v4870_v50 = vsel %vm4803_vm10, %v10423_v28, %v4838_v25 }
 0xc26   : > { %4894 = vst [vmem:[%s9910_s18 + $0xa8] sm:$0xff] %v4862_v61  ;;  %4895 = vst [vmem:[%s9910_s18 + $0xb0] sm:$0xff] %v4863_v55  ;;  %v4871_v24 = vsel %vm4804_vm6, %v9780_v45, %v4839_v38  ;;  %v4872_v6 = vsel %vm4805_vm8, %v9782_v2, %v4840_v43 }
 0xc27   : > { %4896 = vst [vmem:[%s9910_s18 + $0xb8] sm:$0xff] %v4864_v41  ;;  %4897 = vst [vmem:[%s9910_s18 + $0xc0] sm:$0xff] %v4865_v40 }
 0xc28   : > { %4898 = vst [vmem:[%s9910_s18 + $0xc8] sm:$0xff] %v4866_v56  ;;  %4899 = vst [vmem:[%s9910_s18 + $0xd0] sm:$0xff] %v4867_v19 }
 0xc29   : > { %4900 = vst [vmem:[%s9910_s18 + $0xd8] sm:$0xff] %v4868_v54  ;;  %4901 = vst [vmem:[%s9910_s18 + $0xe0] sm:$0xff] %v4869_v46 }
 0xc2a   : > { %4902 = vst [vmem:[%s9910_s18 + $0xe8] sm:$0xff] %v4870_v50  ;;  %4903 = vst [vmem:[%s9910_s18 + $0xf0] sm:$0xff] %v4871_v24 }
 0xc2b   : > { %4904 = vst [vmem:[%s9910_s18 + $0xf8] sm:$0xff] %v4872_v6 }
 0xc2c   : > { %6596 = shalt.err (!%p6593_p3)
}
 0xc2d   : > { %s6597_s21 = scalar_lea.hbm %s9985_s30, 4096  ;;  %s6601_s29 = scalar_lea.hbm %s10084_s16, 8192 }
 0xc2e   : > { %p6598_p4 = scmp.ne.s32.totalorder %s9985_s30, %s6597_s21  ;;  %p6602_p9 = scmp.lt.u32.totalorder %s9985_s30, %s10084_s16 }
 0xc2f   : > { %p6603_p10 = scmp.lt.u32.totalorder %s6601_s29, %s6597_s21  ;;  %p6605_p12 = scmp.lt.u32.totalorder %s6597_s21, %s9985_s30 }
 0xc30   : > { %p6599_p7 = pnand %p6598_p4, %p6781_p5 }
 0xc31   : > { %p6604_p11 = por %p6603_p10, %p6602_p9 }
 0xc32   : > { %p6600_p8 = pneg %p6599_p7 }
 0xc33   : > { %p6606_p13 = por %p6605_p12, %p6604_p11 }
 0xc35   : > { %p6607_p0 = pnand %p6606_p13, %p6600_p8 }
 0xc37   : > { %6610 = shalt.err (!%p6607_p0)
}
 0xc38   : > { %s6653_s22 = smov 128   ;;  %s6654_s27 = smov 8  }
 0xc39   : > { %6260 = dma.vmem_to_hbm [thread:$0]  (%p6781_p5), %s9987_s28, 4096, %s9985_s30, %s10027_s20, %s6653_s22, %s6653_s22, %s6654_s27  }
 0xc3a PF: > { %s10424_s23 = sld [smem:[#allocation6_spill]]  ;;  %p6266_p1 = scmp.ge.s32.totalorder %s6645_s26, 2 }
 0xc3c   : > { %p6263_p2 = pnand %p6266_p1, %p6785_p6 }
 0xc40   : > { %s4934_s0 = sand.u32 1, %s10424_s23  }
 0xc41   : > { %s4935_s21 = scalar_lea.sflag [#allocation4], %s4934_s0 }
 0xc42   : > { %6628 = dma.done.wait (!%p6263_p2), %s4935_s21, 4096  }
 0xc43   : > { %6630 = vsyncadd (!%p6263_p2), %s4935_s21, 4294963200  ;;  %s10426_s26 = sld [smem:[#allocation8_spill]]  ;;  %s10427_s18 = sld [smem:[#allocation7_spill]] }
 0xc44   : > { %s10428_s25 = sld [smem:[#allocation9_spill]]  ;;  %s10429_s23 = smov %s6637_s24 }
 0xc49   : > { %p28_p3 = scmp.ge.s32.totalorder %s10426_s26, 4   ;;  %s10430_s24 = smov %s10427_s18 }
 0xc4b   :  { %30 = sbr.rel (!%p28_p3) target bundleno = 6 (0x6), region = 122 }
 0xc52   :  { %4940 = vsyncpa [#allocation4], 1 }
 0xc53   :  { %4942 = vsyncpa [#allocation4 + $0x1], 1 }

</bundles_post_ra>
